<compile_context>
chip_gen: v6e
topology: v6e:2x2x1
jax: 0.10.0
libtpu: 0.0.40
codegen_flags: <defaults>
</compile_context>

<pallas_src>
import functools
import math

import jax
import jax.numpy as jnp
import numpy as np
from jax import lax
from jax.experimental import pallas as pl
from jax.experimental.pallas import tpu as pltpu

_K0 = 0.7978845608028654      # sqrt(2/pi)
_K1 = 0.044715


def _gelu(x):
    # tanh-approx GELU: the transcendental runs on the EUP (own bundle slot), cutting the
    # VALU load ~2-3x vs the erf rational polynomial.  |err| vs exact erf GELU ~1e-3.
    return 0.5 * x * (1.0 + jnp.tanh(_K0 * (x + _K1 * x * x * x)))


# ------------------------------- Pallas kernel --------------------------------------------
def _smv_kernel(xcol_ref,
                w1_ref, b1_ref,
                w2_ref, b2_ref,
                w3_ref, b3_ref,
                fc1w_ref, fc1b_ref, fc2w_ref, fc2b_ref, fc3w_ref, fc3b_ref,
                feat_ref, thr_ref,
                p2_scr, p3_scr,
                *, BT, L, C1, H):
    f32 = jnp.float32
    bf16 = jnp.bfloat16
    Lout = L // 2
    M = BT * L                                   # rows per grid step (batch-blocked)

    # ---- Conv1d(1 -> C1, k=7, pad=3): one im2col matmul (K padded 7 -> 8), BN folded ------
    xcol = xcol_ref[...].reshape(M, 8)                                        # bf16 (M, 8)
    y1 = _gelu(jnp.dot(xcol, w1_ref[...], preferred_element_type=f32) + b1_ref[...])
    # TODO(synk): Dropout layers are train-mode stochastic; eval-mode forward => identity.

    # ---- Conv1d(C1 -> H, k=11, pad=5): bf16 halo scratch + per-tap MXU matmuls ------------
    # Halos are 16 rows (bf16 sublane tile) so the interior store is tile-aligned.  Halo rows
    # are re-zeroed every step: init-once under pl.when(pid==0) would break under "parallel"
    # megacore sharding of the grid axis (other core never sees program_id == 0).
    zc = jnp.zeros((BT, 16, C1), bf16)
    p2_scr[:, 0:16, :] = zc
    p2_scr[:, 16 + L:32 + L, :] = zc
    p2_scr[:, 16:16 + L, :] = y1.reshape(BT, L, C1).astype(bf16)
    acc2 = jnp.zeros((M, H), f32)
    for j in range(11):                          # window for tap j starts at row 11 + j
        lhs = p2_scr[:, 11 + j:11 + j + L, :].reshape(M, C1)
        acc2 = acc2 + jnp.dot(lhs, w2_ref[j], preferred_element_type=f32)
    y2 = _gelu(acc2 + b2_ref[...])                                            # f32 (M, H)

    # ---- depthwise Conv1d(H -> H, k=15, pad=7, groups=H) fused with MaxPool1d(2) ----------
    # Even/odd output streams are read with stride-2 windows straight from the halo scratch,
    # so the pool is a single register jnp.maximum and no y3 scratch / extra VMEM pass exists.
    zh = jnp.zeros((BT, 8, H), f32)
    p3_scr[:, 0:8, :] = zh
    p3_scr[:, 8 + L:16 + L, :] = zh
    p3_scr[:, 8:8 + L, :] = y2.reshape(BT, L, H)
    acc_e = jnp.zeros((BT, Lout, H), f32)
    acc_o = jnp.zeros((BT, Lout, H), f32)
    for j in range(15):                          # even outputs start at row 1+j, odd at 2+j
        w3j = w3_ref[j:j + 1, :]                                              # (1, H)
        acc_e = acc_e + p3_scr[:, pl.ds(1 + j, Lout, stride=2), :] * w3j
        acc_o = acc_o + p3_scr[:, pl.ds(2 + j, Lout, stride=2), :] * w3j
    pooled = jnp.maximum(_gelu(acc_e + b3_ref[...]),
                         _gelu(acc_o + b3_ref[...]))                          # (BT, Lout, H)

    # ---- features written NCL directly: per-batch (Lout, H) -> (H, Lout) XLU transposes ---
    for b in range(BT):
        feat_ref[b] = pooled[b].T                                             # (H, Lout)

    # ---- threshold head: AdaptiveMaxPool1d(1) -> Flatten -> MLP -> Sigmoid ----------------
    g = jnp.max(pooled, axis=1)                                               # (BT, H)
    h = _gelu(jnp.dot(g, fc1w_ref[...], preferred_element_type=f32) + fc1b_ref[...])
    h = _gelu(jnp.dot(h, fc2w_ref[...], preferred_element_type=f32) + fc2b_ref[...])
    z = jnp.dot(h, fc3w_ref[...], preferred_element_type=f32) + fc3b_ref[...]
    thr_ref[...] = 1.0 / (1.0 + jnp.exp(-z))     # exact sigmoid (BT x 1 — cost nil)


# ------------------------------- wrapper (glue) --------------------------------------------
def _fold_bn(gamma, beta, mean, var, eps=1e-5):
    scale = gamma / jnp.sqrt(var + eps)
    shift = beta - mean * scale
    return scale, shift


def enhanced_smv_processor(x, p, *, batch_tile=8):
    """x: (B, 1, L) float32 (NCL).  Returns (features (B, H, L//2), threshold (B, 1))."""
    B, cin, L = x.shape
    assert cin == 1 and L % 16 == 0, "assumes 1 input channel and L % 16 == 0"
    H = p["w2"].shape[0]
    C1 = H // 2
    Lout = L // 2
    f32, bf16 = jnp.float32, jnp.bfloat16

    BT = batch_tile                                   # batch elements per grid step
    assert BT % 8 == 0, "batch_tile must be a multiple of 8 (sublane-aligned (BT,1) block)"
    B_pad = ((B + BT - 1) // BT) * BT                 # pad batch so each step is full

    # Fold BatchNorm (running stats, eval mode) into conv weights / biases.
    s1, t1 = _fold_bn(p["g1"], p["be1"], p["m1"], p["v1"])
    s2, t2 = _fold_bn(p["g2"], p["be2"], p["m2"], p["v2"])
    s3, t3 = _fold_bn(p["g3"], p["be3"], p["m3"], p["v3"])

    row = lambda v: v.reshape(1, -1)
    w1col = jnp.concatenate([p["w1"][:, 0, :].T, jnp.zeros((1, C1), f32)], axis=0)  # (8, C1)
    w1col = (w1col * s1[None, :]).astype(bf16)
    b1f = row(p["b1"] * s1 + t1)
    w2t = (jnp.transpose(p["w2"], (2, 1, 0)) * s2[None, None, :]).astype(bf16)      # (11,C1,H)
    b2f = row(p["b2"] * s2 + t2)
    w3t = p["w3"][:, 0, :].T * s3[None, :]                                           # (15, H)
    b3f = row(p["b3"] * s3 + t3)

    # conv1 im2col (pure layout plumbing), bf16; tap 7 is zero padding so K=8.
    # TODO(synk): move conv1 fully in-kernel to cut input HBM traffic 8x (deferred).
    x1 = x[:, 0, :].astype(f32)                       # (B, L)
    xp = jnp.pad(x1, ((0, 0), (3, 3)))                # (B, L+6)
    taps = [xp[:, j:j + L] for j in range(7)] + [jnp.zeros((B, L), f32)]
    xcol = jnp.stack(taps, axis=-1).astype(bf16)      # (B, L, 8)
    if B_pad != B:
        xcol = jnp.pad(xcol, ((0, B_pad - B), (0, 0), (0, 0)))

    args = (xcol,
            w1col, b1f,
            w2t, b2f,
            w3t, b3f,
            p["fc1_w"].T, row(p["fc1_b"]),
            p["fc2_w"].T, row(p["fc2_b"]),
            p["fc3_w"].T, row(p["fc3_b"]))

    def full_spec(a):                                 # weights: constant block across grid
        return pl.BlockSpec(a.shape, lambda b: (0,) * a.ndim)

    in_specs = [pl.BlockSpec((BT, L, 8), lambda b: (b, 0, 0))]
    in_specs += [full_spec(a) for a in args[1:]]

    kernel = functools.partial(_smv_kernel, BT=BT, L=L, C1=C1, H=H)

    feat, thr = pl.pallas_call(
        kernel,
        out_shape=(jax.ShapeDtypeStruct((B_pad, H, Lout), f32),    # NCL, no wrapper transpose
                   jax.ShapeDtypeStruct((B_pad, 1), f32)),
        grid_spec=pltpu.PrefetchScalarGridSpec(
            num_scalar_prefetch=0,
            grid=(B_pad // BT,),
            in_specs=in_specs,
            out_specs=(pl.BlockSpec((BT, H, Lout), lambda b: (b, 0, 0)),
                       pl.BlockSpec((BT, 1), lambda b: (b, 0))),
            scratch_shapes=[pltpu.VMEM((BT, L + 32, C1), bf16),    # conv2 halo scratch (bf16)
                            pltpu.VMEM((BT, L + 16, H), f32)]),    # conv3 halo scratch (f32)
        compiler_params=pltpu.CompilerParams(
            dimension_semantics=("parallel",),
            vmem_limit_bytes=32 * 1024 * 1024),
    )(*args)

    return feat[:B], thr[:B]


# ------------------------------- deterministic params --------------------------------------
def init_params(key, hidden_dim):
    H = hidden_dim
    C1, C2 = H // 2, H // 4
    keys = iter(jax.random.split(key, 32))

    def u(shape, fan_in):
        bound = 1.0 / math.sqrt(fan_in)
        return jax.random.uniform(next(keys), shape, jnp.float32, -bound, bound)

    def bn(c):
        g = 1.0 + 0.1 * jax.random.normal(next(keys), (c,), jnp.float32)
        be = 0.1 * jax.random.normal(next(keys), (c,), jnp.float32)
        m = 0.1 * jax.random.normal(next(keys), (c,), jnp.float32)
        v = jax.random.uniform(next(keys), (c,), jnp.float32, 0.5, 1.5)
        return g, be, m, v

    p = {}
    p["w1"] = u((C1, 1, 7), 7);        p["b1"] = u((C1,), 7)
    p["g1"], p["be1"], p["m1"], p["v1"] = bn(C1)
    p["w2"] = u((H, C1, 11), C1 * 11); p["b2"] = u((H,), C1 * 11)
    p["g2"], p["be2"], p["m2"], p["v2"] = bn(H)
    p["w3"] = u((H, 1, 15), 15);       p["b3"] = u((H,), 15)
    p["g3"], p["be3"], p["m3"], p["v3"] = bn(H)
    p["fc1_w"] = u((C1, H), H);        p["fc1_b"] = u((C1,), H)
    p["fc2_w"] = u((C2, C1), C1);      p["fc2_b"] = u((C2,), C1)
    p["fc3_w"] = u((1, C2), C2);       p["fc3_b"] = u((1,), C2)
    return p


# ------------------------------- pure-JAX reference (for validation) ------------------------
def ref_forward(x, p, eps=1e-5):
    gelu = lambda v: jax.nn.gelu(v, approximate=False)
    dn = ("NCH", "OIH", "NCH")

    def bn(y, g, be, m, v):
        return (y - m[None, :, None]) / jnp.sqrt(v[None, :, None] + eps) * g[None, :, None] \
            + be[None, :, None]

    y = lax.conv_general_dilated(x, p["w1"], (1,), [(3, 3)], dimension_numbers=dn)
    y = gelu(bn(y + p["b1"][None, :, None], p["g1"], p["be1"], p["m1"], p["v1"]))
    y = lax.conv_general_dilated(y, p["w2"], (1,), [(5, 5)], dimension_numbers=dn)
    y = gelu(bn(y + p["b2"][None, :, None], p["g2"], p["be2"], p["m2"], p["v2"]))
    y = lax.conv_general_dilated(y, p["w3"], (1,), [(7, 7)], dimension_numbers=dn,
                                 feature_group_count=p["w3"].shape[0])
    y = gelu(bn(y + p["b3"][None, :, None], p["g3"], p["be3"], p["m3"], p["v3"]))
    B, C, Lc = y.shape
    feats = y.reshape(B, C, Lc // 2, 2).max(axis=-1)          # MaxPool1d(2)
    pooled = feats.max(axis=-1)                                # AdaptiveMaxPool1d(1) + Flatten
    h = gelu(pooled @ p["fc1_w"].T + p["fc1_b"])
    h = gelu(h @ p["fc2_w"].T + p["fc2_b"])
    thr = jax.nn.sigmoid(h @ p["fc3_w"].T + p["fc3_b"])
    return feats, thr


if __name__ == "__main__":
    # B=10 with batch_tile=8 gives B_pad=16 -> a 2-step grid (exercises batch padding,
    # cross-step scratch reuse, and the "parallel" grid axis).
    B, L, H = 10, 16, 32                                      # batch, seq length, hidden_dim
    key = jax.random.PRNGKey(0)
    pkey, xkey = jax.random.split(key)
    params = init_params(pkey, H)
    x = jax.random.normal(xkey, (B, 1, L), jnp.float32)       # (B, 1, L) like PyTorch NCL

    features, threshold = jax.block_until_ready(
        jax.jit(enhanced_smv_processor)(x, params))

    assert features.shape == (B, H, L // 2) and threshold.shape == (B, 1)

    # Tolerance 3e-2: tanh-approx GELU (~1e-3 abs) + bf16 MXU operands for conv1/conv2
    # (f32 accumulation) vs the exact-erf / f32 reference.
    ref_feat, ref_thr = ref_forward(x, params)
    np.testing.assert_allclose(np.asarray(features), np.asarray(ref_feat), rtol=3e-2, atol=3e-2)
    np.testing.assert_allclose(np.asarray(threshold), np.asarray(ref_thr), rtol=3e-2, atol=3e-2)

    print("KERNEL_OK")
</pallas_src>

<mosaic_0001>
module attributes {stable_mosaic.version = 11 : i64} {
  func.func @_smv_kernel(%arg0: i32, %arg1: memref<8x16x8xbf16, #tpu.memory_space<vmem>>, %arg2: memref<8x16xbf16, #tpu.memory_space<vmem>>, %arg3: memref<1x16xf32, #tpu.memory_space<vmem>>, %arg4: memref<11x16x32xbf16, #tpu.memory_space<vmem>>, %arg5: memref<1x32xf32, #tpu.memory_space<vmem>>, %arg6: memref<15x32xf32, #tpu.memory_space<vmem>>, %arg7: memref<1x32xf32, #tpu.memory_space<vmem>>, %arg8: memref<32x16xf32, #tpu.memory_space<vmem>>, %arg9: memref<1x16xf32, #tpu.memory_space<vmem>>, %arg10: memref<16x8xf32, #tpu.memory_space<vmem>>, %arg11: memref<1x8xf32, #tpu.memory_space<vmem>>, %arg12: memref<8x1xf32, #tpu.memory_space<vmem>>, %arg13: memref<1x1xf32, #tpu.memory_space<vmem>>, %arg14: memref<8x32x8xf32, #tpu.memory_space<vmem>>, %arg15: memref<8x1xf32, #tpu.memory_space<vmem>>, %arg16: memref<8x48x16xbf16, #tpu.memory_space<vmem>>, %arg17: memref<8x32x32xf32, #tpu.memory_space<vmem>>) attributes {dimension_semantics = [#tpu.dimension_semantics<parallel>], iteration_bounds = array<i64: 2>, scalar_prefetch = 0 : i64, scratch_operands = 2 : i64, tpu.core_type = #tpu.core_type<tc>, window_params = [{transform_indices = @transform_0, window_bounds = array<i64: 8, 16, 8>}, {pipeline_mode = #tpu.pipeline_mode<synchronous>, transform_indices = @transform_1, window_bounds = array<i64: 8, 16>}, {pipeline_mode = #tpu.pipeline_mode<synchronous>, transform_indices = @transform_2, window_bounds = array<i64: 1, 16>}, {pipeline_mode = #tpu.pipeline_mode<synchronous>, transform_indices = @transform_3, window_bounds = array<i64: 11, 16, 32>}, {pipeline_mode = #tpu.pipeline_mode<synchronous>, transform_indices = @transform_4, window_bounds = array<i64: 1, 32>}, {pipeline_mode = #tpu.pipeline_mode<synchronous>, transform_indices = @transform_5, window_bounds = array<i64: 15, 32>}, {pipeline_mode = #tpu.pipeline_mode<synchronous>, transform_indices = @transform_6, window_bounds = array<i64: 1, 32>}, {pipeline_mode = #tpu.pipeline_mode<synchronous>, transform_indices = @transform_7, window_bounds = array<i64: 32, 16>}, {pipeline_mode = #tpu.pipeline_mode<synchronous>, transform_indices = @transform_8, window_bounds = array<i64: 1, 16>}, {pipeline_mode = #tpu.pipeline_mode<synchronous>, transform_indices = @transform_9, window_bounds = array<i64: 16, 8>}, {pipeline_mode = #tpu.pipeline_mode<synchronous>, transform_indices = @transform_10, window_bounds = array<i64: 1, 8>}, {pipeline_mode = #tpu.pipeline_mode<synchronous>, transform_indices = @transform_11, window_bounds = array<i64: 8, 1>}, {pipeline_mode = #tpu.pipeline_mode<synchronous>, transform_indices = @transform_12, window_bounds = array<i64: 1, 1>}, {transform_indices = @transform_13, window_bounds = array<i64: 8, 32, 8>}, {transform_indices = @transform_14, window_bounds = array<i64: 8, 1>}]} {
    %c0 = arith.constant 0 : index
    %c0_0 = arith.constant 0 : index
    %c0_1 = arith.constant 0 : index
    %0 = vector.load %arg1[%c0, %c0_0, %c0_1] : memref<8x16x8xbf16, #tpu.memory_space<vmem>>, vector<8x16x8xbf16>
    %1 = vector.shape_cast %0 : vector<8x16x8xbf16> to vector<128x8xbf16>
    %c0_2 = arith.constant 0 : index
    %c0_3 = arith.constant 0 : index
    %2 = vector.load %arg2[%c0_2, %c0_3] : memref<8x16xbf16, #tpu.memory_space<vmem>>, vector<8x16xbf16>
    %cst = arith.constant dense<0.000000e+00> : vector<128x16xf32>
    %3 = tpu.matmul %1, %2, %cst {dimension_numbers = #tpu.dot_dimension_numbers<[1], [0], [0], [1], [0, 0, 1, 1], [], []>} : vector<128x8xbf16>, vector<8x16xbf16>, vector<128x16xf32> -> vector<128x16xf32>
    %c0_4 = arith.constant 0 : index
    %c0_5 = arith.constant 0 : index
    %4 = vector.load %arg3[%c0_4, %c0_5] : memref<1x16xf32, #tpu.memory_space<vmem>>, vector<1x16xf32>
    %5 = vector.broadcast %4 : vector<1x16xf32> to vector<128x16xf32>
    %6 = arith.addf %3, %5 : vector<128x16xf32>
    %cst_6 = arith.constant 5.000000e-01 : f32
    %7 = vector.broadcast %cst_6 : f32 to vector<128x16xf32>
    %8 = arith.mulf %7, %6 : vector<128x16xf32>
    %cst_7 = arith.constant 4.471500e-02 : f32
    %9 = vector.broadcast %cst_7 : f32 to vector<128x16xf32>
    %10 = arith.mulf %9, %6 : vector<128x16xf32>
    %11 = arith.mulf %10, %6 : vector<128x16xf32>
    %12 = arith.mulf %11, %6 : vector<128x16xf32>
    %13 = arith.addf %6, %12 : vector<128x16xf32>
    %cst_8 = arith.constant 0.797884583 : f32
    %14 = vector.broadcast %cst_8 : f32 to vector<128x16xf32>
    %15 = arith.mulf %14, %13 : vector<128x16xf32>
    %16 = math.tanh %15 : vector<128x16xf32>
    %cst_9 = arith.constant 1.000000e+00 : f32
    %17 = vector.broadcast %cst_9 : f32 to vector<128x16xf32>
    %18 = arith.addf %17, %16 : vector<128x16xf32>
    %19 = arith.mulf %8, %18 : vector<128x16xf32>
    %cst_10 = arith.constant 0.000000e+00 : bf16
    %20 = vector.broadcast %cst_10 : bf16 to vector<8x16x16xbf16>
    %c0_11 = arith.constant 0 : index
    %c0_12 = arith.constant 0 : index
    %c0_13 = arith.constant 0 : index
    %21 = vector.load %arg16[%c0_11, %c0_12, %c0_13] : memref<8x48x16xbf16, #tpu.memory_space<vmem>>, vector<8x16x16xbf16>
    tpu.vector_store %arg16[%c0_11, %c0_12, %c0_13], %20 {strides = array<i32>} : memref<8x48x16xbf16, #tpu.memory_space<vmem>>, vector<8x16x16xbf16>,
    %c0_14 = arith.constant 0 : index
    %c32 = arith.constant 32 : index
    %c0_15 = arith.constant 0 : index
    %22 = vector.load %arg16[%c0_14, %c32, %c0_15] : memref<8x48x16xbf16, #tpu.memory_space<vmem>>, vector<8x16x16xbf16>
    tpu.vector_store %arg16[%c0_14, %c32, %c0_15], %20 {strides = array<i32>} : memref<8x48x16xbf16, #tpu.memory_space<vmem>>, vector<8x16x16xbf16>,
    %23 = vector.shape_cast %19 : vector<128x16xf32> to vector<8x16x16xf32>
    %24 = arith.truncf %23 : vector<8x16x16xf32> to vector<8x16x16xbf16>
    %c0_16 = arith.constant 0 : index
    %c16 = arith.constant 16 : index
    %c0_17 = arith.constant 0 : index
    %25 = vector.load %arg16[%c0_16, %c16, %c0_17] : memref<8x48x16xbf16, #tpu.memory_space<vmem>>, vector<8x16x16xbf16>
    tpu.vector_store %arg16[%c0_16, %c16, %c0_17], %24 {strides = array<i32>} : memref<8x48x16xbf16, #tpu.memory_space<vmem>>, vector<8x16x16xbf16>,
    %cst_18 = arith.constant 0.000000e+00 : f32
    %26 = vector.broadcast %cst_18 : f32 to vector<128x32xf32>
    %c0_19 = arith.constant 0 : index
    %c11 = arith.constant 11 : index
    %c0_20 = arith.constant 0 : index
    %27 = vector.load %arg16[%c0_19, %c11, %c0_20] : memref<8x48x16xbf16, #tpu.memory_space<vmem>>, vector<8x16x16xbf16>
    %28 = vector.shape_cast %27 : vector<8x16x16xbf16> to vector<128x16xbf16>
    %c0_21 = arith.constant 0 : index
    %c0_22 = arith.constant 0 : index
    %c0_23 = arith.constant 0 : index
    %29 = vector.load %arg4[%c0_21, %c0_22, %c0_23] : memref<11x16x32xbf16, #tpu.memory_space<vmem>>, vector<1x16x32xbf16>
    %30 = vector.shape_cast %29 : vector<1x16x32xbf16> to vector<16x32xbf16>
    %cst_24 = arith.constant dense<0.000000e+00> : vector<128x32xf32>
    %31 = tpu.matmul %28, %30, %cst_24 {dimension_numbers = #tpu.dot_dimension_numbers<[1], [0], [0], [1], [0, 0, 1, 1], [], []>} : vector<128x16xbf16>, vector<16x32xbf16>, vector<128x32xf32> -> vector<128x32xf32>
    %32 = arith.addf %26, %31 : vector<128x32xf32>
    %c0_25 = arith.constant 0 : index
    %c12 = arith.constant 12 : index
    %c0_26 = arith.constant 0 : index
    %33 = vector.load %arg16[%c0_25, %c12, %c0_26] : memref<8x48x16xbf16, #tpu.memory_space<vmem>>, vector<8x16x16xbf16>
    %34 = vector.shape_cast %33 : vector<8x16x16xbf16> to vector<128x16xbf16>
    %c1 = arith.constant 1 : index
    %c0_27 = arith.constant 0 : index
    %c0_28 = arith.constant 0 : index
    %35 = vector.load %arg4[%c1, %c0_27, %c0_28] : memref<11x16x32xbf16, #tpu.memory_space<vmem>>, vector<1x16x32xbf16>
    %36 = vector.shape_cast %35 : vector<1x16x32xbf16> to vector<16x32xbf16>
    %cst_29 = arith.constant dense<0.000000e+00> : vector<128x32xf32>
    %37 = tpu.matmul %34, %36, %cst_29 {dimension_numbers = #tpu.dot_dimension_numbers<[1], [0], [0], [1], [0, 0, 1, 1], [], []>} : vector<128x16xbf16>, vector<16x32xbf16>, vector<128x32xf32> -> vector<128x32xf32>
    %38 = arith.addf %32, %37 : vector<128x32xf32>
    %c0_30 = arith.constant 0 : index
    %c13 = arith.constant 13 : index
    %c0_31 = arith.constant 0 : index
    %39 = vector.load %arg16[%c0_30, %c13, %c0_31] : memref<8x48x16xbf16, #tpu.memory_space<vmem>>, vector<8x16x16xbf16>
    %40 = vector.shape_cast %39 : vector<8x16x16xbf16> to vector<128x16xbf16>
    %c2 = arith.constant 2 : index
    %c0_32 = arith.constant 0 : index
    %c0_33 = arith.constant 0 : index
    %41 = vector.load %arg4[%c2, %c0_32, %c0_33] : memref<11x16x32xbf16, #tpu.memory_space<vmem>>, vector<1x16x32xbf16>
    %42 = vector.shape_cast %41 : vector<1x16x32xbf16> to vector<16x32xbf16>
    %cst_34 = arith.constant dense<0.000000e+00> : vector<128x32xf32>
    %43 = tpu.matmul %40, %42, %cst_34 {dimension_numbers = #tpu.dot_dimension_numbers<[1], [0], [0], [1], [0, 0, 1, 1], [], []>} : vector<128x16xbf16>, vector<16x32xbf16>, vector<128x32xf32> -> vector<128x32xf32>
    %44 = arith.addf %38, %43 : vector<128x32xf32>
    %c0_35 = arith.constant 0 : index
    %c14 = arith.constant 14 : index
    %c0_36 = arith.constant 0 : index
    %45 = vector.load %arg16[%c0_35, %c14, %c0_36] : memref<8x48x16xbf16, #tpu.memory_space<vmem>>, vector<8x16x16xbf16>
    %46 = vector.shape_cast %45 : vector<8x16x16xbf16> to vector<128x16xbf16>
    %c3 = arith.constant 3 : index
    %c0_37 = arith.constant 0 : index
    %c0_38 = arith.constant 0 : index
    %47 = vector.load %arg4[%c3, %c0_37, %c0_38] : memref<11x16x32xbf16, #tpu.memory_space<vmem>>, vector<1x16x32xbf16>
    %48 = vector.shape_cast %47 : vector<1x16x32xbf16> to vector<16x32xbf16>
    %cst_39 = arith.constant dense<0.000000e+00> : vector<128x32xf32>
    %49 = tpu.matmul %46, %48, %cst_39 {dimension_numbers = #tpu.dot_dimension_numbers<[1], [0], [0], [1], [0, 0, 1, 1], [], []>} : vector<128x16xbf16>, vector<16x32xbf16>, vector<128x32xf32> -> vector<128x32xf32>
    %50 = arith.addf %44, %49 : vector<128x32xf32>
    %c0_40 = arith.constant 0 : index
    %c15 = arith.constant 15 : index
    %c0_41 = arith.constant 0 : index
    %51 = vector.load %arg16[%c0_40, %c15, %c0_41] : memref<8x48x16xbf16, #tpu.memory_space<vmem>>, vector<8x16x16xbf16>
    %52 = vector.shape_cast %51 : vector<8x16x16xbf16> to vector<128x16xbf16>
    %c4 = arith.constant 4 : index
    %c0_42 = arith.constant 0 : index
    %c0_43 = arith.constant 0 : index
    %53 = vector.load %arg4[%c4, %c0_42, %c0_43] : memref<11x16x32xbf16, #tpu.memory_space<vmem>>, vector<1x16x32xbf16>
    %54 = vector.shape_cast %53 : vector<1x16x32xbf16> to vector<16x32xbf16>
    %cst_44 = arith.constant dense<0.000000e+00> : vector<128x32xf32>
    %55 = tpu.matmul %52, %54, %cst_44 {dimension_numbers = #tpu.dot_dimension_numbers<[1], [0], [0], [1], [0, 0, 1, 1], [], []>} : vector<128x16xbf16>, vector<16x32xbf16>, vector<128x32xf32> -> vector<128x32xf32>
    %56 = arith.addf %50, %55 : vector<128x32xf32>
    %c0_45 = arith.constant 0 : index
    %c16_46 = arith.constant 16 : index
    %c0_47 = arith.constant 0 : index
    %57 = vector.load %arg16[%c0_45, %c16_46, %c0_47] : memref<8x48x16xbf16, #tpu.memory_space<vmem>>, vector<8x16x16xbf16>
    %58 = vector.shape_cast %57 : vector<8x16x16xbf16> to vector<128x16xbf16>
    %c5 = arith.constant 5 : index
    %c0_48 = arith.constant 0 : index
    %c0_49 = arith.constant 0 : index
    %59 = vector.load %arg4[%c5, %c0_48, %c0_49] : memref<11x16x32xbf16, #tpu.memory_space<vmem>>, vector<1x16x32xbf16>
    %60 = vector.shape_cast %59 : vector<1x16x32xbf16> to vector<16x32xbf16>
    %cst_50 = arith.constant dense<0.000000e+00> : vector<128x32xf32>
    %61 = tpu.matmul %58, %60, %cst_50 {dimension_numbers = #tpu.dot_dimension_numbers<[1], [0], [0], [1], [0, 0, 1, 1], [], []>} : vector<128x16xbf16>, vector<16x32xbf16>, vector<128x32xf32> -> vector<128x32xf32>
    %62 = arith.addf %56, %61 : vector<128x32xf32>
    %c0_51 = arith.constant 0 : index
    %c17 = arith.constant 17 : index
    %c0_52 = arith.constant 0 : index
    %63 = vector.load %arg16[%c0_51, %c17, %c0_52] : memref<8x48x16xbf16, #tpu.memory_space<vmem>>, vector<8x16x16xbf16>
    %64 = vector.shape_cast %63 : vector<8x16x16xbf16> to vector<128x16xbf16>
    %c6 = arith.constant 6 : index
    %c0_53 = arith.constant 0 : index
    %c0_54 = arith.constant 0 : index
    %65 = vector.load %arg4[%c6, %c0_53, %c0_54] : memref<11x16x32xbf16, #tpu.memory_space<vmem>>, vector<1x16x32xbf16>
    %66 = vector.shape_cast %65 : vector<1x16x32xbf16> to vector<16x32xbf16>
    %cst_55 = arith.constant dense<0.000000e+00> : vector<128x32xf32>
    %67 = tpu.matmul %64, %66, %cst_55 {dimension_numbers = #tpu.dot_dimension_numbers<[1], [0], [0], [1], [0, 0, 1, 1], [], []>} : vector<128x16xbf16>, vector<16x32xbf16>, vector<128x32xf32> -> vector<128x32xf32>
    %68 = arith.addf %62, %67 : vector<128x32xf32>
    %c0_56 = arith.constant 0 : index
    %c18 = arith.constant 18 : index
    %c0_57 = arith.constant 0 : index
    %69 = vector.load %arg16[%c0_56, %c18, %c0_57] : memref<8x48x16xbf16, #tpu.memory_space<vmem>>, vector<8x16x16xbf16>
    %70 = vector.shape_cast %69 : vector<8x16x16xbf16> to vector<128x16xbf16>
    %c7 = arith.constant 7 : index
    %c0_58 = arith.constant 0 : index
    %c0_59 = arith.constant 0 : index
    %71 = vector.load %arg4[%c7, %c0_58, %c0_59] : memref<11x16x32xbf16, #tpu.memory_space<vmem>>, vector<1x16x32xbf16>
    %72 = vector.shape_cast %71 : vector<1x16x32xbf16> to vector<16x32xbf16>
    %cst_60 = arith.constant dense<0.000000e+00> : vector<128x32xf32>
    %73 = tpu.matmul %70, %72, %cst_60 {dimension_numbers = #tpu.dot_dimension_numbers<[1], [0], [0], [1], [0, 0, 1, 1], [], []>} : vector<128x16xbf16>, vector<16x32xbf16>, vector<128x32xf32> -> vector<128x32xf32>
    %74 = arith.addf %68, %73 : vector<128x32xf32>
    %c0_61 = arith.constant 0 : index
    %c19 = arith.constant 19 : index
    %c0_62 = arith.constant 0 : index
    %75 = vector.load %arg16[%c0_61, %c19, %c0_62] : memref<8x48x16xbf16, #tpu.memory_space<vmem>>, vector<8x16x16xbf16>
    %76 = vector.shape_cast %75 : vector<8x16x16xbf16> to vector<128x16xbf16>
    %c8 = arith.constant 8 : index
    %c0_63 = arith.constant 0 : index
    %c0_64 = arith.constant 0 : index
    %77 = vector.load %arg4[%c8, %c0_63, %c0_64] : memref<11x16x32xbf16, #tpu.memory_space<vmem>>, vector<1x16x32xbf16>
    %78 = vector.shape_cast %77 : vector<1x16x32xbf16> to vector<16x32xbf16>
    %cst_65 = arith.constant dense<0.000000e+00> : vector<128x32xf32>
    %79 = tpu.matmul %76, %78, %cst_65 {dimension_numbers = #tpu.dot_dimension_numbers<[1], [0], [0], [1], [0, 0, 1, 1], [], []>} : vector<128x16xbf16>, vector<16x32xbf16>, vector<128x32xf32> -> vector<128x32xf32>
    %80 = arith.addf %74, %79 : vector<128x32xf32>
    %c0_66 = arith.constant 0 : index
    %c20 = arith.constant 20 : index
    %c0_67 = arith.constant 0 : index
    %81 = vector.load %arg16[%c0_66, %c20, %c0_67] : memref<8x48x16xbf16, #tpu.memory_space<vmem>>, vector<8x16x16xbf16>
    %82 = vector.shape_cast %81 : vector<8x16x16xbf16> to vector<128x16xbf16>
    %c9 = arith.constant 9 : index
    %c0_68 = arith.constant 0 : index
    %c0_69 = arith.constant 0 : index
    %83 = vector.load %arg4[%c9, %c0_68, %c0_69] : memref<11x16x32xbf16, #tpu.memory_space<vmem>>, vector<1x16x32xbf16>
    %84 = vector.shape_cast %83 : vector<1x16x32xbf16> to vector<16x32xbf16>
    %cst_70 = arith.constant dense<0.000000e+00> : vector<128x32xf32>
    %85 = tpu.matmul %82, %84, %cst_70 {dimension_numbers = #tpu.dot_dimension_numbers<[1], [0], [0], [1], [0, 0, 1, 1], [], []>} : vector<128x16xbf16>, vector<16x32xbf16>, vector<128x32xf32> -> vector<128x32xf32>
    %86 = arith.addf %80, %85 : vector<128x32xf32>
    %c0_71 = arith.constant 0 : index
    %c21 = arith.constant 21 : index
    %c0_72 = arith.constant 0 : index
    %87 = vector.load %arg16[%c0_71, %c21, %c0_72] : memref<8x48x16xbf16, #tpu.memory_space<vmem>>, vector<8x16x16xbf16>
    %88 = vector.shape_cast %87 : vector<8x16x16xbf16> to vector<128x16xbf16>
    %c10 = arith.constant 10 : index
    %c0_73 = arith.constant 0 : index
    %c0_74 = arith.constant 0 : index
    %89 = vector.load %arg4[%c10, %c0_73, %c0_74] : memref<11x16x32xbf16, #tpu.memory_space<vmem>>, vector<1x16x32xbf16>
    %90 = vector.shape_cast %89 : vector<1x16x32xbf16> to vector<16x32xbf16>
    %cst_75 = arith.constant dense<0.000000e+00> : vector<128x32xf32>
    %91 = tpu.matmul %88, %90, %cst_75 {dimension_numbers = #tpu.dot_dimension_numbers<[1], [0], [0], [1], [0, 0, 1, 1], [], []>} : vector<128x16xbf16>, vector<16x32xbf16>, vector<128x32xf32> -> vector<128x32xf32>
    %92 = arith.addf %86, %91 : vector<128x32xf32>
    %c0_76 = arith.constant 0 : index
    %c0_77 = arith.constant 0 : index
    %93 = vector.load %arg5[%c0_76, %c0_77] : memref<1x32xf32, #tpu.memory_space<vmem>>, vector<1x32xf32>
    %94 = vector.broadcast %93 : vector<1x32xf32> to vector<128x32xf32>
    %95 = arith.addf %92, %94 : vector<128x32xf32>
    %cst_78 = arith.constant 5.000000e-01 : f32
    %96 = vector.broadcast %cst_78 : f32 to vector<128x32xf32>
    %97 = arith.mulf %96, %95 : vector<128x32xf32>
    %cst_79 = arith.constant 4.471500e-02 : f32
    %98 = vector.broadcast %cst_79 : f32 to vector<128x32xf32>
    %99 = arith.mulf %98, %95 : vector<128x32xf32>
    %100 = arith.mulf %99, %95 : vector<128x32xf32>
    %101 = arith.mulf %100, %95 : vector<128x32xf32>
    %102 = arith.addf %95, %101 : vector<128x32xf32>
    %cst_80 = arith.constant 0.797884583 : f32
    %103 = vector.broadcast %cst_80 : f32 to vector<128x32xf32>
    %104 = arith.mulf %103, %102 : vector<128x32xf32>
    %105 = math.tanh %104 : vector<128x32xf32>
    %cst_81 = arith.constant 1.000000e+00 : f32
    %106 = vector.broadcast %cst_81 : f32 to vector<128x32xf32>
    %107 = arith.addf %106, %105 : vector<128x32xf32>
    %108 = arith.mulf %97, %107 : vector<128x32xf32>
    %cst_82 = arith.constant 0.000000e+00 : f32
    %109 = vector.broadcast %cst_82 : f32 to vector<8x8x32xf32>
    %c0_83 = arith.constant 0 : index
    %c0_84 = arith.constant 0 : index
    %c0_85 = arith.constant 0 : index
    %110 = vector.load %arg17[%c0_83, %c0_84, %c0_85] : memref<8x32x32xf32, #tpu.memory_space<vmem>>, vector<8x8x32xf32>
    tpu.vector_store %arg17[%c0_83, %c0_84, %c0_85], %109 {strides = array<i32>} : memref<8x32x32xf32, #tpu.memory_space<vmem>>, vector<8x8x32xf32>,
    %c0_86 = arith.constant 0 : index
    %c24 = arith.constant 24 : index
    %c0_87 = arith.constant 0 : index
    %111 = vector.load %arg17[%c0_86, %c24, %c0_87] : memref<8x32x32xf32, #tpu.memory_space<vmem>>, vector<8x8x32xf32>
    tpu.vector_store %arg17[%c0_86, %c24, %c0_87], %109 {strides = array<i32>} : memref<8x32x32xf32, #tpu.memory_space<vmem>>, vector<8x8x32xf32>,
    %112 = vector.shape_cast %108 : vector<128x32xf32> to vector<8x16x32xf32>
    %c0_88 = arith.constant 0 : index
    %c8_89 = arith.constant 8 : index
    %c0_90 = arith.constant 0 : index
    %113 = vector.load %arg17[%c0_88, %c8_89, %c0_90] : memref<8x32x32xf32, #tpu.memory_space<vmem>>, vector<8x16x32xf32>
    tpu.vector_store %arg17[%c0_88, %c8_89, %c0_90], %112 {strides = array<i32>} : memref<8x32x32xf32, #tpu.memory_space<vmem>>, vector<8x16x32xf32>,
    %cst_91 = arith.constant 0.000000e+00 : f32
    %114 = vector.broadcast %cst_91 : f32 to vector<8x8x32xf32>
    %cst_92 = arith.constant 0.000000e+00 : f32
    %115 = vector.broadcast %cst_92 : f32 to vector<8x8x32xf32>
    %c0_93 = arith.constant 0 : index
    %c0_94 = arith.constant 0 : index
    %116 = vector.load %arg6[%c0_93, %c0_94] : memref<15x32xf32, #tpu.memory_space<vmem>>, vector<1x32xf32>
    %c0_95 = arith.constant 0 : index
    %c1_96 = arith.constant 1 : index
    %c0_97 = arith.constant 0 : index
    %117 = tpu.strided_load %arg17[%c0_95, %c1_96, %c0_97] {strides = array<i32: 1, 2, 1>} : memref<8x32x32xf32, #tpu.memory_space<vmem>>, vector<8x8x32xf32>
    %118 = vector.shape_cast %116 : vector<1x32xf32> to vector<1x1x32xf32>
    %119 = vector.broadcast %118 : vector<1x1x32xf32> to vector<8x8x32xf32>
    %120 = arith.mulf %117, %119 : vector<8x8x32xf32>
    %121 = arith.addf %114, %120 : vector<8x8x32xf32>
    %c0_98 = arith.constant 0 : index
    %c2_99 = arith.constant 2 : index
    %c0_100 = arith.constant 0 : index
    %122 = tpu.strided_load %arg17[%c0_98, %c2_99, %c0_100] {strides = array<i32: 1, 2, 1>} : memref<8x32x32xf32, #tpu.memory_space<vmem>>, vector<8x8x32xf32>
    %123 = vector.shape_cast %116 : vector<1x32xf32> to vector<1x1x32xf32>
    %124 = vector.broadcast %123 : vector<1x1x32xf32> to vector<8x8x32xf32>
    %125 = arith.mulf %122, %124 : vector<8x8x32xf32>
    %126 = arith.addf %115, %125 : vector<8x8x32xf32>
    %c1_101 = arith.constant 1 : index
    %c0_102 = arith.constant 0 : index
    %127 = vector.load %arg6[%c1_101, %c0_102] : memref<15x32xf32, #tpu.memory_space<vmem>>, vector<1x32xf32>
    %c0_103 = arith.constant 0 : index
    %c2_104 = arith.constant 2 : index
    %c0_105 = arith.constant 0 : index
    %128 = tpu.strided_load %arg17[%c0_103, %c2_104, %c0_105] {strides = array<i32: 1, 2, 1>} : memref<8x32x32xf32, #tpu.memory_space<vmem>>, vector<8x8x32xf32>
    %129 = vector.shape_cast %127 : vector<1x32xf32> to vector<1x1x32xf32>
    %130 = vector.broadcast %129 : vector<1x1x32xf32> to vector<8x8x32xf32>
    %131 = arith.mulf %128, %130 : vector<8x8x32xf32>
    %132 = arith.addf %121, %131 : vector<8x8x32xf32>
    %c0_106 = arith.constant 0 : index
    %c3_107 = arith.constant 3 : index
    %c0_108 = arith.constant 0 : index
    %133 = tpu.strided_load %arg17[%c0_106, %c3_107, %c0_108] {strides = array<i32: 1, 2, 1>} : memref<8x32x32xf32, #tpu.memory_space<vmem>>, vector<8x8x32xf32>
    %134 = vector.shape_cast %127 : vector<1x32xf32> to vector<1x1x32xf32>
    %135 = vector.broadcast %134 : vector<1x1x32xf32> to vector<8x8x32xf32>
    %136 = arith.mulf %133, %135 : vector<8x8x32xf32>
    %137 = arith.addf %126, %136 : vector<8x8x32xf32>
    %c2_109 = arith.constant 2 : index
    %c0_110 = arith.constant 0 : index
    %138 = vector.load %arg6[%c2_109, %c0_110] : memref<15x32xf32, #tpu.memory_space<vmem>>, vector<1x32xf32>
    %c0_111 = arith.constant 0 : index
    %c3_112 = arith.constant 3 : index
    %c0_113 = arith.constant 0 : index
    %139 = tpu.strided_load %arg17[%c0_111, %c3_112, %c0_113] {strides = array<i32: 1, 2, 1>} : memref<8x32x32xf32, #tpu.memory_space<vmem>>, vector<8x8x32xf32>
    %140 = vector.shape_cast %138 : vector<1x32xf32> to vector<1x1x32xf32>
    %141 = vector.broadcast %140 : vector<1x1x32xf32> to vector<8x8x32xf32>
    %142 = arith.mulf %139, %141 : vector<8x8x32xf32>
    %143 = arith.addf %132, %142 : vector<8x8x32xf32>
    %c0_114 = arith.constant 0 : index
    %c4_115 = arith.constant 4 : index
    %c0_116 = arith.constant 0 : index
    %144 = tpu.strided_load %arg17[%c0_114, %c4_115, %c0_116] {strides = array<i32: 1, 2, 1>} : memref<8x32x32xf32, #tpu.memory_space<vmem>>, vector<8x8x32xf32>
    %145 = vector.shape_cast %138 : vector<1x32xf32> to vector<1x1x32xf32>
    %146 = vector.broadcast %145 : vector<1x1x32xf32> to vector<8x8x32xf32>
    %147 = arith.mulf %144, %146 : vector<8x8x32xf32>
    %148 = arith.addf %137, %147 : vector<8x8x32xf32>
    %c3_117 = arith.constant 3 : index
    %c0_118 = arith.constant 0 : index
    %149 = vector.load %arg6[%c3_117, %c0_118] : memref<15x32xf32, #tpu.memory_space<vmem>>, vector<1x32xf32>
    %c0_119 = arith.constant 0 : index
    %c4_120 = arith.constant 4 : index
    %c0_121 = arith.constant 0 : index
    %150 = tpu.strided_load %arg17[%c0_119, %c4_120, %c0_121] {strides = array<i32: 1, 2, 1>} : memref<8x32x32xf32, #tpu.memory_space<vmem>>, vector<8x8x32xf32>
    %151 = vector.shape_cast %149 : vector<1x32xf32> to vector<1x1x32xf32>
    %152 = vector.broadcast %151 : vector<1x1x32xf32> to vector<8x8x32xf32>
    %153 = arith.mulf %150, %152 : vector<8x8x32xf32>
    %154 = arith.addf %143, %153 : vector<8x8x32xf32>
    %c0_122 = arith.constant 0 : index
    %c5_123 = arith.constant 5 : index
    %c0_124 = arith.constant 0 : index
    %155 = tpu.strided_load %arg17[%c0_122, %c5_123, %c0_124] {strides = array<i32: 1, 2, 1>} : memref<8x32x32xf32, #tpu.memory_space<vmem>>, vector<8x8x32xf32>
    %156 = vector.shape_cast %149 : vector<1x32xf32> to vector<1x1x32xf32>
    %157 = vector.broadcast %156 : vector<1x1x32xf32> to vector<8x8x32xf32>
    %158 = arith.mulf %155, %157 : vector<8x8x32xf32>
    %159 = arith.addf %148, %158 : vector<8x8x32xf32>
    %c4_125 = arith.constant 4 : index
    %c0_126 = arith.constant 0 : index
    %160 = vector.load %arg6[%c4_125, %c0_126] : memref<15x32xf32, #tpu.memory_space<vmem>>, vector<1x32xf32>
    %c0_127 = arith.constant 0 : index
    %c5_128 = arith.constant 5 : index
    %c0_129 = arith.constant 0 : index
    %161 = tpu.strided_load %arg17[%c0_127, %c5_128, %c0_129] {strides = array<i32: 1, 2, 1>} : memref<8x32x32xf32, #tpu.memory_space<vmem>>, vector<8x8x32xf32>
    %162 = vector.shape_cast %160 : vector<1x32xf32> to vector<1x1x32xf32>
    %163 = vector.broadcast %162 : vector<1x1x32xf32> to vector<8x8x32xf32>
    %164 = arith.mulf %161, %163 : vector<8x8x32xf32>
    %165 = arith.addf %154, %164 : vector<8x8x32xf32>
    %c0_130 = arith.constant 0 : index
    %c6_131 = arith.constant 6 : index
    %c0_132 = arith.constant 0 : index
    %166 = tpu.strided_load %arg17[%c0_130, %c6_131, %c0_132] {strides = array<i32: 1, 2, 1>} : memref<8x32x32xf32, #tpu.memory_space<vmem>>, vector<8x8x32xf32>
    %167 = vector.shape_cast %160 : vector<1x32xf32> to vector<1x1x32xf32>
    %168 = vector.broadcast %167 : vector<1x1x32xf32> to vector<8x8x32xf32>
    %169 = arith.mulf %166, %168 : vector<8x8x32xf32>
    %170 = arith.addf %159, %169 : vector<8x8x32xf32>
    %c5_133 = arith.constant 5 : index
    %c0_134 = arith.constant 0 : index
    %171 = vector.load %arg6[%c5_133, %c0_134] : memref<15x32xf32, #tpu.memory_space<vmem>>, vector<1x32xf32>
    %c0_135 = arith.constant 0 : index
    %c6_136 = arith.constant 6 : index
    %c0_137 = arith.constant 0 : index
    %172 = tpu.strided_load %arg17[%c0_135, %c6_136, %c0_137] {strides = array<i32: 1, 2, 1>} : memref<8x32x32xf32, #tpu.memory_space<vmem>>, vector<8x8x32xf32>
    %173 = vector.shape_cast %171 : vector<1x32xf32> to vector<1x1x32xf32>
    %174 = vector.broadcast %173 : vector<1x1x32xf32> to vector<8x8x32xf32>
    %175 = arith.mulf %172, %174 : vector<8x8x32xf32>
    %176 = arith.addf %165, %175 : vector<8x8x32xf32>
    %c0_138 = arith.constant 0 : index
    %c7_139 = arith.constant 7 : index
    %c0_140 = arith.constant 0 : index
    %177 = tpu.strided_load %arg17[%c0_138, %c7_139, %c0_140] {strides = array<i32: 1, 2, 1>} : memref<8x32x32xf32, #tpu.memory_space<vmem>>, vector<8x8x32xf32>
    %178 = vector.shape_cast %171 : vector<1x32xf32> to vector<1x1x32xf32>
    %179 = vector.broadcast %178 : vector<1x1x32xf32> to vector<8x8x32xf32>
    %180 = arith.mulf %177, %179 : vector<8x8x32xf32>
    %181 = arith.addf %170, %180 : vector<8x8x32xf32>
    %c6_141 = arith.constant 6 : index
    %c0_142 = arith.constant 0 : index
    %182 = vector.load %arg6[%c6_141, %c0_142] : memref<15x32xf32, #tpu.memory_space<vmem>>, vector<1x32xf32>
    %c0_143 = arith.constant 0 : index
    %c7_144 = arith.constant 7 : index
    %c0_145 = arith.constant 0 : index
    %183 = tpu.strided_load %arg17[%c0_143, %c7_144, %c0_145] {strides = array<i32: 1, 2, 1>} : memref<8x32x32xf32, #tpu.memory_space<vmem>>, vector<8x8x32xf32>
    %184 = vector.shape_cast %182 : vector<1x32xf32> to vector<1x1x32xf32>
    %185 = vector.broadcast %184 : vector<1x1x32xf32> to vector<8x8x32xf32>
    %186 = arith.mulf %183, %185 : vector<8x8x32xf32>
    %187 = arith.addf %176, %186 : vector<8x8x32xf32>
    %c0_146 = arith.constant 0 : index
    %c8_147 = arith.constant 8 : index
    %c0_148 = arith.constant 0 : index
    %188 = tpu.strided_load %arg17[%c0_146, %c8_147, %c0_148] {strides = array<i32: 1, 2, 1>} : memref<8x32x32xf32, #tpu.memory_space<vmem>>, vector<8x8x32xf32>
    %189 = vector.shape_cast %182 : vector<1x32xf32> to vector<1x1x32xf32>
    %190 = vector.broadcast %189 : vector<1x1x32xf32> to vector<8x8x32xf32>
    %191 = arith.mulf %188, %190 : vector<8x8x32xf32>
    %192 = arith.addf %181, %191 : vector<8x8x32xf32>
    %c7_149 = arith.constant 7 : index
    %c0_150 = arith.constant 0 : index
    %193 = vector.load %arg6[%c7_149, %c0_150] : memref<15x32xf32, #tpu.memory_space<vmem>>, vector<1x32xf32>
    %c0_151 = arith.constant 0 : index
    %c8_152 = arith.constant 8 : index
    %c0_153 = arith.constant 0 : index
    %194 = tpu.strided_load %arg17[%c0_151, %c8_152, %c0_153] {strides = array<i32: 1, 2, 1>} : memref<8x32x32xf32, #tpu.memory_space<vmem>>, vector<8x8x32xf32>
    %195 = vector.shape_cast %193 : vector<1x32xf32> to vector<1x1x32xf32>
    %196 = vector.broadcast %195 : vector<1x1x32xf32> to vector<8x8x32xf32>
    %197 = arith.mulf %194, %196 : vector<8x8x32xf32>
    %198 = arith.addf %187, %197 : vector<8x8x32xf32>
    %c0_154 = arith.constant 0 : index
    %c9_155 = arith.constant 9 : index
    %c0_156 = arith.constant 0 : index
    %199 = tpu.strided_load %arg17[%c0_154, %c9_155, %c0_156] {strides = array<i32: 1, 2, 1>} : memref<8x32x32xf32, #tpu.memory_space<vmem>>, vector<8x8x32xf32>
    %200 = vector.shape_cast %193 : vector<1x32xf32> to vector<1x1x32xf32>
    %201 = vector.broadcast %200 : vector<1x1x32xf32> to vector<8x8x32xf32>
    %202 = arith.mulf %199, %201 : vector<8x8x32xf32>
    %203 = arith.addf %192, %202 : vector<8x8x32xf32>
    %c8_157 = arith.constant 8 : index
    %c0_158 = arith.constant 0 : index
    %204 = vector.load %arg6[%c8_157, %c0_158] : memref<15x32xf32, #tpu.memory_space<vmem>>, vector<1x32xf32>
    %c0_159 = arith.constant 0 : index
    %c9_160 = arith.constant 9 : index
    %c0_161 = arith.constant 0 : index
    %205 = tpu.strided_load %arg17[%c0_159, %c9_160, %c0_161] {strides = array<i32: 1, 2, 1>} : memref<8x32x32xf32, #tpu.memory_space<vmem>>, vector<8x8x32xf32>
    %206 = vector.shape_cast %204 : vector<1x32xf32> to vector<1x1x32xf32>
    %207 = vector.broadcast %206 : vector<1x1x32xf32> to vector<8x8x32xf32>
    %208 = arith.mulf %205, %207 : vector<8x8x32xf32>
    %209 = arith.addf %198, %208 : vector<8x8x32xf32>
    %c0_162 = arith.constant 0 : index
    %c10_163 = arith.constant 10 : index
    %c0_164 = arith.constant 0 : index
    %210 = tpu.strided_load %arg17[%c0_162, %c10_163, %c0_164] {strides = array<i32: 1, 2, 1>} : memref<8x32x32xf32, #tpu.memory_space<vmem>>, vector<8x8x32xf32>
    %211 = vector.shape_cast %204 : vector<1x32xf32> to vector<1x1x32xf32>
    %212 = vector.broadcast %211 : vector<1x1x32xf32> to vector<8x8x32xf32>
    %213 = arith.mulf %210, %212 : vector<8x8x32xf32>
    %214 = arith.addf %203, %213 : vector<8x8x32xf32>
    %c9_165 = arith.constant 9 : index
    %c0_166 = arith.constant 0 : index
    %215 = vector.load %arg6[%c9_165, %c0_166] : memref<15x32xf32, #tpu.memory_space<vmem>>, vector<1x32xf32>
    %c0_167 = arith.constant 0 : index
    %c10_168 = arith.constant 10 : index
    %c0_169 = arith.constant 0 : index
    %216 = tpu.strided_load %arg17[%c0_167, %c10_168, %c0_169] {strides = array<i32: 1, 2, 1>} : memref<8x32x32xf32, #tpu.memory_space<vmem>>, vector<8x8x32xf32>
    %217 = vector.shape_cast %215 : vector<1x32xf32> to vector<1x1x32xf32>
    %218 = vector.broadcast %217 : vector<1x1x32xf32> to vector<8x8x32xf32>
    %219 = arith.mulf %216, %218 : vector<8x8x32xf32>
    %220 = arith.addf %209, %219 : vector<8x8x32xf32>
    %c0_170 = arith.constant 0 : index
    %c11_171 = arith.constant 11 : index
    %c0_172 = arith.constant 0 : index
    %221 = tpu.strided_load %arg17[%c0_170, %c11_171, %c0_172] {strides = array<i32: 1, 2, 1>} : memref<8x32x32xf32, #tpu.memory_space<vmem>>, vector<8x8x32xf32>
    %222 = vector.shape_cast %215 : vector<1x32xf32> to vector<1x1x32xf32>
    %223 = vector.broadcast %222 : vector<1x1x32xf32> to vector<8x8x32xf32>
    %224 = arith.mulf %221, %223 : vector<8x8x32xf32>
    %225 = arith.addf %214, %224 : vector<8x8x32xf32>
    %c10_173 = arith.constant 10 : index
    %c0_174 = arith.constant 0 : index
    %226 = vector.load %arg6[%c10_173, %c0_174] : memref<15x32xf32, #tpu.memory_space<vmem>>, vector<1x32xf32>
    %c0_175 = arith.constant 0 : index
    %c11_176 = arith.constant 11 : index
    %c0_177 = arith.constant 0 : index
    %227 = tpu.strided_load %arg17[%c0_175, %c11_176, %c0_177] {strides = array<i32: 1, 2, 1>} : memref<8x32x32xf32, #tpu.memory_space<vmem>>, vector<8x8x32xf32>
    %228 = vector.shape_cast %226 : vector<1x32xf32> to vector<1x1x32xf32>
    %229 = vector.broadcast %228 : vector<1x1x32xf32> to vector<8x8x32xf32>
    %230 = arith.mulf %227, %229 : vector<8x8x32xf32>
    %231 = arith.addf %220, %230 : vector<8x8x32xf32>
    %c0_178 = arith.constant 0 : index
    %c12_179 = arith.constant 12 : index
    %c0_180 = arith.constant 0 : index
    %232 = tpu.strided_load %arg17[%c0_178, %c12_179, %c0_180] {strides = array<i32: 1, 2, 1>} : memref<8x32x32xf32, #tpu.memory_space<vmem>>, vector<8x8x32xf32>
    %233 = vector.shape_cast %226 : vector<1x32xf32> to vector<1x1x32xf32>
    %234 = vector.broadcast %233 : vector<1x1x32xf32> to vector<8x8x32xf32>
    %235 = arith.mulf %232, %234 : vector<8x8x32xf32>
    %236 = arith.addf %225, %235 : vector<8x8x32xf32>
    %c11_181 = arith.constant 11 : index
    %c0_182 = arith.constant 0 : index
    %237 = vector.load %arg6[%c11_181, %c0_182] : memref<15x32xf32, #tpu.memory_space<vmem>>, vector<1x32xf32>
    %c0_183 = arith.constant 0 : index
    %c12_184 = arith.constant 12 : index
    %c0_185 = arith.constant 0 : index
    %238 = tpu.strided_load %arg17[%c0_183, %c12_184, %c0_185] {strides = array<i32: 1, 2, 1>} : memref<8x32x32xf32, #tpu.memory_space<vmem>>, vector<8x8x32xf32>
    %239 = vector.shape_cast %237 : vector<1x32xf32> to vector<1x1x32xf32>
    %240 = vector.broadcast %239 : vector<1x1x32xf32> to vector<8x8x32xf32>
    %241 = arith.mulf %238, %240 : vector<8x8x32xf32>
    %242 = arith.addf %231, %241 : vector<8x8x32xf32>
    %c0_186 = arith.constant 0 : index
    %c13_187 = arith.constant 13 : index
    %c0_188 = arith.constant 0 : index
    %243 = tpu.strided_load %arg17[%c0_186, %c13_187, %c0_188] {strides = array<i32: 1, 2, 1>} : memref<8x32x32xf32, #tpu.memory_space<vmem>>, vector<8x8x32xf32>
    %244 = vector.shape_cast %237 : vector<1x32xf32> to vector<1x1x32xf32>
    %245 = vector.broadcast %244 : vector<1x1x32xf32> to vector<8x8x32xf32>
    %246 = arith.mulf %243, %245 : vector<8x8x32xf32>
    %247 = arith.addf %236, %246 : vector<8x8x32xf32>
    %c12_189 = arith.constant 12 : index
    %c0_190 = arith.constant 0 : index
    %248 = vector.load %arg6[%c12_189, %c0_190] : memref<15x32xf32, #tpu.memory_space<vmem>>, vector<1x32xf32>
    %c0_191 = arith.constant 0 : index
    %c13_192 = arith.constant 13 : index
    %c0_193 = arith.constant 0 : index
    %249 = tpu.strided_load %arg17[%c0_191, %c13_192, %c0_193] {strides = array<i32: 1, 2, 1>} : memref<8x32x32xf32, #tpu.memory_space<vmem>>, vector<8x8x32xf32>
    %250 = vector.shape_cast %248 : vector<1x32xf32> to vector<1x1x32xf32>
    %251 = vector.broadcast %250 : vector<1x1x32xf32> to vector<8x8x32xf32>
    %252 = arith.mulf %249, %251 : vector<8x8x32xf32>
    %253 = arith.addf %242, %252 : vector<8x8x32xf32>
    %c0_194 = arith.constant 0 : index
    %c14_195 = arith.constant 14 : index
    %c0_196 = arith.constant 0 : index
    %254 = tpu.strided_load %arg17[%c0_194, %c14_195, %c0_196] {strides = array<i32: 1, 2, 1>} : memref<8x32x32xf32, #tpu.memory_space<vmem>>, vector<8x8x32xf32>
    %255 = vector.shape_cast %248 : vector<1x32xf32> to vector<1x1x32xf32>
    %256 = vector.broadcast %255 : vector<1x1x32xf32> to vector<8x8x32xf32>
    %257 = arith.mulf %254, %256 : vector<8x8x32xf32>
    %258 = arith.addf %247, %257 : vector<8x8x32xf32>
    %c13_197 = arith.constant 13 : index
    %c0_198 = arith.constant 0 : index
    %259 = vector.load %arg6[%c13_197, %c0_198] : memref<15x32xf32, #tpu.memory_space<vmem>>, vector<1x32xf32>
    %c0_199 = arith.constant 0 : index
    %c14_200 = arith.constant 14 : index
    %c0_201 = arith.constant 0 : index
    %260 = tpu.strided_load %arg17[%c0_199, %c14_200, %c0_201] {strides = array<i32: 1, 2, 1>} : memref<8x32x32xf32, #tpu.memory_space<vmem>>, vector<8x8x32xf32>
    %261 = vector.shape_cast %259 : vector<1x32xf32> to vector<1x1x32xf32>
    %262 = vector.broadcast %261 : vector<1x1x32xf32> to vector<8x8x32xf32>
    %263 = arith.mulf %260, %262 : vector<8x8x32xf32>
    %264 = arith.addf %253, %263 : vector<8x8x32xf32>
    %c0_202 = arith.constant 0 : index
    %c15_203 = arith.constant 15 : index
    %c0_204 = arith.constant 0 : index
    %265 = tpu.strided_load %arg17[%c0_202, %c15_203, %c0_204] {strides = array<i32: 1, 2, 1>} : memref<8x32x32xf32, #tpu.memory_space<vmem>>, vector<8x8x32xf32>
    %266 = vector.shape_cast %259 : vector<1x32xf32> to vector<1x1x32xf32>
    %267 = vector.broadcast %266 : vector<1x1x32xf32> to vector<8x8x32xf32>
    %268 = arith.mulf %265, %267 : vector<8x8x32xf32>
    %269 = arith.addf %258, %268 : vector<8x8x32xf32>
    %c14_205 = arith.constant 14 : index
    %c0_206 = arith.constant 0 : index
    %270 = vector.load %arg6[%c14_205, %c0_206] : memref<15x32xf32, #tpu.memory_space<vmem>>, vector<1x32xf32>
    %c0_207 = arith.constant 0 : index
    %c15_208 = arith.constant 15 : index
    %c0_209 = arith.constant 0 : index
    %271 = tpu.strided_load %arg17[%c0_207, %c15_208, %c0_209] {strides = array<i32: 1, 2, 1>} : memref<8x32x32xf32, #tpu.memory_space<vmem>>, vector<8x8x32xf32>
    %272 = vector.shape_cast %270 : vector<1x32xf32> to vector<1x1x32xf32>
    %273 = vector.broadcast %272 : vector<1x1x32xf32> to vector<8x8x32xf32>
    %274 = arith.mulf %271, %273 : vector<8x8x32xf32>
    %275 = arith.addf %264, %274 : vector<8x8x32xf32>
    %c0_210 = arith.constant 0 : index
    %c16_211 = arith.constant 16 : index
    %c0_212 = arith.constant 0 : index
    %276 = tpu.strided_load %arg17[%c0_210, %c16_211, %c0_212] {strides = array<i32: 1, 2, 1>} : memref<8x32x32xf32, #tpu.memory_space<vmem>>, vector<8x8x32xf32>
    %277 = vector.shape_cast %270 : vector<1x32xf32> to vector<1x1x32xf32>
    %278 = vector.broadcast %277 : vector<1x1x32xf32> to vector<8x8x32xf32>
    %279 = arith.mulf %276, %278 : vector<8x8x32xf32>
    %280 = arith.addf %269, %279 : vector<8x8x32xf32>
    %c0_213 = arith.constant 0 : index
    %c0_214 = arith.constant 0 : index
    %281 = vector.load %arg7[%c0_213, %c0_214] : memref<1x32xf32, #tpu.memory_space<vmem>>, vector<1x32xf32>
    %282 = vector.shape_cast %281 : vector<1x32xf32> to vector<1x1x32xf32>
    %283 = vector.broadcast %282 : vector<1x1x32xf32> to vector<8x8x32xf32>
    %284 = arith.addf %275, %283 : vector<8x8x32xf32>
    %cst_215 = arith.constant 5.000000e-01 : f32
    %285 = vector.broadcast %cst_215 : f32 to vector<8x8x32xf32>
    %286 = arith.mulf %285, %284 : vector<8x8x32xf32>
    %cst_216 = arith.constant 4.471500e-02 : f32
    %287 = vector.broadcast %cst_216 : f32 to vector<8x8x32xf32>
    %288 = arith.mulf %287, %284 : vector<8x8x32xf32>
    %289 = arith.mulf %288, %284 : vector<8x8x32xf32>
    %290 = arith.mulf %289, %284 : vector<8x8x32xf32>
    %291 = arith.addf %284, %290 : vector<8x8x32xf32>
    %cst_217 = arith.constant 0.797884583 : f32
    %292 = vector.broadcast %cst_217 : f32 to vector<8x8x32xf32>
    %293 = arith.mulf %292, %291 : vector<8x8x32xf32>
    %294 = math.tanh %293 : vector<8x8x32xf32>
    %cst_218 = arith.constant 1.000000e+00 : f32
    %295 = vector.broadcast %cst_218 : f32 to vector<8x8x32xf32>
    %296 = arith.addf %295, %294 : vector<8x8x32xf32>
    %297 = arith.mulf %286, %296 : vector<8x8x32xf32>
    %c0_219 = arith.constant 0 : index
    %c0_220 = arith.constant 0 : index
    %298 = vector.load %arg7[%c0_219, %c0_220] : memref<1x32xf32, #tpu.memory_space<vmem>>, vector<1x32xf32>
    %299 = vector.shape_cast %298 : vector<1x32xf32> to vector<1x1x32xf32>
    %300 = vector.broadcast %299 : vector<1x1x32xf32> to vector<8x8x32xf32>
    %301 = arith.addf %280, %300 : vector<8x8x32xf32>
    %cst_221 = arith.constant 5.000000e-01 : f32
    %302 = vector.broadcast %cst_221 : f32 to vector<8x8x32xf32>
    %303 = arith.mulf %302, %301 : vector<8x8x32xf32>
    %cst_222 = arith.constant 4.471500e-02 : f32
    %304 = vector.broadcast %cst_222 : f32 to vector<8x8x32xf32>
    %305 = arith.mulf %304, %301 : vector<8x8x32xf32>
    %306 = arith.mulf %305, %301 : vector<8x8x32xf32>
    %307 = arith.mulf %306, %301 : vector<8x8x32xf32>
    %308 = arith.addf %301, %307 : vector<8x8x32xf32>
    %cst_223 = arith.constant 0.797884583 : f32
    %309 = vector.broadcast %cst_223 : f32 to vector<8x8x32xf32>
    %310 = arith.mulf %309, %308 : vector<8x8x32xf32>
    %311 = math.tanh %310 : vector<8x8x32xf32>
    %cst_224 = arith.constant 1.000000e+00 : f32
    %312 = vector.broadcast %cst_224 : f32 to vector<8x8x32xf32>
    %313 = arith.addf %312, %311 : vector<8x8x32xf32>
    %314 = arith.mulf %303, %313 : vector<8x8x32xf32>
    %315 = arith.maximumf %297, %314 : vector<8x8x32xf32>
    %316 = vector.extract_strided_slice %315 {offsets = [0, 0, 0], sizes = [1, 8, 32], strides = [1, 1, 1]} : vector<8x8x32xf32> to vector<1x8x32xf32>
    %317 = vector.shape_cast %316 : vector<1x8x32xf32> to vector<8x32xf32>
    %318 = tpu.transpose %317, [1, 0] : vector<8x32xf32> -> vector<32x8xf32>
    %c0_225 = arith.constant 0 : index
    %c0_226 = arith.constant 0 : index
    %c0_227 = arith.constant 0 : index
    %319 = vector.load %arg14[%c0_225, %c0_226, %c0_227] : memref<8x32x8xf32, #tpu.memory_space<vmem>>, vector<1x32x8xf32>
    %320 = vector.shape_cast %319 : vector<1x32x8xf32> to vector<32x8xf32>
    %321 = vector.shape_cast %318 : vector<32x8xf32> to vector<1x32x8xf32>
    tpu.vector_store %arg14[%c0_225, %c0_226, %c0_227], %321 {strides = array<i32>} : memref<8x32x8xf32, #tpu.memory_space<vmem>>, vector<1x32x8xf32>,
    %322 = vector.extract_strided_slice %315 {offsets = [1, 0, 0], sizes = [1, 8, 32], strides = [1, 1, 1]} : vector<8x8x32xf32> to vector<1x8x32xf32>
    %323 = vector.shape_cast %322 : vector<1x8x32xf32> to vector<8x32xf32>
    %324 = tpu.transpose %323, [1, 0] : vector<8x32xf32> -> vector<32x8xf32>
    %c1_228 = arith.constant 1 : index
    %c0_229 = arith.constant 0 : index
    %c0_230 = arith.constant 0 : index
    %325 = vector.load %arg14[%c1_228, %c0_229, %c0_230] : memref<8x32x8xf32, #tpu.memory_space<vmem>>, vector<1x32x8xf32>
    %326 = vector.shape_cast %325 : vector<1x32x8xf32> to vector<32x8xf32>
    %327 = vector.shape_cast %324 : vector<32x8xf32> to vector<1x32x8xf32>
    tpu.vector_store %arg14[%c1_228, %c0_229, %c0_230], %327 {strides = array<i32>} : memref<8x32x8xf32, #tpu.memory_space<vmem>>, vector<1x32x8xf32>,
    %328 = vector.extract_strided_slice %315 {offsets = [2, 0, 0], sizes = [1, 8, 32], strides = [1, 1, 1]} : vector<8x8x32xf32> to vector<1x8x32xf32>
    %329 = vector.shape_cast %328 : vector<1x8x32xf32> to vector<8x32xf32>
    %330 = tpu.transpose %329, [1, 0] : vector<8x32xf32> -> vector<32x8xf32>
    %c2_231 = arith.constant 2 : index
    %c0_232 = arith.constant 0 : index
    %c0_233 = arith.constant 0 : index
    %331 = vector.load %arg14[%c2_231, %c0_232, %c0_233] : memref<8x32x8xf32, #tpu.memory_space<vmem>>, vector<1x32x8xf32>
    %332 = vector.shape_cast %331 : vector<1x32x8xf32> to vector<32x8xf32>
    %333 = vector.shape_cast %330 : vector<32x8xf32> to vector<1x32x8xf32>
    tpu.vector_store %arg14[%c2_231, %c0_232, %c0_233], %333 {strides = array<i32>} : memref<8x32x8xf32, #tpu.memory_space<vmem>>, vector<1x32x8xf32>,
    %334 = vector.extract_strided_slice %315 {offsets = [3, 0, 0], sizes = [1, 8, 32], strides = [1, 1, 1]} : vector<8x8x32xf32> to vector<1x8x32xf32>
    %335 = vector.shape_cast %334 : vector<1x8x32xf32> to vector<8x32xf32>
    %336 = tpu.transpose %335, [1, 0] : vector<8x32xf32> -> vector<32x8xf32>
    %c3_234 = arith.constant 3 : index
    %c0_235 = arith.constant 0 : index
    %c0_236 = arith.constant 0 : index
    %337 = vector.load %arg14[%c3_234, %c0_235, %c0_236] : memref<8x32x8xf32, #tpu.memory_space<vmem>>, vector<1x32x8xf32>
    %338 = vector.shape_cast %337 : vector<1x32x8xf32> to vector<32x8xf32>
    %339 = vector.shape_cast %336 : vector<32x8xf32> to vector<1x32x8xf32>
    tpu.vector_store %arg14[%c3_234, %c0_235, %c0_236], %339 {strides = array<i32>} : memref<8x32x8xf32, #tpu.memory_space<vmem>>, vector<1x32x8xf32>,
    %340 = vector.extract_strided_slice %315 {offsets = [4, 0, 0], sizes = [1, 8, 32], strides = [1, 1, 1]} : vector<8x8x32xf32> to vector<1x8x32xf32>
    %341 = vector.shape_cast %340 : vector<1x8x32xf32> to vector<8x32xf32>
    %342 = tpu.transpose %341, [1, 0] : vector<8x32xf32> -> vector<32x8xf32>
    %c4_237 = arith.constant 4 : index
    %c0_238 = arith.constant 0 : index
    %c0_239 = arith.constant 0 : index
    %343 = vector.load %arg14[%c4_237, %c0_238, %c0_239] : memref<8x32x8xf32, #tpu.memory_space<vmem>>, vector<1x32x8xf32>
    %344 = vector.shape_cast %343 : vector<1x32x8xf32> to vector<32x8xf32>
    %345 = vector.shape_cast %342 : vector<32x8xf32> to vector<1x32x8xf32>
    tpu.vector_store %arg14[%c4_237, %c0_238, %c0_239], %345 {strides = array<i32>} : memref<8x32x8xf32, #tpu.memory_space<vmem>>, vector<1x32x8xf32>,
    %346 = vector.extract_strided_slice %315 {offsets = [5, 0, 0], sizes = [1, 8, 32], strides = [1, 1, 1]} : vector<8x8x32xf32> to vector<1x8x32xf32>
    %347 = vector.shape_cast %346 : vector<1x8x32xf32> to vector<8x32xf32>
    %348 = tpu.transpose %347, [1, 0] : vector<8x32xf32> -> vector<32x8xf32>
    %c5_240 = arith.constant 5 : index
    %c0_241 = arith.constant 0 : index
    %c0_242 = arith.constant 0 : index
    %349 = vector.load %arg14[%c5_240, %c0_241, %c0_242] : memref<8x32x8xf32, #tpu.memory_space<vmem>>, vector<1x32x8xf32>
    %350 = vector.shape_cast %349 : vector<1x32x8xf32> to vector<32x8xf32>
    %351 = vector.shape_cast %348 : vector<32x8xf32> to vector<1x32x8xf32>
    tpu.vector_store %arg14[%c5_240, %c0_241, %c0_242], %351 {strides = array<i32>} : memref<8x32x8xf32, #tpu.memory_space<vmem>>, vector<1x32x8xf32>,
    %352 = vector.extract_strided_slice %315 {offsets = [6, 0, 0], sizes = [1, 8, 32], strides = [1, 1, 1]} : vector<8x8x32xf32> to vector<1x8x32xf32>
    %353 = vector.shape_cast %352 : vector<1x8x32xf32> to vector<8x32xf32>
    %354 = tpu.transpose %353, [1, 0] : vector<8x32xf32> -> vector<32x8xf32>
    %c6_243 = arith.constant 6 : index
    %c0_244 = arith.constant 0 : index
    %c0_245 = arith.constant 0 : index
    %355 = vector.load %arg14[%c6_243, %c0_244, %c0_245] : memref<8x32x8xf32, #tpu.memory_space<vmem>>, vector<1x32x8xf32>
    %356 = vector.shape_cast %355 : vector<1x32x8xf32> to vector<32x8xf32>
    %357 = vector.shape_cast %354 : vector<32x8xf32> to vector<1x32x8xf32>
    tpu.vector_store %arg14[%c6_243, %c0_244, %c0_245], %357 {strides = array<i32>} : memref<8x32x8xf32, #tpu.memory_space<vmem>>, vector<1x32x8xf32>,
    %358 = vector.extract_strided_slice %315 {offsets = [7, 0, 0], sizes = [1, 8, 32], strides = [1, 1, 1]} : vector<8x8x32xf32> to vector<1x8x32xf32>
    %359 = vector.shape_cast %358 : vector<1x8x32xf32> to vector<8x32xf32>
    %360 = tpu.transpose %359, [1, 0] : vector<8x32xf32> -> vector<32x8xf32>
    %c7_246 = arith.constant 7 : index
    %c0_247 = arith.constant 0 : index
    %c0_248 = arith.constant 0 : index
    %361 = vector.load %arg14[%c7_246, %c0_247, %c0_248] : memref<8x32x8xf32, #tpu.memory_space<vmem>>, vector<1x32x8xf32>
    %362 = vector.shape_cast %361 : vector<1x32x8xf32> to vector<32x8xf32>
    %363 = vector.shape_cast %360 : vector<32x8xf32> to vector<1x32x8xf32>
    tpu.vector_store %arg14[%c7_246, %c0_247, %c0_248], %363 {strides = array<i32>} : memref<8x32x8xf32, #tpu.memory_space<vmem>>, vector<1x32x8xf32>,
    %cst_249 = arith.constant dense<0xFF800000> : vector<8x32xf32>
    %364 = vector.multi_reduction <maximumf>, %315, %cst_249 [1] : vector<8x8x32xf32> to vector<8x32xf32>
    %c0_250 = arith.constant 0 : index
    %c0_251 = arith.constant 0 : index
    %365 = vector.load %arg8[%c0_250, %c0_251] : memref<32x16xf32, #tpu.memory_space<vmem>>, vector<32x16xf32>
    %cst_252 = arith.constant dense<0.000000e+00> : vector<8x16xf32>
    %366 = tpu.matmul %364, %365, %cst_252 {dimension_numbers = #tpu.dot_dimension_numbers<[1], [0], [0], [1], [0, 0, 1, 1], [], []>} : vector<8x32xf32>, vector<32x16xf32>, vector<8x16xf32> -> vector<8x16xf32>
    %c0_253 = arith.constant 0 : index
    %c0_254 = arith.constant 0 : index
    %367 = vector.load %arg9[%c0_253, %c0_254] : memref<1x16xf32, #tpu.memory_space<vmem>>, vector<1x16xf32>
    %368 = vector.broadcast %367 : vector<1x16xf32> to vector<8x16xf32>
    %369 = arith.addf %366, %368 : vector<8x16xf32>
    %cst_255 = arith.constant 5.000000e-01 : f32
    %370 = vector.broadcast %cst_255 : f32 to vector<8x16xf32>
    %371 = arith.mulf %370, %369 : vector<8x16xf32>
    %cst_256 = arith.constant 4.471500e-02 : f32
    %372 = vector.broadcast %cst_256 : f32 to vector<8x16xf32>
    %373 = arith.mulf %372, %369 : vector<8x16xf32>
    %374 = arith.mulf %373, %369 : vector<8x16xf32>
    %375 = arith.mulf %374, %369 : vector<8x16xf32>
    %376 = arith.addf %369, %375 : vector<8x16xf32>
    %cst_257 = arith.constant 0.797884583 : f32
    %377 = vector.broadcast %cst_257 : f32 to vector<8x16xf32>
    %378 = arith.mulf %377, %376 : vector<8x16xf32>
    %379 = math.tanh %378 : vector<8x16xf32>
    %cst_258 = arith.constant 1.000000e+00 : f32
    %380 = vector.broadcast %cst_258 : f32 to vector<8x16xf32>
    %381 = arith.addf %380, %379 : vector<8x16xf32>
    %382 = arith.mulf %371, %381 : vector<8x16xf32>
    %c0_259 = arith.constant 0 : index
    %c0_260 = arith.constant 0 : index
    %383 = vector.load %arg10[%c0_259, %c0_260] : memref<16x8xf32, #tpu.memory_space<vmem>>, vector<16x8xf32>
    %cst_261 = arith.constant dense<0.000000e+00> : vector<8x8xf32>
    %384 = tpu.matmul %382, %383, %cst_261 {dimension_numbers = #tpu.dot_dimension_numbers<[1], [0], [0], [1], [0, 0, 1, 1], [], []>} : vector<8x16xf32>, vector<16x8xf32>, vector<8x8xf32> -> vector<8x8xf32>
    %c0_262 = arith.constant 0 : index
    %c0_263 = arith.constant 0 : index
    %385 = vector.load %arg11[%c0_262, %c0_263] : memref<1x8xf32, #tpu.memory_space<vmem>>, vector<1x8xf32>
    %386 = vector.broadcast %385 : vector<1x8xf32> to vector<8x8xf32>
    %387 = arith.addf %384, %386 : vector<8x8xf32>
    %cst_264 = arith.constant 5.000000e-01 : f32
    %388 = vector.broadcast %cst_264 : f32 to vector<8x8xf32>
    %389 = arith.mulf %388, %387 : vector<8x8xf32>
    %cst_265 = arith.constant 4.471500e-02 : f32
    %390 = vector.broadcast %cst_265 : f32 to vector<8x8xf32>
    %391 = arith.mulf %390, %387 : vector<8x8xf32>
    %392 = arith.mulf %391, %387 : vector<8x8xf32>
    %393 = arith.mulf %392, %387 : vector<8x8xf32>
    %394 = arith.addf %387, %393 : vector<8x8xf32>
    %cst_266 = arith.constant 0.797884583 : f32
    %395 = vector.broadcast %cst_266 : f32 to vector<8x8xf32>
    %396 = arith.mulf %395, %394 : vector<8x8xf32>
    %397 = math.tanh %396 : vector<8x8xf32>
    %cst_267 = arith.constant 1.000000e+00 : f32
    %398 = vector.broadcast %cst_267 : f32 to vector<8x8xf32>
    %399 = arith.addf %398, %397 : vector<8x8xf32>
    %400 = arith.mulf %389, %399 : vector<8x8xf32>
    %c0_268 = arith.constant 0 : index
    %c0_269 = arith.constant 0 : index
    %401 = vector.load %arg12[%c0_268, %c0_269] : memref<8x1xf32, #tpu.memory_space<vmem>>, vector<8x1xf32>
    %cst_270 = arith.constant dense<0.000000e+00> : vector<8x1xf32>
    %402 = tpu.matmul %400, %401, %cst_270 {dimension_numbers = #tpu.dot_dimension_numbers<[1], [0], [0], [1], [0, 0, 1, 1], [], []>} : vector<8x8xf32>, vector<8x1xf32>, vector<8x1xf32> -> vector<8x1xf32>
    %c0_271 = arith.constant 0 : index
    %c0_272 = arith.constant 0 : index
    %403 = vector.load %arg13[%c0_271, %c0_272] : memref<1x1xf32, #tpu.memory_space<vmem>>, vector<1x1xf32>
    %404 = vector.broadcast %403 : vector<1x1xf32> to vector<8x1xf32>
    %405 = arith.addf %402, %404 : vector<8x1xf32>
    %cst_273 = arith.constant 0.000000e+00 : f32
    %406 = vector.broadcast %cst_273 : f32 to vector<8x1xf32>
    %407 = arith.subf %406, %405 : vector<8x1xf32>
    %408 = math.exp %407 : vector<8x1xf32>
    %cst_274 = arith.constant 1.000000e+00 : f32
    %409 = vector.broadcast %cst_274 : f32 to vector<8x1xf32>
    %410 = arith.addf %409, %408 : vector<8x1xf32>
    %cst_275 = arith.constant 1.000000e+00 : f32
    %411 = vector.broadcast %cst_275 : f32 to vector<8x1xf32>
    %412 = arith.divf %411, %410 : vector<8x1xf32>
    %c0_276 = arith.constant 0 : index
    %c0_277 = arith.constant 0 : index
    %413 = vector.load %arg15[%c0_276, %c0_277] : memref<8x1xf32, #tpu.memory_space<vmem>>, vector<8x1xf32>
    tpu.vector_store %arg15[%c0_276, %c0_277], %412 {strides = array<i32>} : memref<8x1xf32, #tpu.memory_space<vmem>>, vector<8x1xf32>,
    return
  }
  func.func @transform_0(%arg0: i32) -> (i32, i32, i32) {
    %c0_i32 = arith.constant 0 : i32
    %c0_i32_0 = arith.constant 0 : i32
    %c0_i32_1 = arith.constant 0 : i32
    return %arg0, %c0_i32, %c0_i32_0 : i32, i32, i32
  }
  func.func @transform_1(%arg0: i32) -> (i32, i32) {
    %c0_i32 = arith.constant 0 : i32
    %c0_i32_0 = arith.constant 0 : i32
    %c0_i32_1 = arith.constant 0 : i32
    return %c0_i32, %c0_i32_0 : i32, i32
  }
  func.func @transform_2(%arg0: i32) -> (i32, i32) {
    %c0_i32 = arith.constant 0 : i32
    %c0_i32_0 = arith.constant 0 : i32
    %c0_i32_1 = arith.constant 0 : i32
    return %c0_i32, %c0_i32_0 : i32, i32
  }
  func.func @transform_3(%arg0: i32) -> (i32, i32, i32) {
    %c0_i32 = arith.constant 0 : i32
    %c0_i32_0 = arith.constant 0 : i32
    %c0_i32_1 = arith.constant 0 : i32
    %c0_i32_2 = arith.constant 0 : i32
    return %c0_i32, %c0_i32_0, %c0_i32_1 : i32, i32, i32
  }
  func.func @transform_4(%arg0: i32) -> (i32, i32) {
    %c0_i32 = arith.constant 0 : i32
    %c0_i32_0 = arith.constant 0 : i32
    %c0_i32_1 = arith.constant 0 : i32
    return %c0_i32, %c0_i32_0 : i32, i32
  }
  func.func @transform_5(%arg0: i32) -> (i32, i32) {
    %c0_i32 = arith.constant 0 : i32
    %c0_i32_0 = arith.constant 0 : i32
    %c0_i32_1 = arith.constant 0 : i32
    return %c0_i32, %c0_i32_0 : i32, i32
  }
  func.func @transform_6(%arg0: i32) -> (i32, i32) {
    %c0_i32 = arith.constant 0 : i32
    %c0_i32_0 = arith.constant 0 : i32
    %c0_i32_1 = arith.constant 0 : i32
    return %c0_i32, %c0_i32_0 : i32, i32
  }
  func.func @transform_7(%arg0: i32) -> (i32, i32) {
    %c0_i32 = arith.constant 0 : i32
    %c0_i32_0 = arith.constant 0 : i32
    %c0_i32_1 = arith.constant 0 : i32
    return %c0_i32, %c0_i32_0 : i32, i32
  }
  func.func @transform_8(%arg0: i32) -> (i32, i32) {
    %c0_i32 = arith.constant 0 : i32
    %c0_i32_0 = arith.constant 0 : i32
    %c0_i32_1 = arith.constant 0 : i32
    return %c0_i32, %c0_i32_0 : i32, i32
  }
  func.func @transform_9(%arg0: i32) -> (i32, i32) {
    %c0_i32 = arith.constant 0 : i32
    %c0_i32_0 = arith.constant 0 : i32
    %c0_i32_1 = arith.constant 0 : i32
    return %c0_i32, %c0_i32_0 : i32, i32
  }
  func.func @transform_10(%arg0: i32) -> (i32, i32) {
    %c0_i32 = arith.constant 0 : i32
    %c0_i32_0 = arith.constant 0 : i32
    %c0_i32_1 = arith.constant 0 : i32
    return %c0_i32, %c0_i32_0 : i32, i32
  }
  func.func @transform_11(%arg0: i32) -> (i32, i32) {
    %c0_i32 = arith.constant 0 : i32
    %c0_i32_0 = arith.constant 0 : i32
    %c0_i32_1 = arith.constant 0 : i32
    return %c0_i32, %c0_i32_0 : i32, i32
  }
  func.func @transform_12(%arg0: i32) -> (i32, i32) {
    %c0_i32 = arith.constant 0 : i32
    %c0_i32_0 = arith.constant 0 : i32
    %c0_i32_1 = arith.constant 0 : i32
    return %c0_i32, %c0_i32_0 : i32, i32
  }
  func.func @transform_13(%arg0: i32) -> (i32, i32, i32) {
    %c0_i32 = arith.constant 0 : i32
    %c0_i32_0 = arith.constant 0 : i32
    %c0_i32_1 = arith.constant 0 : i32
    return %arg0, %c0_i32, %c0_i32_0 : i32, i32, i32
  }
  func.func @transform_14(%arg0: i32) -> (i32, i32) {
    %c0_i32 = arith.constant 0 : i32
    %c0_i32_0 = arith.constant 0 : i32
    return %arg0, %c0_i32 : i32, i32
  }
}

</mosaic_0001>

<bundles_post_ra>
// kernel: enhanced_smv_processor.1
= control target key start
LH: loop header
LB: loop body
LE: loop exit
PB: predicated region body
PF: predicated region fallthrough
CT: control target
= control target key end

     0   :  { %s7216_s15 = smov 0   ;;  %s9630_s0 = inlined_call_operand.vmem [shape: bf16[16,16,8], index: 0, kind: input, shape index: {}]   ;;  %s9631_s1 = inlined_call_operand.vmem [shape: bf16[8,16], index: 1, kind: input, shape index: {}]   ;;  %s9632_s2 = inlined_call_operand.vmem [shape: f32[1,16], index: 2, kind: input, shape index: {}]   ;;  %s9633_s3 = inlined_call_operand.vmem [shape: bf16[11,16,32], index: 3, kind: input, shape index: {}]   ;;  %s9634_s4 = inlined_call_operand.vmem [shape: f32[1,32], index: 4, kind: input, shape index: {}]   ;;  %s9635_s5 = inlined_call_operand.vmem [shape: f32[15,32], index: 5, kind: input, shape index: {}]   ;;  %s9636_s6 = inlined_call_operand.vmem [shape: f32[1,32], index: 6, kind: input, shape index: {}]   ;;  %s9637_s7 = inlined_call_operand.vmem [shape: f32[32,16], index: 7, kind: input, shape index: {}]   ;;  %s9638_s8 = inlined_call_operand.vmem [shape: f32[1,16], index: 8, kind: input, shape index: {}]   ;;  %s9639_s9 = inlined_call_operand.vmem [shape: f32[16,8], index: 9, kind: input, shape index: {}]   ;;  %s9640_s10 = inlined_call_operand.vmem [shape: f32[1,8], index: 10, kind: input, shape index: {}]   ;;  %s9641_s11 = inlined_call_operand.vmem [shape: f32[8,1], index: 11, kind: input, shape index: {}]   ;;  %s9642_s12 = inlined_call_operand.<no memory space> [shape: f32[1,1], index: 12, kind: input, shape index: {}]   ;;  %s9643_s13 = inlined_call_operand.vmem [shape: f32[16,32,8], index: 13, kind: output, shape index: {0}]   ;;  %s9644_s14 = inlined_call_operand.vmem [shape: f32[16,1], index: 14, kind: output, shape index: {1}]  }
   0x1   :  { %v20_v0 = vstv %s9642_s12 }
   0x2   :  { %21 = vst [vmem:[#allocation4] sm:$0x1] %v20_v0 }
   0x3 LB: > { %s7222_s16 = sadd.s32 4294967295, %s7133_s15   ;;  %p6248_p0 = scmp.ge.s32.totalorder %s7133_s15, 1  ;;  %s7133_s15 = sphi %s7216_s15, %s27_s15  }
   0x4   : > { %p419_p1 = scmp.lt.s32.totalorder %s7133_s15, 3 }
   0x6   : > { %p420_p2 = pnand %p6248_p0, %p419_p1 }
   0x8   : > { %423 = sbr.rel (%p420_p2) target bundleno = 1608 (0x648), region = 72 }
   0xd   : > { %v506_v1 = vld [vmem:[%s9631_s1] sm:$0xf]  ;;  %vm579_vm0 = vcmask 1043456   ;;  %s6249_s12 = sshll.u32 %s7222_s16, 3  ;;  %vm554_vm1 = vcmask 64512   ;;  %vm824_vm2 = vcmask 125952  }
   0xe   : > { %6964 = vmatprep.subr.msk.bf16.mxu0 %vm579_vm0, %v506_v1  ;;  %v581_v2 = vsel %vm579_vm0, %v506_v1, 0  ;;  %p472_p3 = scmp.lt.s32.totalorder %s6249_s12, 15  ;;  %v7135_v11 = vmov 0   ;;  %v6984_v12 = vld [vmem:[%s9633_s3 + $0x8] sm:$0xff]   ;;  %v6985_v13 = vld [vmem:[%s9633_s3] sm:$0xff]   ;;  %v7269_v14 = vld [vmem:[%s9633_s3 + $0x10] sm:$0xff]  }
   0xf   : > { %6726 = vmatpush3.bf16.msra.mxu0 %v581_v2  ;;  %826 = vst.msk [vmem:[#allocation2 + $0x4] sm:$0xf] %vm824_vm2, %v7135_v11  ;;  %828 = vst.msk [vmem:[#allocation2 + $0x1c] sm:$0xf] %vm824_vm2, %v7135_v11  ;;  %6743 = vmatprep.subr.bf16.mxu1 %v6984_v12  ;;  %v7277_v17 = vld [vmem:[%s9633_s3 + $0x18] sm:$0xff]   ;;  %vm1222_vm3 = vcmask 1041408  }
  0x10   : > { %s9767_s12 = smov (!%p472_p3, %s6249_s12), 15  ;;  %830 = vst.msk [vmem:[#allocation2 + $0x34] sm:$0xf] %vm824_vm2, %v7135_v11  ;;  %832 = vst.msk [vmem:[#allocation2 + $0x4c] sm:$0xf] %vm824_vm2, %v7135_v11  ;;  %6744 = vmatpush3.bf16.msra.mxu1 %v6984_v12  ;;  %6761 = vmatprep.subr.bf16.mxu0 %v6985_v13  ;;  %vm1223_vm4 = vcmask 1045508  }
  0x11   : > { %s6589_s19 = sshll.u32 %s9767_s12, 3  ;;  %834 = vst.msk [vmem:[#allocation2 + $0x64] sm:$0xf] %vm824_vm2, %v7135_v11  ;;  %836 = vst.msk [vmem:[#allocation2 + $0x7c] sm:$0xf] %vm824_vm2, %v7135_v11  ;;  %6779 = vmatprep.subr.bf16.mxu1 %v7269_v14  ;;  %vm1314_vm6 = vcmask 130048  }
  0x12   : > { %s476_s22 = scalar_lea.vmem %s9630_s0, %s6589_s19  ;;  %838 = vst.msk [vmem:[#allocation2 + $0x94] sm:$0xf] %vm824_vm2, %v7135_v11  ;;  %840 = vst.msk [vmem:[#allocation2 + $0xac] sm:$0xf] %vm824_vm2, %v7135_v11  ;;  %vm961_vm7 = vsmask.f32 2304 }
  0x13   : > { %v6976_v3 = vld [vmem:[%s476_s22] sm:$0xff]   ;;  %v6977_v4 = vld [vmem:[%s476_s22 + $0x8] sm:$0xff]   ;;  %v6978_v5 = vld [vmem:[%s476_s22 + $0x10] sm:$0xff]   ;;  %841 = vst.msk [vmem:[#allocation2 + $0x10] sm:$0xf] %vm824_vm2, %v7135_v11  ;;  %vm1976_vm12 = vcmask 1040384  }
  0x14   : > { %6727 = vmatprep.mubr.msk.bf16.mxu0 %vm554_vm1, %v6976_v3  ;;  %v6979_v6 = vld [vmem:[%s476_s22 + $0x18] sm:$0xff]   ;;  %v6980_v7 = vld [vmem:[%s476_s22 + $0x20] sm:$0xff]   ;;  %v6981_v8 = vld [vmem:[%s476_s22 + $0x28] sm:$0xff]   ;;  %843 = vst.msk [vmem:[#allocation2 + $0x28] sm:$0xf] %vm824_vm2, %v7135_v11  ;;  %vm1977_vm13 = vcmask 1044484  }
  0x15   : > { %6728 = vmatmul.mubr.msk.bf16.vlgmr.msra.gmra.mxu0 %vm554_vm1, %v6977_v4  ;;  %v6982_v9 = vld [vmem:[%s476_s22 + $0x30] sm:$0xff]   ;;  %v6983_v10 = vld [vmem:[%s476_s22 + $0x38] sm:$0xff]   ;;  %845 = vst.msk [vmem:[#allocation2 + $0x40] sm:$0xf] %vm824_vm2, %v7135_v11  ;;  %847 = vst.msk [vmem:[#allocation2 + $0x58] sm:$0xf] %vm824_vm2, %v7135_v11 }
  0x16   : > { %6731 = vmatprep.mubr.msk.bf16.mxu0 %vm554_vm1, %v6978_v5  ;;  %849 = vst.msk [vmem:[#allocation2 + $0x70] sm:$0xf] %vm824_vm2, %v7135_v11  ;;  %851 = vst.msk [vmem:[#allocation2 + $0x88] sm:$0xf] %vm824_vm2, %v7135_v11  ;;  %6762 = vmatpush3.bf16.msra.mxu0 %v6985_v13  ;;  %v7272_v15 = vld [vmem:[#allocation2 + $0x1c] sm:$0xc] }
  0x17   : > { %853 = vst.msk [vmem:[#allocation2 + $0xa0] sm:$0xf] %vm824_vm2, %v7135_v11  ;;  %855 = vst.msk [vmem:[#allocation2 + $0xb8] sm:$0xf] %vm824_vm2, %v7135_v11  ;;  %v937_v16 = vld [vmem:[#allocation2 + $0x4] sm:$0xe]  ;;  %6797 = vmatprep.subr.bf16.mxu0 %v7277_v17 }
  0x18   : > { %v7279_v18 = vld [vmem:[#allocation2 + $0x4] sm:$0xc]  ;;  %v1622_v19 = vshrl.u32 %v7272_v15, 16  ;;  %v1625_v20 = vshll.u32 %v7272_v15, 16  ;;  %v965_v21 = vshrl.u32 %v937_v16, 16  ;;  %v968_v22 = vshll.u32 %v937_v16, 16  ;;  %vm7456_vm5 = vmor %vm1222_vm3, %vm1223_vm4 }
  0x19   : > { %v940_v23 = vld [vmem:[#allocation2 + $0x1c] sm:$0xe]  ;;  %v946_v24 = vld [vmem:[#allocation2 + $0x4c] sm:$0xe]  ;;  %v1599_v25 = vshrl.u32 %v7279_v18, 16  ;;  %v1602_v26 = vshll.u32 %v7279_v18, 16  ;;  %vm7722_vm15 = vmor %vm1976_vm12, %vm1977_vm13 }
  0x1a   : > { %v943_v27 = vld [vmem:[#allocation2 + $0x34] sm:$0xe]  ;;  %v993_v28 = vshrl.u32 %v940_v23, 16  ;;  %v996_v29 = vshll.u32 %v940_v23, 16  ;;  %v1049_v30 = vshrl.u32 %v946_v24, 16  ;;  %v1052_v31 = vshll.u32 %v946_v24, 16 }
  0x1b   : > { %v1624_v32 = vrot.slane %v1622_v19, 6  ;;  %v1627_v33 = vrot.slane %v1625_v20, 7  ;;  %v967_v34 = vrot.slane %v965_v21, 5  ;;  %v970_v35 = vrot.slane %v968_v22, 6  ;;  %v949_v38 = vld [vmem:[#allocation2 + $0x64] sm:$0xe] }
  0x1c   : > { %v1021_v36 = vshrl.u32 %v943_v27, 16  ;;  %v1024_v37 = vshll.u32 %v943_v27, 16  ;;  %v952_v39 = vld [vmem:[#allocation2 + $0x7c] sm:$0xe]  ;;  %v1601_v40 = vrot.slane %v1599_v25, 6  ;;  %v1604_v41 = vrot.slane %v1602_v26, 7 }
  0x1d   : > { %6732 = vmatmul.mubr.msk.bf16.gmra.mxu0 %vm554_vm1, %v6979_v6  ;;  %v995_v42 = vrot.slane %v993_v28, 5  ;;  %v998_v43 = vrot.slane %v996_v29, 6  ;;  %v1051_v44 = vrot.slane %v1049_v30, 5  ;;  %v1054_v45 = vrot.slane %v1052_v31, 6  ;;  %v955_v58 = vld [vmem:[#allocation2 + $0x94] sm:$0xe] }
  0x1e   : > { %6735 = vmatprep.mubr.msk.bf16.mxu0 %vm554_vm1, %v6980_v7  ;;  %v1077_v46 = vshrl.u32 %v949_v38, 16  ;;  %v1080_v47 = vshll.u32 %v949_v38, 16  ;;  %v1105_v48 = vshrl.u32 %v952_v39, 16  ;;  %v1108_v49 = vshll.u32 %v952_v39, 16  ;;  %v958_v59 = vld [vmem:[#allocation2 + $0xac] sm:$0xe] }
  0x1f   : > { %v1628_v50 = vor.u32 %v1627_v33, %v1624_v32  ;;  %v971_v51 = vor.u32 %v970_v35, %v967_v34  ;;  %v1023_v52 = vrot.slane %v1021_v36, 5  ;;  %v1026_v53 = vrot.slane %v1024_v37, 6  ;;  %v7288_v60 = vld [vmem:[#allocation2 + $0x34] sm:$0xc]  ;;  %v7294_v5 = vld [vmem:[#allocation2 + $0x4c] sm:$0xc] }
  0x20   : > { %v999_v56 = vor.u32 %v998_v43, %v995_v42  ;;  %v1055_v57 = vor.u32 %v1054_v45, %v1051_v44  ;;  %v1079_v61 = vrot.slane %v1077_v46, 5  ;;  %v1082_v62 = vrot.slane %v1080_v47, 6  ;;  %v7304_v20 = vld [vmem:[#allocation2 + $0x64] sm:$0xc]  ;;  %v7306_v21 = vld [vmem:[#allocation2 + $0x7c] sm:$0xc] }
  0x21   : > { %v1107_v63 = vrot.slane %v1105_v48, 5  ;;  %v1110_v0 = vrot.slane %v1108_v49, 6  ;;  %v7290_v1 = vrot.slane %v1628_v50, 4  ;;  %v7292_v2 = vrot.slane %v971_v51, 4  ;;  %v7314_v28 = vld [vmem:[#allocation2 + $0x4] sm:$0x8] }
  0x22   : > { %v1027_v3 = vor.u32 %v1026_v53, %v1023_v52  ;;  %v1605_v4 = vor.u32 %v1604_v41, %v1601_v40  ;;  %v1133_v6 = vshrl.u32 %v955_v58, 16  ;;  %v1136_v7 = vshll.u32 %v955_v58, 16  ;;  %v7316_v29 = vld [vmem:[#allocation2 + $0xac] sm:$0xc]  ;;  %v7318_v34 = vld [vmem:[#allocation2 + $0x94] sm:$0xc] }
  0x23   : > { %v1645_v12 = vshrl.u32 %v7288_v60, 16  ;;  %v1648_v13 = vshll.u32 %v7288_v60, 16  ;;  %v7302_v19 = vrot.slane %v1055_v57, 4  ;;  %v1083_v22 = vor.u32 %v1082_v62, %v1079_v61  ;;  %v7335_v53 = vld [vmem:[#allocation2 + $0x1c] sm:$0x8]  ;;  %s6590_s17 = sshll.u32 %s9767_s12, 5 }
  0x24   : > { %v1111_v23 = vor.u32 %v1110_v0, %v1107_v63  ;;  %v7308_v24 = vrot.slane %v1027_v3, 4  ;;  %v7312_v27 = vrot.slane %v1605_v4, 4  ;;  %v1135_v30 = vrot.slane %v1133_v6, 5  ;;  %v7342_v63 = vld [vmem:[%s9632_s2] ss:$0 sm:$0xff]  ;;  %s9552_s20 = scalar_lea.vmem %s9643_s13, %s6590_s17  ;;  %p485_p4 = scmp.lt.s32.totalorder %s7222_s16, 1 }
  0x25   : > { %6736 = vmatmul.mubr.msk.bf16.gmra.mxu0 %vm554_vm1, %v6981_v8  ;;  %v1161_v8 = vshrl.u32 %v958_v59, 16  ;;  %v1138_v31 = vrot.slane %v1136_v7, 6  ;;  %v1647_v35 = vrot.slane %v1645_v12, 6  ;;  %v1650_v36 = vrot.slane %v1648_v13, 7 }
  0x26   : > { %6739 = vmatprep.mubr.msk.bf16.mxu0 %vm554_vm1, %v6982_v9  ;;  %v1164_v9 = vshll.u32 %v958_v59, 16  ;;  %v1668_v37 = vshrl.u32 %v7294_v5, 16  ;;  %v1671_v38 = vshll.u32 %v7294_v5, 16  ;;  %v7322_v39 = vrot.slane %v1083_v22, 4  ;;  %s9769_s16 = smov (!%p485_p4, %s7222_s16), 1 }
  0x27   : > { %v1163_v32 = vrot.slane %v1161_v8, 5  ;;  %v7324_v40 = vrot.slane %v1111_v23, 4  ;;  %v1691_v41 = vshrl.u32 %v7304_v20, 16  ;;  %v1694_v42 = vshll.u32 %v7304_v20, 16  ;;  %s6255_s22 = sshll.u32 %s9769_s16, 3 }
  0x28   : > { %v1166_v33 = vrot.slane %v1164_v9, 6  ;;  %v1714_v43 = vshrl.u32 %v7306_v21, 16  ;;  %v1717_v44 = vshll.u32 %v7306_v21, 16  ;;  %v1760_v45 = vshrl.u32 %v7316_v29, 16  ;;  %s488_s25 = scalar_lea.vmem %s9644_s14, %s6255_s22 }
  0x29   : > { %v1763_v46 = vshll.u32 %v7316_v29, 16  ;;  %v1139_v47 = vor.u32 %v1138_v31, %v1135_v30  ;;  %v1737_v49 = vshrl.u32 %v7318_v34, 16  ;;  %v1740_v50 = vshll.u32 %v7318_v34, 16 }
  0x2a   : > { %v1167_v51 = vor.u32 %v1166_v33, %v1163_v32  ;;  %v1651_v52 = vor.u32 %v1650_v36, %v1647_v35  ;;  %v1673_v57 = vrot.slane %v1671_v38, 7  ;;  %v1693_v59 = vrot.slane %v1691_v41, 6  ;;  %v7352_v32 = vld [vmem:[#allocation2 + $0x4c] sm:$0x8]  ;;  %v7355_v35 = vld [vmem:[#allocation2 + $0x34] sm:$0x8] }
  0x2b   : > { %v1696_v61 = vrot.slane %v1694_v42, 7  ;;  %v2217_v62 = vshrl.u32 %v7314_v28, 16  ;;  %v1716_v0 = vrot.slane %v1714_v43, 6  ;;  %v1719_v3 = vrot.slane %v1717_v44, 7  ;;  %9652 = vst [vmem:[#allocation5_spill] sm:$0xff] %v7355_v35 }
  0x2c   : > { %v1762_v4 = vrot.slane %v1760_v45, 6  ;;  %v1765_v6 = vrot.slane %v1763_v46, 7  ;;  %v1739_v9 = vrot.slane %v1737_v49, 6  ;;  %v1742_v12 = vrot.slane %v1740_v50, 7  ;;  %v7359_v38 = vld [vmem:[#allocation2 + $0x7c] sm:$0x8] }
  0x2d   : > { %6740 = vmatmul.mubr.msk.bf16.gmra.mxu0 %vm554_vm1, %v6983_v10  ;;  %v7296_v10 = vrot.slane %v999_v56, 4  ;;  %v1670_v56 = vrot.slane %v1668_v37, 6  ;;  %v7346_v22 = vrot.slane %v1139_v47, 4  ;;  %v7348_v23 = vrot.slane %v1167_v51, 4  ;;  %v7357_v37 = vld [vmem:[#allocation2 + $0x64] sm:$0x8] }
  0x2e   : > { %v7350_v30 = vrot.slane %v1651_v52, 4  ;;  %v1697_v36 = vor.u32 %v1696_v61, %v1693_v59  ;;  %9653 = vst [vmem:[#allocation6_spill] sm:$0xff] %v7357_v37  ;;  %9654 = vst [vmem:[#allocation7_spill] sm:$0xff] %v7359_v38  ;;  %v1720_v42 = vor.u32 %v1719_v3, %v1716_v0  ;;  %v1766_v43 = vor.u32 %v1765_v6, %v1762_v4  ;;  %v7366_v51 = vld [vmem:[#allocation2 + $0x94] sm:$0x8] }
  0x2f   : > { %v1674_v31 = vor.u32 %v1673_v57, %v1670_v56  ;;  %v7361_v44 = vrot.slane %v2217_v62, 11  ;;  %v2234_v45 = vshrl.u32 %v7335_v53, 16  ;;  %v1743_v50 = vor.u32 %v1742_v12, %v1739_v9  ;;  %9656 = vst [vmem:[#allocation9_spill] sm:$0xff] %v7366_v51  ;;  %v7376_v6 = vld [vmem:[#allocation2 + $0xac] sm:$0x8] }
  0x30   : > { %v7374_v4 = vrot.slane %v1697_v36, 4  ;;  %9659 = vst [vmem:[#allocation12_spill] sm:$0xff] %v7376_v6  ;;  %v7378_v12 = vrot.slane %v1720_v42, 4  ;;  %vm962_vm8 = vsmask.f32 6416 }
  0x31   : > { %9655 = vst [vmem:[#allocation8_spill] sm:$0xff] %v7361_v44  ;;  %v7369_v57 = vrot.slane %v1674_v31, 4  ;;  %v7383_v31 = vrot.slane %v2234_v45, 11  ;;  %vm7518_vm9 = vmor %vm961_vm7, %vm962_vm8  ;;  %vm1595_vm10 = vsmask.f32 1280  ;;  %vm3121_vm8 = vcmask 1042432  }
  0x32   : > { %9658 = vst [vmem:[#allocation11_spill] sm:$0xff] %v7374_v4  ;;  %9660 = vst [vmem:[#allocation13_spill] sm:$0xff] %v7378_v12  ;;  %vm1596_vm11 = vsmask.f32 5392  ;;  %vm2213_vm0 = vsmask.f32 256 }
  0x33   : > { %9657 = vst [vmem:[#allocation10_spill] sm:$0xff] %v7369_v57  ;;  %9662 = vst [vmem:[#allocation15_spill] sm:$0xff] %v7383_v31  ;;  %vm2724_vm4 = vsmask.f32 3328  ;;  %vm2725_vm7 = vsmask.f32 7440 }
  0x34   : > { %vm7680_vm14 = vmor %vm1595_vm10, %vm1596_vm11  ;;  %vm3122_vm10 = vcmask 1046532  }
  0x35   : > { %vm8007_vm11 = vmor %vm3121_vm8, %vm3122_vm10 }
  0x36   : > { %vm8017_vm12 = vmor %vm2724_vm4, %vm2725_vm7  ;;  %vm5892_vm4 = vcmask 1047559  }
  0xd5   : > { %v6729_v13 = vpop.f32.mrf.mxu0 }
  0xd6   : > { %v626_v33 = vadd.f32 %v6729_v13, %v7342_v63 }
  0xd7   : > { %v617_v41 = vpop.f32.mrf.mxu0 }
  0xd8   : > { %v698_v46 = vmul.f32 0.044715, %v626_v33  ;;  %v618_v47 = vadd.f32 %v7342_v63, %v617_v41  ;;  %v7381_v41 = vrot.slane %v1766_v43, 4  ;;  %v7387_v56 = vmul.f32 0.5, %v626_v33 }
  0xd9   : > { %v6730_v52 = vpop.f32.mrf.mxu0 }
  0xda   : > { %v714_v62 = vmul.f32 %v698_v46, %v626_v33  ;;  %v696_v0 = vmul.f32 0.044715, %v618_v47  ;;  %v629_v3 = vadd.f32 %v6730_v52, %v7342_v63  ;;  %9661 = vst [vmem:[#allocation14_spill] sm:$0xff] %v7381_v41  ;;  %v7385_v46 = vrot.slane %v1743_v50, 4 }
  0xdb   : > { %v620_v9 = vpop.f32.mrf.mxu0  ;;  %v7389_v36 = vmul.f32 0.5, %v618_v47 }
  0xdc   : > { %v730_v59 = vmul.f32 %v714_v62, %v626_v33  ;;  %v712_v49 = vmul.f32 %v696_v0, %v618_v47  ;;  %v699_v61 = vmul.f32 0.044715, %v629_v3  ;;  %9663 = vst [vmem:[#allocation16_spill] sm:$0xff] %v7385_v46  ;;  %v621_v52 = vadd.f32 %v7342_v63, %v620_v9 }
  0xdd   : > { %v6733_v8 = vpop.f32.mrf.mxu0  ;;  %v7394_v58 = vmul.f32 0.5, %v629_v3 }
  0xde   : > { %v746_v48 = vadd.f32 %v730_v59, %v626_v33  ;;  %v728_v13 = vmul.f32 %v712_v49, %v618_v47  ;;  %v715_v43 = vmul.f32 %v699_v61, %v629_v3  ;;  %v642_v45 = vadd.f32 %v6733_v8, %v7342_v63 }
  0xdf   : > { %v7396_v62 = vmul.f32 0.5, %v621_v52  ;;  %v697_v50 = vmul.f32 0.044715, %v621_v52  ;;  %v633_v0 = vpop.f32.mrf.mxu0  ;;  %v2251_v8 = vshrl.u32 %v7355_v35, 16 }
  0xe0   : > { %v762_v26 = vmul.f32 0.7978846, %v746_v48  ;;  %v744_v25 = vadd.f32 %v728_v13, %v618_v47  ;;  %v731_v11 = vmul.f32 %v715_v43, %v629_v3  ;;  %v7399_v9 = vmul.f32 0.5, %v642_v45 }
  0xe1   : > { %v713_v16 = vmul.f32 %v697_v50, %v621_v52  ;;  %v702_v42 = vmul.f32 0.044715, %v642_v45  ;;  %v634_v33 = vadd.f32 %v7342_v63, %v633_v0  ;;  %v6734_v49 = vpop.f32.mrf.mxu0 }
  0xe2   : > { %7002 = vtanh.f32 %v762_v26  ;;  %v760_v59 = vmul.f32 0.7978846, %v744_v25  ;;  %v747_v61 = vadd.f32 %v731_v11, %v629_v3  ;;  %v645_v54 = vadd.f32 %v6734_v49, %v7342_v63 }
  0xe3   : > { %v729_v55 = vmul.f32 %v713_v16, %v621_v52  ;;  %v718_v31 = vmul.f32 %v702_v42, %v642_v45  ;;  %v7404_v7 = vmul.f32 0.5, %v634_v33  ;;  %v700_v48 = vmul.f32 0.044715, %v634_v33  ;;  %v636_v47 = vpop.f32.mrf.mxu0 }
  0xe4   : > { %7004 = vtanh.f32 %v760_v59  ;;  %v763_v13 = vmul.f32 0.7978846, %v747_v61  ;;  %v7406_v43 = vmul.f32 0.5, %v645_v54  ;;  %v703_v50 = vmul.f32 0.044715, %v645_v54 }
  0xe5   : > { %v745_v0 = vadd.f32 %v729_v55, %v621_v52  ;;  %v734_v44 = vmul.f32 %v718_v31, %v642_v45  ;;  %v716_v6 = vmul.f32 %v700_v48, %v634_v33  ;;  %v637_v26 = vadd.f32 %v7342_v63, %v636_v47  ;;  %v6737_v25 = vpop.f32.mrf.mxu0 }
  0xe6   : > { %7006 = vtanh.f32 %v763_v13  ;;  %v719_v11 = vmul.f32 %v703_v50, %v645_v54  ;;  %v658_v16 = vadd.f32 %v6737_v25, %v7342_v63  ;;  %v7410_v3 = vrot.slane %v2251_v8, 11 }
  0xe7   : > { %v761_v42 = vmul.f32 0.7978846, %v745_v0  ;;  %v750_v49 = vadd.f32 %v734_v44, %v642_v45  ;;  %v732_v41 = vmul.f32 %v716_v6, %v634_v33  ;;  %v7412_v59 = vmul.f32 0.5, %v637_v26  ;;  %v649_v61 = vpop.f32.mrf.mxu0 }
  0xe8   : > { %9664 = vst [vmem:[#allocation17_spill] sm:$0xff] %v7410_v3  ;;  %v735_v51 = vmul.f32 %v719_v11, %v645_v54  ;;  %v701_v46 = vmul.f32 0.044715, %v637_v26  ;;  %v7414_v55 = vmul.f32 0.5, %v658_v16  ;;  %v706_v31 = vmul.f32 0.044715, %v658_v16 }
  0xe9   : > { %7008 = vtanh.f32 %v761_v42  ;;  %v766_v52 = vmul.f32 0.7978846, %v750_v49  ;;  %v748_v48 = vadd.f32 %v732_v41, %v634_v33  ;;  %v650_v47 = vadd.f32 %v7342_v63, %v649_v61  ;;  %v6738_v13 = vpop.f32.mrf.mxu0 }
  0xea   : > { %v751_v50 = vadd.f32 %v735_v51, %v645_v54  ;;  %v717_v8 = vmul.f32 %v701_v46, %v637_v26  ;;  %v722_v25 = vmul.f32 %v706_v31, %v658_v16  ;;  %v661_v44 = vadd.f32 %v6738_v13, %v7342_v63 }
  0xeb   : > { %7010 = vtanh.f32 %v766_v52  ;;  %v764_v6 = vmul.f32 0.7978846, %v748_v48  ;;  %v7418_v45 = vmul.f32 0.5, %v650_v47  ;;  %v704_v0 = vmul.f32 0.044715, %v650_v47  ;;  %v652_v11 = vpop.f32.mrf.mxu0 }
  0xec   : > { %v767_v3 = vmul.f32 0.7978846, %v751_v50  ;;  %v733_v38 = vmul.f32 %v717_v8, %v637_v26  ;;  %v738_v12 = vmul.f32 %v722_v25, %v658_v16  ;;  %v7420_v42 = vmul.f32 0.5, %v661_v44 }
  0xed   : > { %7012 = vtanh.f32 %v764_v6  ;;  %v720_v41 = vmul.f32 %v704_v0, %v650_v47  ;;  %v707_v33 = vmul.f32 0.044715, %v661_v44  ;;  %v653_v54 = vadd.f32 %v7342_v63, %v652_v11  ;;  %v6741_v51 = vpop.f32.mrf.mxu0 }
  0xee   : > { %7014 = vtanh.f32 %v767_v3  ;;  %v749_v46 = vadd.f32 %v733_v38, %v637_v26  ;;  %v754_v49 = vadd.f32 %v738_v12, %v658_v16  ;;  %v674_v61 = vadd.f32 %v6741_v51, %v7342_v63 }
  0xef   : > { %v7003_v31 = vpop.eup %7002  ;;  %v736_v52 = vmul.f32 %v720_v41, %v650_v47  ;;  %v723_v48 = vmul.f32 %v707_v33, %v661_v44  ;;  %v7424_v13 = vmul.f32 0.5, %v653_v54  ;;  %v705_v50 = vmul.f32 0.044715, %v653_v54  ;;  %v665_v8 = vpop.f32.mrf.mxu0 }
  0xf0   : > { %v794_v25 = vadd.f32 1.0, %v7003_v31  ;;  %v765_v4 = vmul.f32 0.7978846, %v749_v46  ;;  %v770_v6 = vmul.f32 0.7978846, %v754_v49  ;;  %v7426_v0 = vmul.f32 0.5, %v674_v61 }
  0xf1   : > { %v7005_v37 = vpop.eup %7004  ;;  %v752_v11 = vadd.f32 %v736_v52, %v650_v47  ;;  %v739_v57 = vmul.f32 %v723_v48, %v661_v44  ;;  %v721_v3 = vmul.f32 %v705_v50, %v653_v54  ;;  %v710_v38 = vmul.f32 0.044715, %v674_v61  ;;  %v6742_v12 = vpop.f32.mrf.mxu0 }
  0xf2   : > { %v810_v26 = vmul.f32 %v794_v25, %v7387_v56  ;;  %v792_v16 = vadd.f32 1.0, %v7005_v37  ;;  %7016 = vtanh.f32 %v765_v4  ;;  %v666_v41 = vadd.f32 %v7342_v63, %v665_v8 }
  0xf3   : > { %v7007_v33 = vpop.eup %7006  ;;  %7018 = vtanh.f32 %v770_v6  ;;  %v768_v51 = vmul.f32 0.7978846, %v752_v11  ;;  %v755_v31 = vadd.f32 %v739_v57, %v661_v44  ;;  %v737_v46 = vmul.f32 %v721_v3, %v653_v54  ;;  %v668_v37 = vpop.f32.mrf.mxu0 }
  0xf4   : > { %v6593_v49 = vpack.c.bf16 %v810_v26, %v810_v26  ;;  %v808_v47 = vmul.f32 %v792_v16, %v7389_v36  ;;  %v795_v52 = vadd.f32 1.0, %v7007_v33  ;;  %v726_v48 = vmul.f32 %v710_v38, %v674_v61 }
  0xf5   : > { %7020 = vtanh.f32 %v768_v51  ;;  %v771_v50 = vmul.f32 0.7978846, %v755_v31  ;;  %v753_v35 = vadd.f32 %v737_v46, %v653_v54  ;;  %v7431_v56 = vmul.f32 0.5, %v666_v41 }
  0xf6   : > { %v7009_v4 = vpop.eup %7008  ;;  %923 = vst.msk [vmem:[#allocation2 + $0x20] sm:$0xf] %vm824_vm2, %v6593_v49  ;;  %v6591_v8 = vpack.c.bf16 %v808_v47, %v808_v47  ;;  %v811_v57 = vmul.f32 %v795_v52, %v7394_v58  ;;  %v742_v44 = vmul.f32 %v726_v48, %v674_v61  ;;  %v708_v25 = vmul.f32 0.044715, %v666_v41 }
  0xf7   : > { %v793_v6 = vadd.f32 1.0, %v7009_v4  ;;  %7022 = vtanh.f32 %v771_v50  ;;  %v769_v11 = vmul.f32 0.7978846, %v753_v35  ;;  %v677_v36 = vadd.f32 %v6742_v12, %v7342_v63 }
  0xf8   : > { %v7011_v3 = vpop.eup %7010  ;;  %921 = vst.msk [vmem:[#allocation2 + $0x8] sm:$0xf] %vm824_vm2, %v6591_v8  ;;  %v6594_v54 = vpack.c.bf16 %v811_v57, %v811_v57  ;;  %v758_v38 = vadd.f32 %v742_v44, %v674_v61  ;;  %v724_v26 = vmul.f32 %v708_v25, %v666_v41  ;;  %v669_v16 = vadd.f32 %v7342_v63, %v668_v37 }
  0xf9   : > { %v809_v33 = vmul.f32 %v793_v6, %v7396_v62  ;;  %v798_v51 = vadd.f32 1.0, %v7011_v3  ;;  %7024 = vtanh.f32 %v769_v11  ;;  %v7439_v58 = vmul.f32 0.5, %v677_v36 }
  0xfa   : > { %v7013_v31 = vpop.eup %7012  ;;  %924 = vst.msk [vmem:[#allocation2 + $0x24] sm:$0xf] %vm824_vm2, %v6594_v54  ;;  %v774_v35 = vmul.f32 0.7978846, %v758_v38  ;;  %v740_v46 = vmul.f32 %v724_v26, %v666_v41  ;;  %v711_v12 = vmul.f32 0.044715, %v677_v36 }
  0xfb   : > { %v7442_v49 = vmul.f32 0.5, %v669_v16  ;;  %v7015_v47 = vpop.eup %7014  ;;  %v6592_v52 = vpack.c.bf16 %v809_v33, %v809_v33  ;;  %v814_v61 = vmul.f32 %v798_v51, %v7399_v9  ;;  %v796_v48 = vadd.f32 1.0, %v7013_v31 }
  0xfc   : > { %v709_v63 = vmul.f32 0.044715, %v669_v16  ;;  %v799_v50 = vadd.f32 1.0, %v7015_v47  ;;  %7026 = vtanh.f32 %v774_v35  ;;  %v756_v62 = vadd.f32 %v740_v46, %v666_v41 }
  0xfd   : > { %v727_v37 = vmul.f32 %v711_v12, %v677_v36  ;;  %922 = vst.msk [vmem:[#allocation2 + $0xc] sm:$0xf] %vm824_vm2, %v6592_v52  ;;  %v6597_v4 = vpack.c.bf16 %v814_v61, %v814_v61  ;;  %v812_v8 = vmul.f32 %v796_v48, %v7404_v7  ;;  %v7447_v44 = vld [vmem:[#allocation2 + $0x20] sm:$0xf]  ;;  %v9665_v25 = vshrl.u32 %v7352_v32, 16 }
  0xfe   : > { %v725_v57 = vmul.f32 %v709_v63, %v669_v16  ;;  %v815_v9 = vmul.f32 %v799_v50, %v7406_v43  ;;  %v772_v11 = vmul.f32 0.7978846, %v756_v62  ;;  %v7461_v54 = vshrl.u32 %v7447_v44, 16 }
  0xff   : > { %v7451_v6 = vrot.slane %v9665_v25, 11  ;;  %v743_v3 = vmul.f32 %v727_v37, %v677_v36  ;;  %v7017_v7 = vpop.eup %7016  ;;  %927 = vst.msk [vmem:[#allocation2 + $0x50] sm:$0xf] %vm824_vm2, %v6597_v4  ;;  %v6595_v38 = vpack.c.bf16 %v812_v8, %v812_v8  ;;  %v7464_v33 = vld [vmem:[#allocation2 + $0x8] sm:$0xf]  ;;  %v7467_v43 = vshll.u32 %v7447_v44, 16 }
 0x100   : > { %v741_v26 = vmul.f32 %v725_v57, %v669_v16  ;;  %v1234_v51 = vrot.slane %v7447_v44, 6  ;;  %v7019_v31 = vpop.eup %7018  ;;  %v6598_v35 = vpack.c.bf16 %v815_v9, %v815_v9  ;;  %v797_v46 = vadd.f32 1.0, %v7017_v7 }
 0x101   : > { %7028 = vtanh.f32 %v772_v11  ;;  %v759_v12 = vadd.f32 %v743_v3, %v677_v36  ;;  %925 = vst.msk [vmem:[#allocation2 + $0x38] sm:$0xf] %vm824_vm2, %v6595_v38  ;;  %v802_v47 = vadd.f32 1.0, %v7019_v31  ;;  %v1227_v61 = vrot.slane %v7464_v33, 6  ;;  %v942_v48 = vld [vmem:[#allocation2 + $0x24] sm:$0x3] }
 0x102   : > { %v757_v52 = vadd.f32 %v741_v26, %v669_v16  ;;  %v9668_v63 = vrot.slane %v7272_v15, 10  ;;  %v7021_v62 = vpop.eup %7020  ;;  %928 = vst.msk [vmem:[#allocation2 + $0x54] sm:$0xf] %vm824_vm2, %v6598_v35  ;;  %v813_v36 = vmul.f32 %v797_v46, %v7412_v59  ;;  %v1012_v4 = vshrl.u32 %v942_v48, 16 }
 0x103   : > { %v775_v37 = vmul.f32 0.7978846, %v759_v12  ;;  %v1015_v8 = vshll.u32 %v942_v48, 16  ;;  %v818_v16 = vmul.f32 %v802_v47, %v7414_v55  ;;  %v800_v57 = vadd.f32 1.0, %v7021_v62 }
 0x104   : > { %v7476_v50 = vsel %vm7456_vm5, %v9668_v63, %v1234_v51  ;;  %v773_v25 = vmul.f32 0.7978846, %v757_v52  ;;  %v9669_v15 = vrot.slane %v7279_v18, 10  ;;  %v7023_v11 = vpop.eup %7022  ;;  %v6596_v3 = vpack.c.bf16 %v813_v36, %v813_v36  ;;  %v939_v7 = vld [vmem:[#allocation2 + $0xc] sm:$0x3] }
 0x105   : > { %7030 = vtanh.f32 %v775_v37  ;;  %v1229_v38 = vrot.slane %v1227_v61, 4  ;;  %v7485_v26 = vrot.slane %v1012_v4, 5  ;;  %v6601_v59 = vpack.c.bf16 %v818_v16, %v818_v16 }
 0x106   : > { %v1228_v9 = vsel %vm7456_vm5, %v9669_v15, %v1227_v61  ;;  %v816_v31 = vmul.f32 %v800_v57, %v7418_v45  ;;  %v803_v35 = vadd.f32 1.0, %v7023_v11  ;;  %7032 = vtanh.f32 %v773_v25  ;;  %v7025_v55 = vpop.eup %7024  ;;  %926 = vst.msk [vmem:[#allocation2 + $0x3c] sm:$0xf] %vm824_vm2, %v6596_v3 }
 0x107   : > { %v984_v46 = vshrl.u32 %v939_v7, 16  ;;  %v987_v18 = vshll.u32 %v939_v7, 16  ;;  %v1230_v12 = vrot.slane %v939_v7, 6  ;;  %v1017_v47 = vrot.slane %v1015_v8, 6  ;;  %931 = vst.msk [vmem:[#allocation2 + $0x80] sm:$0xf] %vm824_vm2, %v6601_v59 }
 0x108   : > { %v6599_v52 = vpack.c.bf16 %v816_v31, %v816_v31  ;;  %v819_v63 = vmul.f32 %v803_v35, %v7420_v42  ;;  %v801_v61 = vadd.f32 1.0, %v7025_v55  ;;  %v1236_v62 = vrot.slane %v1234_v51, 4  ;;  %v7496_v11 = vld [vmem:[#allocation2 + $0x38] sm:$0xf]  ;;  %v7498_v42 = vld [vmem:[#allocation2 + $0x50] sm:$0xf] }
 0x109   : > { %v986_v36 = vrot.slane %v984_v46, 5  ;;  %v989_v37 = vrot.slane %v987_v18, 6  ;;  %v1231_v45 = vsel %vm7456_vm5, %v1229_v38, %v1230_v12  ;;  %v1018_v4 = vor.u32 %v1017_v47, %v7485_v26  ;;  %v7027_v16 = vpop.eup %7026  ;;  %v7506_v26 = vld [vmem:[#allocation2 + $0x54] sm:$0x3]  ;;  %v7527_v12 = vld [vmem:[%s9633_s3 + $0x20] sm:$0xff]  }
 0x10a   : > { %929 = vst.msk [vmem:[#allocation2 + $0x68] sm:$0xf] %vm824_vm2, %v6599_v52  ;;  %v6602_v57 = vpack.c.bf16 %v819_v63, %v819_v63  ;;  %v817_v8 = vmul.f32 %v801_v61, %v7424_v13  ;;  %v6299_v25 = vcombine.low %v1228_v9, %v1231_v45  ;;  %v1237_v15 = vrot.slane %v942_v48, 6 }
 0x10b   : > { %v806_v51 = vadd.f32 1.0, %v7027_v16  ;;  %v7501_v3 = vshrl.u32 %v7464_v33, 16  ;;  %v7504_v7 = vshll.u32 %v7464_v33, 16  ;;  %v990_v38 = vor.u32 %v989_v37, %v986_v36 }
 0x10c   : > { %932 = vst.msk [vmem:[#allocation2 + $0x84] sm:$0xf] %vm824_vm2, %v6602_v57  ;;  %v6600_v59 = vpack.c.bf16 %v817_v8, %v817_v8  ;;  %6745 = vmatprep.mubr.msk.bf16.mxu1 %vm1314_vm6, %v6299_v25  ;;  %v1238_v13 = vsel %vm7456_vm5, %v1236_v62, %v1237_v15  ;;  %v1004_v48 = vrot.slane %v7461_v54, 5  ;;  %v1007_v9 = vrot.slane %v7467_v43, 6 }
 0x10d   : > { %v822_v31 = vmul.f32 %v806_v51, %v7426_v0  ;;  %v6300_v35 = vcombine.low %v7476_v50, %v1238_v13  ;;  %v976_v46 = vrot.slane %v7501_v3, 5  ;;  %v979_v18 = vrot.slane %v7504_v7, 6  ;;  %v945_v50 = vld [vmem:[#allocation2 + $0x3c] sm:$0x3] }
 0x10e   : > { %v7029_v47 = vpop.eup %7028  ;;  %930 = vst.msk [vmem:[#allocation2 + $0x6c] sm:$0xf] %vm824_vm2, %v6600_v59  ;;  %v1008_v0 = vor.u32 %v1007_v9, %v1004_v48  ;;  %v1241_v52 = vrot.slane %v7496_v11, 6  ;;  %v1248_v63 = vrot.slane %v7498_v42, 6  ;;  %v1251_v61 = vrot.slane %v7506_v26, 6 }
 0x10f   : > { %v6605_v62 = vpack.c.bf16 %v822_v31, %v822_v31  ;;  %v804_v36 = vadd.f32 1.0, %v7029_v47  ;;  %6746 = vmatmul.mubr.msk.bf16.vlgmr.msra.gmra.mxu1 %vm1314_vm6, %v6300_v35  ;;  %v980_v37 = vor.u32 %v979_v18, %v976_v46  ;;  %v1244_v45 = vrot.slane %v945_v50, 6 }
 0x110   : > { %6780 = vmatpush3.bf16.msra.mxu1 %v7269_v14  ;;  %v1009_v16 = vsel %vm7518_vm9, %v7296_v10, %v1008_v0  ;;  %v1010_v57 = vrot.slane %v1008_v0, 4  ;;  %v9672_v8 = vrot.slane %v7288_v60, 10  ;;  %v1243_v15 = vrot.slane %v1241_v52, 4 }
 0x111   : > { %935 = vst.msk [vmem:[#allocation2 + $0xb0] sm:$0xf] %vm824_vm2, %v6605_v62  ;;  %v820_v51 = vmul.f32 %v804_v36, %v7431_v56  ;;  %v981_v59 = vsel %vm7518_vm9, %v7292_v2, %v980_v37  ;;  %v982_v14 = vrot.slane %v980_v37, 4  ;;  %v9673_v13 = vrot.slane %v7294_v5, 10  ;;  %6815 = vmatprep.subr.bf16.mxu1 %v7527_v12 }
 0x112   : > { %v1242_v25 = vsel %vm7456_vm5, %v9672_v8, %v1241_v52  ;;  %v7031_v60 = vpop.eup %7030  ;;  %v1019_v48 = vsel %vm7518_vm9, %v1010_v57, %v1018_v4  ;;  %v1245_v9 = vsel %vm7456_vm5, %v1243_v15, %v1244_v45  ;;  %v1250_v56 = vrot.slane %v1248_v63, 4  ;;  %v7569_v45 = vld [vmem:[#allocation2 + $0x80] sm:$0xf]  ;;  %v7582_v8 = vld [vmem:[#allocation2 + $0x68] sm:$0xf] }
 0x113   : > { %v1249_v10 = vsel %vm7456_vm5, %v9673_v13, %v1248_v63  ;;  %v7557_v31 = vshrl.u32 %v7496_v11, 16  ;;  %v7033_v2 = vpop.eup %7032  ;;  %v6603_v35 = vpack.c.bf16 %v820_v51, %v820_v51  ;;  %v807_v46 = vadd.f32 1.0, %v7031_v60 }
 0x114   : > { %v991_v5 = vsel %vm7518_vm9, %v982_v14, %v990_v38  ;;  %v6317_v18 = vcombine.low %v1009_v16, %v1019_v48  ;;  %v805_v47 = vadd.f32 1.0, %v7033_v2  ;;  %v6301_v52 = vcombine.low %v1242_v25, %v1245_v9  ;;  %v7574_v38 = vld [vmem:[%s9633_s3 + $0x28] sm:$0xff]  }
 0x115   : > { %v6316_v0 = vcombine.low %v981_v59, %v991_v5  ;;  %v1252_v4 = vsel %vm7456_vm5, %v1250_v56, %v1251_v61  ;;  %933 = vst.msk [vmem:[#allocation2 + $0x98] sm:$0xf] %vm824_vm2, %v6603_v35  ;;  %v823_v63 = vmul.f32 %v807_v46, %v7439_v58  ;;  %v1032_v36 = vrot.slane %v7557_v31, 5  ;;  %v951_v59 = vld [vmem:[#allocation2 + $0x6c] sm:$0x3] }
 0x116   : > { %v6302_v62 = vcombine.low %v1249_v10, %v1252_v4  ;;  %v7567_v37 = vshll.u32 %v7496_v11, 16  ;;  %v821_v16 = vmul.f32 %v805_v47, %v7442_v49  ;;  %6749 = vmatprep.mubr.msk.bf16.mxu1 %vm1314_vm6, %v6301_v52  ;;  %v1040_v58 = vshrl.u32 %v945_v50, 16  ;;  %v954_v52 = vld [vmem:[#allocation2 + $0x84] sm:$0x3] }
 0x117   : > { %6763 = vmatprep.mubr.msk.bf16.mxu0 %vm1314_vm6, %v6316_v0  ;;  %v1043_v61 = vshll.u32 %v945_v50, 16  ;;  %v7580_v57 = vshrl.u32 %v7498_v42, 16  ;;  %v6606_v25 = vpack.c.bf16 %v823_v63, %v823_v63  ;;  %v7588_v49 = vshll.u32 %v7498_v42, 16 }
 0x118   : > { %6764 = vmatmul.mubr.msk.bf16.vlgmr.msra.gmra.mxu0 %vm1314_vm6, %v6317_v18  ;;  %6750 = vmatmul.mubr.msk.bf16.gmra.mxu1 %vm1314_vm6, %v6302_v62  ;;  %v1035_v15 = vrot.slane %v7567_v37, 6  ;;  %v1068_v51 = vshrl.u32 %v7506_v26, 16  ;;  %v6604_v14 = vpack.c.bf16 %v821_v16, %v821_v16  ;;  %v1042_v50 = vrot.slane %v1040_v58, 5 }
 0x119   : > { %v1045_v13 = vrot.slane %v1043_v61, 6  ;;  %v1060_v10 = vrot.slane %v7580_v57, 5  ;;  %6798 = vmatpush3.bf16.msra.mxu0 %v7277_v17  ;;  %936 = vst.msk [vmem:[#allocation2 + $0xb4] sm:$0xf] %vm824_vm2, %v6606_v25  ;;  %v1063_v48 = vrot.slane %v7588_v49, 6  ;;  %v1071_v56 = vshll.u32 %v7506_v26, 16 }
 0x11a   : > { %v1036_v60 = vor.u32 %v1035_v15, %v1032_v36  ;;  %v1070_v9 = vrot.slane %v1068_v51, 5  ;;  %6833 = vmatprep.subr.bf16.mxu0 %v7574_v38  ;;  %934 = vst.msk [vmem:[#allocation2 + $0x9c] sm:$0xf] %vm824_vm2, %v6604_v14  ;;  %v1255_v35 = vrot.slane %v7582_v8, 6  ;;  %v1258_v46 = vrot.slane %v951_v59, 6 }
 0x11b   : > { %v1046_v2 = vor.u32 %v1045_v13, %v1042_v50  ;;  %v1262_v5 = vrot.slane %v7569_v45, 6  ;;  %v1064_v47 = vor.u32 %v1063_v48, %v1060_v10  ;;  %v1073_v0 = vrot.slane %v1071_v56, 6 }
 0x11c   : > { %v1037_v17 = vsel %vm7518_vm9, %v7308_v24, %v1036_v60  ;;  %v1038_v18 = vrot.slane %v1036_v60, 4  ;;  %v9674_v26 = vrot.slane %v7304_v20, 10  ;;  %v1257_v63 = vrot.slane %v1255_v35, 4  ;;  %v7630_v56 = vld [vmem:[#allocation2 + $0x98] sm:$0xf] }
 0x11d   : > { %v9675_v62 = vrot.slane %v7306_v21, 10  ;;  %v1264_v16 = vrot.slane %v1262_v5, 4  ;;  %v1065_v24 = vsel %vm7518_vm9, %v7302_v19, %v1064_v47  ;;  %v1066_v61 = vrot.slane %v1064_v47, 4 }
 0x11e   : > { %v1256_v4 = vsel %vm7456_vm5, %v9674_v26, %v1255_v35  ;;  %v1047_v58 = vsel %vm7518_vm9, %v1038_v18, %v1046_v2  ;;  %v1074_v25 = vor.u32 %v1073_v0, %v1070_v9  ;;  %v1259_v15 = vsel %vm7456_vm5, %v1257_v63, %v1258_v46  ;;  %v7643_v26 = vld [vmem:[#allocation2 + $0xb0] sm:$0xf] }
 0x11f   : > { %v1263_v36 = vsel %vm7456_vm5, %v9675_v62, %v1262_v5  ;;  %v6318_v20 = vcombine.low %v1037_v17, %v1047_v58  ;;  %v1265_v51 = vrot.slane %v954_v52, 6  ;;  %v7619_v21 = vshrl.u32 %v7582_v8, 16 }
 0x120   : > { %v1075_v14 = vsel %vm7518_vm9, %v1066_v61, %v1074_v25  ;;  %v6303_v50 = vcombine.low %v1256_v4, %v1259_v15  ;;  %v7624_v13 = vshll.u32 %v7582_v8, 16  ;;  %v1096_v10 = vshrl.u32 %v951_v59, 16 }
 0x121   : > { %6767 = vmatprep.mubr.msk.bf16.mxu0 %vm1314_vm6, %v6318_v20  ;;  %v6319_v19 = vcombine.low %v1065_v24, %v1075_v14  ;;  %v1266_v60 = vsel %vm7456_vm5, %v1264_v16, %v1265_v51  ;;  %v1088_v48 = vrot.slane %v7619_v21, 5  ;;  %v1099_v9 = vshll.u32 %v951_v59, 16  ;;  %v7637_v17 = vld [vmem:[#allocation2 + $0x9c] sm:$0x3]  ;;  %v960_v16 = vld [vmem:[#allocation2 + $0xb4] sm:$0x3] }
 0x122   : > { %6753 = vmatprep.mubr.msk.bf16.mxu1 %vm1314_vm6, %v6303_v50  ;;  %v6304_v2 = vcombine.low %v1263_v36, %v1266_v60  ;;  %v1091_v35 = vrot.slane %v7624_v13, 6  ;;  %v1098_v46 = vrot.slane %v1096_v10, 5  ;;  %v7635_v5 = vshrl.u32 %v7569_v45, 16 }
 0x123   : > { %6768 = vmatmul.mubr.msk.bf16.gmra.mxu0 %vm1314_vm6, %v6319_v19  ;;  %v1101_v18 = vrot.slane %v1099_v9, 6  ;;  %v7641_v47 = vshll.u32 %v7569_v45, 16  ;;  %v1124_v59 = vshrl.u32 %v954_v52, 16  ;;  %v1127_v0 = vshll.u32 %v954_v52, 16 }
 0x124   : > { %6754 = vmatmul.mubr.msk.bf16.gmra.mxu1 %vm1314_vm6, %v6304_v2  ;;  %v1092_v4 = vor.u32 %v1091_v35, %v1088_v48  ;;  %v1116_v63 = vrot.slane %v7635_v5, 5  ;;  %v1269_v62 = vrot.slane %v7630_v56, 6  ;;  %v1272_v36 = vrot.slane %v7637_v17, 6  ;;  %v7658_v48 = vld [vmem:[#allocation2 + $0xc] sm:$0x7] }
 0x125   : > { %v1102_v58 = vor.u32 %v1101_v18, %v1098_v46  ;;  %v1119_v24 = vrot.slane %v7641_v47, 6  ;;  %v1126_v61 = vrot.slane %v1124_v59, 5  ;;  %v1129_v25 = vrot.slane %v1127_v0, 6 }
 0x126   : > { %v1093_v52 = vsel %vm7518_vm9, %v7322_v39, %v1092_v4  ;;  %v1094_v20 = vrot.slane %v1092_v4, 4  ;;  %v9676_v15 = vrot.slane %v7318_v34, 10  ;;  %v1271_v14 = vrot.slane %v1269_v62, 4 }
 0x127   : > { %v1120_v50 = vor.u32 %v1119_v24, %v1116_v63  ;;  %v1130_v10 = vor.u32 %v1129_v25, %v1126_v61  ;;  %v1276_v19 = vrot.slane %v7643_v26, 6  ;;  %v1279_v60 = vrot.slane %v960_v16, 6 }
 0x128   : > { %v1270_v51 = vsel %vm7456_vm5, %v9676_v15, %v1269_v62  ;;  %v1103_v9 = vsel %vm7518_vm9, %v1094_v20, %v1102_v58  ;;  %v1273_v39 = vsel %vm7456_vm5, %v1271_v14, %v1272_v36  ;;  %v1607_v2 = vrot.slane %v7501_v3, 6 }
 0x129   : > { %v1608_v34 = vrot.slane %v7504_v7, 7  ;;  %v6320_v35 = vcombine.low %v1093_v52, %v1103_v9  ;;  %v1121_v46 = vsel %vm7518_vm9, %v7324_v40, %v1120_v50  ;;  %v1122_v18 = vrot.slane %v1120_v50, 4 }
 0x12a   : > { %v6305_v59 = vcombine.low %v1270_v51, %v1273_v39  ;;  %v9677_v0 = vrot.slane %v7316_v29, 10  ;;  %v1278_v63 = vrot.slane %v1276_v19, 4  ;;  %v1613_v36 = vshrl.u32 %v7658_v48, 16 }
 0x12b   : > { %v1609_v62 = vor.u32 %v1608_v34, %v1607_v2  ;;  %6771 = vmatprep.mubr.msk.bf16.mxu0 %vm1314_vm6, %v6320_v35  ;;  %v1131_v58 = vsel %vm7518_vm9, %v1122_v18, %v1130_v10  ;;  %v1616_v29 = vshll.u32 %v7658_v48, 16  ;;  %v7686_v24 = vshrl.u32 %v7630_v56, 16 }
 0x12c   : > { %v1277_v4 = vsel %vm7456_vm5, %v9677_v0, %v1276_v19  ;;  %6757 = vmatprep.mubr.msk.bf16.mxu1 %vm1314_vm6, %v6305_v59  ;;  %v7689_v61 = vshll.u32 %v7630_v56, 16  ;;  %v6321_v25 = vcombine.low %v1121_v46, %v1131_v58  ;;  %v1280_v52 = vsel %vm7456_vm5, %v1278_v63, %v1279_v60 }
 0x12d   : > { %v1610_v20 = vsel %vm7680_vm14, %v7312_v27, %v1609_v62  ;;  %v1611_v15 = vrot.slane %v1609_v62, 4  ;;  %v6306_v51 = vcombine.low %v1277_v4, %v1280_v52  ;;  %v1615_v14 = vrot.slane %v1613_v36, 6  ;;  %v1588_v36 = vld [vmem:[#allocation2 + $0x24] sm:$0x7] }
 0x12e   : > { %v1618_v50 = vrot.slane %v1616_v29, 7  ;;  %v1144_v10 = vrot.slane %v7686_v24, 5  ;;  %6772 = vmatmul.mubr.msk.bf16.gmra.mxu0 %vm1314_vm6, %v6321_v25  ;;  %v1147_v19 = vrot.slane %v7689_v61, 6  ;;  %v1152_v9 = vshrl.u32 %v7637_v17, 16 }
 0x12f   : > { %v1155_v39 = vshll.u32 %v7637_v17, 16  ;;  %v7702_v60 = vshrl.u32 %v7643_v26, 16  ;;  %6758 = vmatmul.mubr.msk.bf16.gmra.mxu1 %vm1314_vm6, %v6306_v51  ;;  %v7706_v2 = vshll.u32 %v7643_v26, 16  ;;  %v1180_v34 = vshrl.u32 %v960_v16, 16 }
 0x130   : > { %v1619_v27 = vor.u32 %v1618_v50, %v1615_v14  ;;  %v1183_v35 = vshll.u32 %v960_v16, 16  ;;  %v1148_v46 = vor.u32 %v1147_v19, %v1144_v10  ;;  %v1154_v18 = vrot.slane %v1152_v9, 5  ;;  %v1589_v9 = vld [vmem:[#allocation2 + $0x3c] sm:$0x7] }
 0x131   : > { %v1157_v59 = vrot.slane %v1155_v39, 6  ;;  %v1172_v0 = vrot.slane %v7702_v60, 5  ;;  %v1175_v17 = vrot.slane %v7706_v2, 6  ;;  %v1182_v63 = vrot.slane %v1180_v34, 5 }
 0x132   : > { %v1620_v4 = vsel %vm7680_vm14, %v1611_v15, %v1619_v27  ;;  %v1185_v62 = vrot.slane %v1183_v35, 6  ;;  %v1149_v29 = vsel %vm7518_vm9, %v7346_v22, %v1148_v46  ;;  %v1150_v25 = vrot.slane %v1148_v46, 4 }
 0x133   : > { %v6335_v58 = vcombine.low %v1610_v20, %v1620_v4  ;;  %v1158_v16 = vor.u32 %v1157_v59, %v1154_v18  ;;  %v1176_v52 = vor.u32 %v1175_v17, %v1172_v0  ;;  %v1981_v14 = vrot.slane %v7464_v33, 7  ;;  %v9703_v20 = vld [vmem:[#allocation15_spill] sm:$0xff] }
 0x134   : > { %v1186_v51 = vor.u32 %v1185_v62, %v1182_v63  ;;  %v1984_v50 = vrot.slane %v7658_v48, 7  ;;  %v1630_v22 = vrot.slane %v7461_v54, 6  ;;  %v1631_v10 = vrot.slane %v7467_v43, 7 }
 0x135   : > { %6781 = vmatprep.mubr.msk.bf16.mxu1 %vm1314_vm6, %v6335_v58  ;;  %v1159_v15 = vsel %vm7518_vm9, %v1150_v25, %v1158_v16  ;;  %v1636_v19 = vshrl.u32 %v1588_v36, 16  ;;  %v1177_v48 = vsel %vm7518_vm9, %v7348_v23, %v1176_v52  ;;  %v1178_v27 = vrot.slane %v1176_v52, 4 }
 0x136   : > { %v6322_v39 = vcombine.low %v1149_v29, %v1159_v15  ;;  %v9682_v34 = vrot.slane %v7314_v28, 11  ;;  %v1983_v46 = vrot.slane %v1981_v14, 4  ;;  %v1632_v18 = vor.u32 %v1631_v10, %v1630_v22 }
 0x137   : > { %v1638_v59 = vrot.slane %v1636_v19, 6  ;;  %v1639_v0 = vshll.u32 %v1588_v36, 16  ;;  %v1187_v4 = vsel %vm7518_vm9, %v1178_v27, %v1186_v51  ;;  %v1653_v17 = vrot.slane %v7557_v31, 6 }
 0x138   : > { %v1982_v35 = vsel %vm7722_vm15, %v9682_v34, %v1981_v14  ;;  %6775 = vmatprep.mubr.msk.bf16.mxu0 %vm1314_vm6, %v6322_v39  ;;  %v1654_v63 = vrot.slane %v7567_v37, 7  ;;  %v1659_v23 = vshrl.u32 %v1589_v9, 16  ;;  %v6323_v62 = vcombine.low %v1177_v48, %v1187_v4  ;;  %v1590_v48 = vld [vmem:[#allocation2 + $0x54] sm:$0x7] }
 0x139   : > { %v1985_v28 = vsel %vm7722_vm15, %v1983_v46, %v1984_v50  ;;  %v1633_v58 = vsel %vm7680_vm14, %v7290_v1, %v1632_v18  ;;  %v1634_v29 = vrot.slane %v1632_v18, 4  ;;  %v1641_v16 = vrot.slane %v1639_v0, 7 }
 0x13a   : > { %v6362_v25 = vcombine.low %v1982_v35, %v1985_v28  ;;  %v1655_v52 = vor.u32 %v1654_v63, %v1653_v17  ;;  %v1661_v14 = vrot.slane %v1659_v23, 6  ;;  %6776 = vmatmul.mubr.msk.bf16.gmra.mxu0 %vm1314_vm6, %v6323_v62  ;;  %v1662_v51 = vshll.u32 %v1589_v9, 16  ;;  %v7769_v62 = vld [vmem:[%s9633_s3 + $0x30] sm:$0xff]  }
 0x13b   : > { %v1988_v15 = vrot.slane %v7447_v44, 7  ;;  %v1991_v22 = vrot.slane %v1588_v36, 7  ;;  %v1995_v10 = vrot.slane %v7496_v11, 7  ;;  %v1642_v50 = vor.u32 %v1641_v16, %v1638_v59  ;;  %v9684_v36 = vld [vmem:[#allocation5_spill] sm:$0xff] }
 0x13c   : > { %6799 = vmatprep.mubr.msk.bf16.mxu0 %vm1314_vm6, %v6362_v25  ;;  %v1656_v1 = vsel %vm7680_vm14, %v7350_v30, %v1655_v52  ;;  %v1657_v19 = vrot.slane %v1655_v52, 4  ;;  %v1998_v39 = vrot.slane %v1589_v9, 7  ;;  %v1664_v27 = vrot.slane %v1662_v51, 7  ;;  %v1591_v52 = vld [vmem:[#allocation2 + $0x6c] sm:$0x7] }
 0x13d   : > { %v9683_v34 = vrot.slane %v7335_v53, 11  ;;  %v1990_v46 = vrot.slane %v1988_v15, 4  ;;  %v9685_v18 = vrot.slane %v9684_v36, 11  ;;  %v1643_v59 = vsel %vm7680_vm14, %v1634_v29, %v1642_v50 }
 0x13e   : > { %v1997_v4 = vrot.slane %v1995_v10, 4  ;;  %v1676_v30 = vrot.slane %v7580_v57, 6  ;;  %v1677_v9 = vrot.slane %v7588_v49, 7  ;;  %v6336_v17 = vcombine.low %v1633_v58, %v1643_v59 }
 0x13f   : > { %v1989_v35 = vsel %vm7722_vm15, %v9683_v34, %v1988_v15  ;;  %v1996_v0 = vsel %vm7722_vm15, %v9685_v18, %v1995_v10  ;;  %v1665_v63 = vor.u32 %v1664_v27, %v1661_v14  ;;  %v1992_v53 = vsel %vm7722_vm15, %v1990_v46, %v1991_v22  ;;  %v9686_v10 = vld [vmem:[#allocation10_spill] sm:$0xff]  ;;  %v7784_v34 = vld [vmem:[%s9633_s3 + $0x38] sm:$0xff]  }
 0x140   : > { %v1682_v23 = vshrl.u32 %v1590_v48, 16  ;;  %v6363_v28 = vcombine.low %v1989_v35, %v1992_v53  ;;  %v1999_v29 = vsel %vm7722_vm15, %v1997_v4, %v1998_v39  ;;  %v1678_v25 = vor.u32 %v1677_v9, %v1676_v30  ;;  %6782 = vmatmul.mubr.msk.bf16.vlgmr.msra.gmra.mxu1 %vm1314_vm6, %v6336_v17 }
 0x141   : > { %v1685_v16 = vshll.u32 %v1590_v48, 16  ;;  %v1666_v58 = vsel %vm7680_vm14, %v1657_v19, %v1665_v63  ;;  %v6364_v14 = vcombine.low %v1996_v0, %v1999_v29  ;;  %v1699_v15 = vrot.slane %v7619_v21, 6  ;;  %6816 = vmatpush3.bf16.msra.mxu1 %v7527_v12 }
 0x142   : > { %v1684_v51 = vrot.slane %v1682_v23, 6  ;;  %v6337_v22 = vcombine.low %v1656_v1, %v1666_v58  ;;  %v1679_v50 = vsel %vm7680_vm14, %v9686_v10, %v1678_v25  ;;  %v1680_v39 = vrot.slane %v1678_v25, 4  ;;  %6800 = vmatmul.mubr.msk.bf16.vlgmr.msra.gmra.mxu0 %vm1314_vm6, %v6363_v28  ;;  %6851 = vmatprep.subr.bf16.mxu1 %v7769_v62  ;;  %v9688_v23 = vld [vmem:[#allocation6_spill] sm:$0xff]  ;;  %v1592_v25 = vld [vmem:[#allocation2 + $0x84] sm:$0x7] }
 0x143   : > { %v1687_v27 = vrot.slane %v1685_v16, 7  ;;  %v1700_v19 = vrot.slane %v7624_v13, 7  ;;  %v1705_v35 = vshrl.u32 %v1591_v52, 16  ;;  %v1708_v46 = vshll.u32 %v1591_v52, 16  ;;  %6803 = vmatprep.mubr.msk.bf16.mxu0 %vm1314_vm6, %v6364_v14  ;;  %6834 = vmatpush3.bf16.msra.mxu0 %v7574_v38  ;;  %v1593_v10 = vld [vmem:[#allocation2 + $0x9c] sm:$0x7] }
 0x144   : > { %v2002_v12 = vrot.slane %v7498_v42, 7  ;;  %6785 = vmatprep.mubr.msk.bf16.mxu1 %vm1314_vm6, %v6337_v22  ;;  %v2005_v36 = vrot.slane %v1590_v48, 7  ;;  %v2009_v18 = vrot.slane %v7582_v8, 7  ;;  %v2012_v0 = vrot.slane %v1591_v52, 7  ;;  %6869 = vmatprep.subr.bf16.mxu0 %v7784_v34 }
 0x145   : > { %v1688_v1 = vor.u32 %v1687_v27, %v1684_v51  ;;  %v1701_v59 = vor.u32 %v1700_v19, %v1699_v15  ;;  %v1707_v4 = vrot.slane %v1705_v35, 6  ;;  %v1710_v30 = vrot.slane %v1708_v46, 7 }
 0x146   : > { %v9687_v9 = vrot.slane %v7352_v32, 11  ;;  %v2004_v53 = vrot.slane %v2002_v12, 4  ;;  %v9689_v28 = vrot.slane %v9688_v23, 11  ;;  %v2011_v29 = vrot.slane %v2009_v18, 4  ;;  %v9690_v32 = vld [vmem:[#allocation11_spill] sm:$0xff] }
 0x147   : > { %v1689_v63 = vsel %vm7680_vm14, %v1680_v39, %v1688_v1  ;;  %v1702_v52 = vsel %vm7680_vm14, %v9690_v32, %v1701_v59  ;;  %v1703_v58 = vrot.slane %v1701_v59, 4  ;;  %v1711_v38 = vor.u32 %v1710_v30, %v1707_v4  ;;  %v9691_v4 = vld [vmem:[#allocation13_spill] sm:$0xff] }
 0x148   : > { %v2003_v17 = vsel %vm7722_vm15, %v9687_v9, %v2002_v12  ;;  %v2010_v48 = vsel %vm7722_vm15, %v9689_v28, %v2009_v18  ;;  %v6338_v16 = vcombine.low %v1679_v50, %v1689_v63  ;;  %v2006_v14 = vsel %vm7722_vm15, %v2004_v53, %v2005_v36 }
 0x149   : > { %v2013_v51 = vsel %vm7722_vm15, %v2011_v29, %v2012_v0  ;;  %v1722_v15 = vrot.slane %v7635_v5, 6  ;;  %v1723_v22 = vrot.slane %v7641_v47, 7  ;;  %v1712_v50 = vsel %vm7680_vm14, %v1703_v58, %v1711_v38 }
 0x14a   : > { %6786 = vmatmul.mubr.msk.bf16.gmra.mxu1 %vm1314_vm6, %v6338_v16  ;;  %v6365_v39 = vcombine.low %v2003_v17, %v2006_v14  ;;  %v6366_v27 = vcombine.low %v2010_v48, %v2013_v51  ;;  %v1728_v19 = vshrl.u32 %v1592_v25, 16  ;;  %v6339_v35 = vcombine.low %v1702_v52, %v1712_v50  ;;  %v9692_v16 = vld [vmem:[#allocation7_spill] sm:$0xff]  ;;  %v9694_v14 = vld [vmem:[#allocation16_spill] sm:$0xff] }
 0x14b   : > { %v1724_v46 = vor.u32 %v1723_v22, %v1722_v15  ;;  %v1731_v12 = vshll.u32 %v1592_v25, 16  ;;  %v1745_v1 = vrot.slane %v7686_v24, 6  ;;  %v1746_v18 = vrot.slane %v7689_v61, 7 }
 0x14c   : > { %6804 = vmatmul.mubr.msk.bf16.gmra.mxu0 %vm1314_vm6, %v6365_v39  ;;  %v1730_v36 = vrot.slane %v1728_v19, 6  ;;  %v1751_v0 = vshrl.u32 %v1593_v10, 16  ;;  %v1754_v59 = vshll.u32 %v1593_v10, 16  ;;  %vm2214_vm2 = vsmask.f32 4368  ;;  %6789 = vmatprep.mubr.msk.bf16.mxu1 %vm1314_vm6, %v6339_v35  ;;  %v9695_v19 = vld [vmem:[#allocation9_spill] sm:$0xff] }
 0x14d   : > { %6807 = vmatprep.mubr.msk.bf16.mxu0 %vm1314_vm6, %v6366_v27  ;;  %v1725_v30 = vsel %vm7680_vm14, %v9691_v4, %v1724_v46  ;;  %v1726_v9 = vrot.slane %v1724_v46, 4  ;;  %v1733_v17 = vrot.slane %v1731_v12, 7  ;;  %v2016_v63 = vrot.slane %v7569_v45, 7  ;;  %v1594_v39 = vld [vmem:[#allocation2 + $0xb4] sm:$0x7]  ;;  %vm7862_vm3 = vmor %vm2213_vm0, %vm2214_vm2 }
 0x14e   : > { %v1747_v53 = vor.u32 %v1746_v18, %v1745_v1  ;;  %v1753_v23 = vrot.slane %v1751_v0, 6  ;;  %v1756_v28 = vrot.slane %v1754_v59, 7  ;;  %v2019_v48 = vrot.slane %v1592_v25, 7  ;;  %v2205_v1 = vld [vmem:[#allocation2 + $0xc] sm:$0xf] }
 0x14f   : > { %v1734_v29 = vor.u32 %v1733_v17, %v1730_v36  ;;  %v9693_v32 = vrot.slane %v9692_v16, 11  ;;  %v2018_v58 = vrot.slane %v2016_v63, 4  ;;  %v2023_v38 = vrot.slane %v7630_v56, 7 }
 0x150   : > { %v1748_v51 = vsel %vm7680_vm14, %v9694_v14, %v1747_v53  ;;  %v1749_v15 = vrot.slane %v1747_v53, 4  ;;  %v1757_v22 = vor.u32 %v1756_v28, %v1753_v23  ;;  %v2026_v50 = vrot.slane %v1593_v10, 7  ;;  %v7855_v14 = vld [vmem:[#allocation2 + $0x24] sm:$0xf] }
 0x151   : > { %v2017_v52 = vsel %vm7722_vm15, %v9693_v32, %v2016_v63  ;;  %v1735_v25 = vsel %vm7680_vm14, %v1726_v9, %v1734_v29  ;;  %v2020_v27 = vsel %vm7722_vm15, %v2018_v58, %v2019_v48  ;;  %v9696_v35 = vrot.slane %v9695_v19, 11 }
 0x152   : > { %v2025_v12 = vrot.slane %v2023_v38, 4  ;;  %v6340_v36 = vcombine.low %v1725_v30, %v1735_v25  ;;  %v1758_v18 = vsel %vm7680_vm14, %v1749_v15, %v1757_v22  ;;  %v6367_v0 = vcombine.low %v2017_v52, %v2020_v27 }
 0x153   : > { %v2024_v46 = vsel %vm7722_vm15, %v9696_v35, %v2023_v38  ;;  %v1768_v10 = vrot.slane %v7702_v60, 6  ;;  %v6341_v59 = vcombine.low %v1748_v51, %v1758_v18  ;;  %v1769_v9 = vrot.slane %v7706_v2, 7  ;;  %v9697_v51 = vld [vmem:[#allocation14_spill] sm:$0xff]  ;;  %v9702_v35 = vld [vmem:[#allocation8_spill] sm:$0xff] }
 0x154   : > { %v2027_v4 = vsel %vm7722_vm15, %v2025_v12, %v2026_v50  ;;  %v1774_v17 = vshrl.u32 %v1594_v39, 16  ;;  %6790 = vmatmul.mubr.msk.bf16.gmra.mxu1 %vm1314_vm6, %v6340_v36  ;;  %6808 = vmatmul.mubr.msk.bf16.gmra.mxu0 %vm1314_vm6, %v6367_v0  ;;  %v1777_v53 = vshll.u32 %v1594_v39, 16  ;;  %v2221_v30 = vrot.slane %v7501_v3, 7  ;;  %v9700_v50 = vld [vmem:[#allocation12_spill] sm:$0xff] }
 0x155   : > { %v6368_v63 = vcombine.low %v2024_v46, %v2027_v4  ;;  %v2226_v23 = vshrl.u32 %v2205_v1, 16  ;;  %6793 = vmatprep.mubr.msk.bf16.mxu1 %vm1314_vm6, %v6341_v59  ;;  %v1770_v28 = vor.u32 %v1769_v9, %v1768_v10  ;;  %v2229_v29 = vshll.u32 %v2205_v1, 16 }
 0x156   : > { %v1776_v48 = vrot.slane %v1774_v17, 6  ;;  %v2030_v16 = vrot.slane %v7643_v26, 7  ;;  %v1779_v32 = vrot.slane %v1777_v53, 7  ;;  %v2222_v52 = vor.u32 %v2221_v30, %v7504_v7 }
 0x157   : > { %6811 = vmatprep.mubr.msk.bf16.mxu0 %vm1314_vm6, %v6368_v63  ;;  %v2224_v58 = vrot.slane %v2221_v30, 4  ;;  %v2228_v38 = vrot.slane %v2226_v23, 7  ;;  %v1771_v3 = vsel %vm7680_vm14, %v9697_v51, %v1770_v28  ;;  %v1772_v15 = vrot.slane %v1770_v28, 4  ;;  %v7883_v63 = vld [vmem:[#allocation2 + $0x3c] sm:$0xf] }
 0x158   : > { %v9701_v25 = vrot.slane %v9700_v50, 11  ;;  %v2032_v27 = vrot.slane %v2030_v16, 4  ;;  %v1780_v19 = vor.u32 %v1779_v32, %v1776_v48  ;;  %v2223_v46 = vsel %vm7862_vm3, %v9702_v35, %v2222_v52  ;;  %v9704_v52 = vld [vmem:[#allocation17_spill] sm:$0xff] }
 0x159   : > { %v2231_v12 = vor.u32 %v2229_v29, %v2228_v38  ;;  %v2033_v36 = vrot.slane %v1594_v39, 7  ;;  %v6408_v18 = vcombine.low %v7464_v33, %v2205_v1  ;;  %v2238_v0 = vrot.slane %v7461_v54, 7  ;;  %v7888_v29 = vld [vmem:[#allocation2 + $0x54] sm:$0xf] }
 0x15a   : > { %v2031_v7 = vsel %vm7722_vm15, %v9701_v25, %v2030_v16  ;;  %v2243_v10 = vshrl.u32 %v7855_v14, 16  ;;  %v2246_v59 = vshll.u32 %v7855_v14, 16  ;;  %v1781_v4 = vsel %vm7680_vm14, %v1772_v15, %v1780_v19 }
 0x15b   : > { %v2232_v9 = vsel %vm7862_vm3, %v2224_v58, %v2231_v12  ;;  %v2034_v17 = vsel %vm7722_vm15, %v2032_v27, %v2033_v36  ;;  %v2255_v39 = vrot.slane %v7557_v31, 7  ;;  %v6342_v33 = vcombine.low %v1771_v3, %v1781_v4 }
 0x15c   : > { %v6389_v1 = vcombine.low %v2223_v46, %v2232_v9  ;;  %v6369_v54 = vcombine.low %v2031_v7, %v2034_v17  ;;  %v2239_v53 = vor.u32 %v2238_v0, %v7467_v43  ;;  %v2241_v30 = vrot.slane %v2238_v0, 4 }
 0x15d   : > { %v2245_v23 = vrot.slane %v2243_v10, 7  ;;  %v2256_v28 = vor.u32 %v2255_v39, %v7567_v37  ;;  %v2258_v48 = vrot.slane %v2255_v39, 4  ;;  %6794 = vmatmul.mubr.msk.bf16.gmra.mxu1 %vm1314_vm6, %v6342_v33  ;;  %v2260_v16 = vshrl.u32 %v7883_v63, 16  ;;  %v7934_v39 = vld [vmem:[%s9633_s3 + $0x40] sm:$0xff]   ;;  %v7939_v33 = vld [vmem:[%s9633_s3 + $0x48] sm:$0xff]  }
 0x15e   : > { %6812 = vmatmul.mubr.msk.bf16.gmra.mxu0 %vm1314_vm6, %v6369_v54  ;;  %v2240_v31 = vsel %vm7862_vm3, %v9703_v20, %v2239_v53  ;;  %v2263_v32 = vshll.u32 %v7883_v63, 16  ;;  %v6409_v43 = vcombine.low %v7447_v44, %v7855_v14  ;;  %6817 = vmatprep.mubr.msk.bf16.mxu1 %vm1314_vm6, %v6389_v1  ;;  %v6410_v38 = vcombine.low %v7496_v11, %v7883_v63  ;;  %v7909_v44 = vld [vmem:[#allocation2 + $0x6c] sm:$0xf]  ;;  %v7106_v14 = vld [vmem:[#allocation2 + $0x64] sm:$0x8] }
 0x15f   : > { %6835 = vmatprep.mubr.msk.bf16.mxu0 %vm1314_vm6, %v6408_v18  ;;  %v2248_v37 = vor.u32 %v2246_v59, %v2245_v23  ;;  %v2257_v58 = vsel %vm7862_vm3, %v9704_v52, %v2256_v28  ;;  %v2272_v51 = vrot.slane %v7580_v57, 7  ;;  %v2262_v3 = vrot.slane %v2260_v16, 7  ;;  %v7920_v59 = vld [vmem:[#allocation2 + $0x84] sm:$0xf]  ;;  %v7107_v1 = vld [vmem:[#allocation2 + $0x7c] sm:$0x8] }
 0x160   : > { %v2277_v15 = vshrl.u32 %v7888_v29, 16  ;;  %v2280_v50 = vshll.u32 %v7888_v29, 16  ;;  %v2285_v25 = vshrl.u32 %v7106_v14, 16  ;;  %v2289_v35 = vrot.slane %v7619_v21, 7 }
 0x161   : > { %v2249_v7 = vsel %vm7862_vm3, %v2241_v30, %v2248_v37  ;;  %v2273_v27 = vor.u32 %v2272_v51, %v7588_v49  ;;  %v2275_v19 = vrot.slane %v2272_v51, 4  ;;  %v2265_v46 = vor.u32 %v2263_v32, %v2262_v3  ;;  %v7947_v30 = vld [vmem:[#allocation2 + $0x9c] sm:$0xf] }
 0x162   : > { %v6390_v11 = vcombine.low %v2240_v31, %v2249_v7  ;;  %v2279_v57 = vrot.slane %v2277_v15, 7  ;;  %v6383_v12 = vrot.slane %v2285_v25, 11  ;;  %v2290_v18 = vor.u32 %v2289_v35, %v7624_v13  ;;  %v7109_v25 = vld [vmem:[#allocation2 + $0xac] sm:$0x8] }
 0x163   : > { %v2274_v36 = vsel %vm7862_vm3, %v7451_v6, %v2273_v27  ;;  %v2292_v0 = vrot.slane %v2289_v35, 4  ;;  %v2294_v10 = vshrl.u32 %v7909_v44, 16  ;;  %v2266_v49 = vsel %vm7862_vm3, %v2258_v48, %v2265_v46  ;;  %v7977_v46 = vld [vmem:[#allocation2 + $0xc] sm:$0xf] }
 0x164   : > { %v2282_v4 = vor.u32 %v2280_v50, %v2279_v57  ;;  %v2297_v21 = vshll.u32 %v7909_v44, 16  ;;  %v6411_v9 = vcombine.low %v7498_v42, %v7888_v29  ;;  %v6391_v17 = vcombine.low %v2257_v58, %v2266_v49  ;;  %v7108_v29 = vld [vmem:[#allocation2 + $0x94] sm:$0x8] }
 0x165   : > { %v2291_v6 = vsel %vm7862_vm3, %v6383_v12, %v2290_v18  ;;  %v2296_v63 = vrot.slane %v2294_v10, 7  ;;  %v6412_v13 = vcombine.low %v7582_v8, %v7909_v44  ;;  %6818 = vmatmul.mubr.msk.bf16.vlgmr.msra.gmra.mxu1 %vm1314_vm6, %v6390_v11  ;;  %v2302_v54 = vshrl.u32 %v7107_v1, 16 }
 0x166   : > { %6836 = vmatmul.mubr.msk.bf16.vlgmr.msra.gmra.mxu0 %vm1314_vm6, %v6409_v43  ;;  %v2283_v42 = vsel %vm7862_vm3, %v2275_v19, %v2282_v4  ;;  %v2306_v8 = vrot.slane %v7635_v5, 7  ;;  %v2311_v53 = vshrl.u32 %v7920_v59, 16  ;;  %6852 = vmatpush3.bf16.msra.mxu1 %v7769_v62  ;;  %v2314_v48 = vshll.u32 %v7920_v59, 16  ;;  %v2700_v19 = vld [vmem:[#allocation2 + $0x8] sm:$0xf] }
 0x167   : > { %6821 = vmatprep.mubr.msk.bf16.mxu1 %vm1314_vm6, %v6391_v17  ;;  %v6392_v23 = vcombine.low %v2274_v36, %v2283_v42  ;;  %v2299_v28 = vor.u32 %v2297_v21, %v2296_v63  ;;  %v2319_v20 = vshrl.u32 %v7108_v29, 16  ;;  %6839 = vmatprep.mubr.msk.bf16.mxu0 %vm1314_vm6, %v6410_v38  ;;  %v6384_v31 = vrot.slane %v2302_v54, 11  ;;  %v2702_v4 = vld [vmem:[#allocation2 + $0x10] sm:$0x1] }
 0x168   : > { %v2307_v16 = vor.u32 %v2306_v8, %v7641_v47  ;;  %v2309_v5 = vrot.slane %v2306_v8, 4  ;;  %v2313_v32 = vrot.slane %v2311_v53, 7  ;;  %6870 = vmatpush3.bf16.msra.mxu0 %v7784_v34  ;;  %v2323_v37 = vrot.slane %v7686_v24, 7  ;;  %6887 = vmatprep.subr.bf16.mxu1 %v7934_v39  ;;  %v7964_v34 = vld [vmem:[#allocation2 + $0xb4] sm:$0xf] }
 0x169   : > { %v2300_v62 = vsel %vm7862_vm3, %v2292_v0, %v2299_v28  ;;  %v6385_v43 = vrot.slane %v2319_v20, 11  ;;  %v2328_v52 = vshrl.u32 %v7947_v30, 16  ;;  %6905 = vmatprep.subr.bf16.mxu0 %v7939_v33  ;;  %v2331_v51 = vshll.u32 %v7947_v30, 16  ;;  %v2703_v8 = vld [vmem:[#allocation2 + $0x20] sm:$0xf] }
 0x16a   : > { %v6393_v58 = vcombine.low %v2291_v6, %v2300_v62  ;;  %v2308_v47 = vsel %vm7862_vm3, %v6384_v31, %v2307_v16  ;;  %v2316_v38 = vor.u32 %v2314_v48, %v2313_v32  ;;  %v2324_v3 = vor.u32 %v2323_v37, %v7689_v61  ;;  %v8003_v28 = vld [vmem:[#allocation2 + $0x24] sm:$0xf]  ;;  %v8011_v32 = vld [vmem:[#allocation2 + $0x28] sm:$0x1] }
 0x16b   : > { %v2326_v15 = vrot.slane %v2323_v37, 4  ;;  %v2330_v50 = vrot.slane %v2328_v52, 7  ;;  %v6413_v24 = vcombine.low %v7569_v45, %v7920_v59  ;;  %v6414_v14 = vcombine.low %v7630_v56, %v7947_v30 }
 0x16c   : > { %v2317_v44 = vsel %vm7862_vm3, %v2309_v5, %v2316_v38  ;;  %v2336_v7 = vshrl.u32 %v7109_v25, 16  ;;  %v2340_v27 = vrot.slane %v7702_v60, 7  ;;  %v2325_v61 = vsel %vm7862_vm3, %v6385_v43, %v2324_v3  ;;  %v2706_v38 = vld [vmem:[#allocation2 + $0x38] sm:$0xf] }
 0x16d   : > { %v6394_v35 = vcombine.low %v2308_v47, %v2317_v44  ;;  %v2333_v11 = vor.u32 %v2331_v51, %v2330_v50  ;;  %v2345_v45 = vshrl.u32 %v7964_v34, 16  ;;  %6822 = vmatmul.mubr.msk.bf16.gmra.mxu1 %vm1314_vm6, %v6392_v23  ;;  %v2348_v60 = vshll.u32 %v7964_v34, 16  ;;  %v8033_v50 = vld [vmem:[#allocation2 + $0x3c] sm:$0xf] }
 0x16e   : > { %6840 = vmatmul.mubr.msk.bf16.gmra.mxu0 %vm1314_vm6, %v6411_v9  ;;  %v6386_v57 = vrot.slane %v2336_v7, 11  ;;  %v2341_v56 = vor.u32 %v2340_v27, %v7706_v2  ;;  %v2343_v12 = vrot.slane %v2340_v27, 4  ;;  %6825 = vmatprep.mubr.msk.bf16.mxu1 %vm1314_vm6, %v6393_v58  ;;  %v2728_v0 = vshrl.u32 %v2700_v19, 16 }
 0x16f   : > { %6843 = vmatprep.mubr.msk.bf16.mxu0 %vm1314_vm6, %v6412_v13  ;;  %v2334_v36 = vsel %vm7862_vm3, %v2326_v15, %v2333_v11  ;;  %v2347_v18 = vrot.slane %v2345_v45, 7  ;;  %v2731_v10 = vshll.u32 %v2700_v19, 16  ;;  %v7990_v2 = vshll.u32 %v7977_v46, 16  ;;  %v7995_v13 = vld [vmem:[#allocation2 + $0x8] sm:$0xe] }
 0x170   : > { %v6395_v59 = vcombine.low %v2325_v61, %v2334_v36  ;;  %v2342_v49 = vsel %vm7862_vm3, %v6386_v57, %v2341_v56  ;;  %v7993_v21 = vshrl.u32 %v7977_v46, 16  ;;  %v2730_v17 = vrot.slane %v2728_v0, 4  ;;  %v8042_v61 = vld [vmem:[#allocation2 + $0x20] sm:$0xe]  ;;  %v2708_v45 = vld [vmem:[#allocation2 + $0x40] sm:$0x1] }
 0x171   : > { %v2350_v9 = vor.u32 %v2348_v60, %v2347_v18  ;;  %v2733_v6 = vrot.slane %v2731_v10, 5  ;;  %v2747_v63 = vshll.u32 %v2702_v4, 16  ;;  %v2739_v42 = vrot.slane %v7990_v2, 5  ;;  %v8050_v10 = vld [vmem:[#allocation2 + $0x38] sm:$0xe] }
 0x172   : > { %v2743_v1 = vrot.slane %v7993_v21, 4  ;;  %v6415_v54 = vcombine.low %v7643_v26, %v7964_v34  ;;  %v6444_v20 = vrot.slane %v7995_v13, 9  ;;  %v3126_v31 = vrot.slane %v7977_v46, 5 }
 0x173   : > { %v2351_v53 = vsel %vm7862_vm3, %v2343_v12, %v2350_v9  ;;  %v2734_v30 = vor.u32 %v2733_v6, %v2730_v17  ;;  %v2749_v23 = vrot.slane %v2747_v63, 5  ;;  %v3129_v26 = vrot.slane %v2702_v4, 5 }
 0x174   : > { %v6396_v48 = vcombine.low %v2342_v49, %v2351_v53  ;;  %v2744_v29 = vor.u32 %v2743_v1, %v2739_v42  ;;  %v2752_v22 = vshrl.u32 %v2703_v8, 16  ;;  %v2755_v62 = vshll.u32 %v2703_v8, 16 }
 0x175   : > { %v2735_v16 = vrot.slane %v2734_v30, 4  ;;  %6826 = vmatmul.mubr.msk.bf16.gmra.mxu1 %vm1314_vm6, %v6394_v35  ;;  %v3127_v52 = vsel %vm8007_vm11, %v6444_v20, %v3126_v31  ;;  %v3128_v58 = vrot.slane %v3126_v31, 4  ;;  %v8024_v47 = vshll.u32 %v8003_v28, 16 }
 0x176   : > { %6844 = vmatmul.mubr.msk.bf16.gmra.mxu0 %vm1314_vm6, %v6413_v24  ;;  %v2745_v37 = vrot.slane %v2744_v29, 4  ;;  %6829 = vmatprep.mubr.msk.bf16.mxu1 %vm1314_vm6, %v6395_v59  ;;  %v2754_v34 = vrot.slane %v2752_v22, 4  ;;  %v2757_v3 = vrot.slane %v2755_v62, 5  ;;  %v8031_v15 = vshrl.u32 %v8003_v28, 16 }
 0x177   : > { %6847 = vmatprep.mubr.msk.bf16.mxu0 %vm1314_vm6, %v6414_v14  ;;  %v2740_v51 = vsel %vm8017_vm12, %v2735_v16, %v2739_v42  ;;  %v3130_v44 = vsel %vm8007_vm11, %v3128_v58, %v3129_v26  ;;  %v2763_v25 = vrot.slane %v8024_v47, 5  ;;  %v2771_v14 = vshll.u32 %v8011_v32, 16 }
 0x178   : > { %v2750_v24 = vsel %vm8017_vm12, %v2745_v37, %v2749_v23  ;;  %v6454_v27 = vcombine.low %v3127_v52, %v3130_v44  ;;  %v2758_v19 = vor.u32 %v2757_v3, %v2754_v34  ;;  %v2767_v35 = vrot.slane %v8031_v15, 4  ;;  %v2709_v23 = vld [vmem:[#allocation2 + $0x50] sm:$0xf] }
 0x179   : > { %v6427_v7 = vcombine.low %v2740_v51, %v2750_v24  ;;  %v2773_v11 = vrot.slane %v2771_v14, 5  ;;  %v2776_v57 = vshrl.u32 %v2706_v38, 16  ;;  %v2779_v56 = vshll.u32 %v2706_v38, 16  ;;  %v2712_v24 = vld [vmem:[#allocation2 + $0x68] sm:$0xf] }
 0x17a   : > { %v8045_v12 = vshll.u32 %v8033_v50, 16  ;;  %v2759_v60 = vrot.slane %v2758_v19, 4  ;;  %v2768_v36 = vor.u32 %v2767_v35, %v2763_v25  ;;  %v8048_v18 = vshrl.u32 %v8033_v50, 16 }
 0x17b   : > { %v2795_v0 = vshll.u32 %v2708_v45, 16  ;;  %v2778_v59 = vrot.slane %v2776_v57, 4  ;;  %v2781_v49 = vrot.slane %v2779_v56, 5  ;;  %v6445_v9 = vrot.slane %v8042_v61, 9  ;;  %v8087_v56 = vld [vmem:[#allocation2 + $0x70] sm:$0x1] }
 0x17c   : > { %v2787_v4 = vrot.slane %v8045_v12, 5  ;;  %v2764_v17 = vsel %vm8017_vm12, %v2759_v60, %v2763_v25  ;;  %v2769_v6 = vrot.slane %v2768_v36, 4  ;;  %v2791_v63 = vrot.slane %v8048_v18, 4 }
 0x17d   : > { %v2797_v42 = vrot.slane %v2795_v0, 5  ;;  %6830 = vmatmul.mubr.msk.bf16.gmra.mxu1 %vm1314_vm6, %v6396_v48  ;;  %v2782_v1 = vor.u32 %v2781_v49, %v2778_v59  ;;  %v3133_v8 = vrot.slane %v8003_v28, 5  ;;  %v3136_v53 = vrot.slane %v8011_v32, 5  ;;  %v8095_v49 = vld [vmem:[%s9633_s3 + $0x50] sm:$0xff]  }
 0x17e   : > { %6848 = vmatmul.mubr.msk.bf16.gmra.mxu0 %vm1314_vm6, %v6415_v54  ;;  %v6446_v30 = vrot.slane %v8050_v10, 9  ;;  %6853 = vmatprep.mubr.msk.bf16.mxu1 %vm1314_vm6, %v6427_v7  ;;  %v2774_v29 = vsel %vm8017_vm12, %v2769_v6, %v2773_v11  ;;  %v2792_v20 = vor.u32 %v2791_v63, %v2787_v4  ;;  %v3140_v48 = vrot.slane %v8033_v50, 5  ;;  %v8067_v54 = vld [vmem:[#allocation2 + $0x54] sm:$0xf]  ;;  %v2711_v11 = vld [vmem:[#allocation2 + $0x58] sm:$0x1] }
 0x17f   : > { %6871 = vmatprep.mubr.msk.bf16.mxu0 %vm1314_vm6, %v6454_v27  ;;  %v3143_v31 = vrot.slane %v2708_v45, 5  ;;  %v6428_v16 = vcombine.low %v2764_v17, %v2774_v29  ;;  %v2783_v26 = vrot.slane %v2782_v1, 4  ;;  %v3134_v32 = vsel %vm8007_vm11, %v6445_v9, %v3133_v8  ;;  %v8084_v27 = vld [vmem:[#allocation2 + $0x6c] sm:$0xf]  ;;  %v8106_v63 = vld [vmem:[#allocation2 + $0x50] sm:$0xe] }
 0x180   : > { %v3135_v22 = vrot.slane %v3133_v8, 4  ;;  %v2793_v62 = vrot.slane %v2792_v20, 4  ;;  %v3141_v37 = vsel %vm8007_vm11, %v6446_v30, %v3140_v48  ;;  %v3142_v52 = vrot.slane %v3140_v48, 4  ;;  %v8111_v30 = vld [vmem:[#allocation2 + $0x68] sm:$0xe] }
 0x181   : > { %v2800_v58 = vshrl.u32 %v2709_v23, 16  ;;  %v2788_v38 = vsel %vm8017_vm12, %v2783_v26, %v2787_v4  ;;  %v2803_v34 = vshll.u32 %v2709_v23, 16  ;;  %v8078_v3 = vshll.u32 %v8067_v54, 16 }
 0x182   : > { %v3137_v51 = vsel %vm8007_vm11, %v3135_v22, %v3136_v53  ;;  %v2798_v44 = vsel %vm8017_vm12, %v2793_v62, %v2797_v42  ;;  %v3144_v14 = vsel %vm8007_vm11, %v3142_v52, %v3143_v31  ;;  %v8090_v60 = vshrl.u32 %v8067_v54, 16 }
 0x183   : > { %v6455_v25 = vcombine.low %v3134_v32, %v3137_v51  ;;  %v2802_v7 = vrot.slane %v2800_v58, 4  ;;  %v6429_v19 = vcombine.low %v2788_v38, %v2798_v44  ;;  %v6456_v35 = vcombine.low %v3141_v37, %v3144_v14  ;;  %v2715_v32 = vld [vmem:[#allocation2 + $0x80] sm:$0xf] }
 0x184   : > { %v2805_v45 = vrot.slane %v2803_v34, 5  ;;  %v2811_v57 = vrot.slane %v8078_v3, 5  ;;  %v2819_v36 = vshll.u32 %v2711_v11, 16  ;;  %v2824_v0 = vshrl.u32 %v2712_v24, 16 }
 0x185   : > { %v2827_v59 = vshll.u32 %v2712_v24, 16  ;;  %6854 = vmatmul.mubr.msk.bf16.vlgmr.msra.gmra.mxu1 %vm1314_vm6, %v6428_v16  ;;  %v8100_v9 = vshll.u32 %v8084_v27, 16  ;;  %v8103_v17 = vshrl.u32 %v8084_v27, 16  ;;  %v2843_v6 = vshll.u32 %v8087_v56, 16 }
 0x186   : > { %6872 = vmatmul.mubr.msk.bf16.vlgmr.msra.gmra.mxu0 %vm1314_vm6, %v6455_v25  ;;  %v2806_v4 = vor.u32 %v2805_v45, %v2802_v7  ;;  %6888 = vmatpush3.bf16.msra.mxu1 %v7934_v39  ;;  %v2815_v42 = vrot.slane %v8090_v60, 4  ;;  %v2821_v1 = vrot.slane %v2819_v36, 5  ;;  %v2826_v8 = vrot.slane %v2824_v0, 4  ;;  %v2718_v45 = vld [vmem:[#allocation2 + $0x98] sm:$0xf] }
 0x187   : > { %6857 = vmatprep.mubr.msk.bf16.mxu1 %vm1314_vm6, %v6429_v19  ;;  %v2829_v53 = vrot.slane %v2827_v59, 5  ;;  %6875 = vmatprep.mubr.msk.bf16.mxu0 %vm1314_vm6, %v6456_v35  ;;  %v2835_v29 = vrot.slane %v8100_v9, 5  ;;  %v2839_v20 = vrot.slane %v8103_v17, 4  ;;  %v2845_v48 = vrot.slane %v2843_v6, 5  ;;  %v8133_v35 = vld [vmem:[#allocation2 + $0x84] sm:$0xf] }
 0x188   : > { %v2807_v23 = vrot.slane %v2806_v4, 4  ;;  %6906 = vmatpush3.bf16.msra.mxu0 %v7939_v33  ;;  %v2816_v39 = vor.u32 %v2815_v42, %v2811_v57  ;;  %v6447_v16 = vrot.slane %v8106_v63, 9  ;;  %v3147_v26 = vrot.slane %v8067_v54, 5  ;;  %6923 = vmatprep.subr.bf16.mxu1 %v8095_v49  ;;  %v8139_v59 = vld [vmem:[#allocation2 + $0x9c] sm:$0xf] }
 0x189   : > { %v2830_v31 = vor.u32 %v2829_v53, %v2826_v8  ;;  %v2840_v62 = vor.u32 %v2839_v20, %v2835_v29  ;;  %v3150_v37 = vrot.slane %v2711_v11, 5  ;;  %v6448_v52 = vrot.slane %v8111_v30, 9  ;;  %v2717_v42 = vld [vmem:[#allocation2 + $0x88] sm:$0x1] }
 0x18a   : > { %v2812_v22 = vsel %vm8017_vm12, %v2807_v23, %v2811_v57  ;;  %v2817_v58 = vrot.slane %v2816_v39, 4  ;;  %v3148_v33 = vsel %vm8007_vm11, %v6447_v16, %v3147_v26  ;;  %v3149_v51 = vrot.slane %v3147_v26, 4  ;;  %v8155_v26 = vld [vmem:[#allocation2 + $0x80] sm:$0xe] }
 0x18b   : > { %v2831_v38 = vrot.slane %v2830_v31, 4  ;;  %v2841_v34 = vrot.slane %v2840_v62, 4  ;;  %v3154_v24 = vrot.slane %v8084_v27, 5  ;;  %v3157_v44 = vrot.slane %v8087_v56, 5 }
 0x18c   : > { %v2848_v25 = vshrl.u32 %v2715_v32, 16  ;;  %v2822_v14 = vsel %vm8017_vm12, %v2817_v58, %v2821_v1  ;;  %v3151_v19 = vsel %vm8007_vm11, %v3149_v51, %v3150_v37  ;;  %v2851_v11 = vshll.u32 %v2715_v32, 16 }
 0x18d   : > { %v2836_v7 = vsel %vm8017_vm12, %v2831_v38, %v2835_v29  ;;  %v6430_v57 = vcombine.low %v2812_v22, %v2822_v14  ;;  %v2846_v36 = vsel %vm8017_vm12, %v2841_v34, %v2845_v48  ;;  %v6457_v0 = vcombine.low %v3148_v33, %v3151_v19  ;;  %v8160_v34 = vld [vmem:[#allocation2 + $0x98] sm:$0xe] }
 0x18e   : > { %v3155_v56 = vsel %vm8007_vm11, %v6448_v52, %v3154_v24  ;;  %v6431_v4 = vcombine.low %v2836_v7, %v2846_v36  ;;  %v3156_v6 = vrot.slane %v3154_v24, 4  ;;  %v2850_v1 = vrot.slane %v2848_v25, 4  ;;  %v2720_v52 = vld [vmem:[#allocation2 + $0xa0] sm:$0x1] }
 0x18f   : > { %v2853_v8 = vrot.slane %v2851_v11, 5  ;;  %6858 = vmatmul.mubr.msk.bf16.gmra.mxu1 %vm1314_vm6, %v6430_v57  ;;  %6876 = vmatmul.mubr.msk.bf16.gmra.mxu0 %vm1314_vm6, %v6457_v0  ;;  %v8144_v53 = vshll.u32 %v8133_v35, 16  ;;  %v8147_v23 = vshrl.u32 %v8133_v35, 16  ;;  %v2867_v29 = vshll.u32 %v2717_v42, 16  ;;  %v2721_v57 = vld [vmem:[#allocation2 + $0xb0] sm:$0xf] }
 0x190   : > { %v2872_v20 = vshrl.u32 %v2718_v45, 16  ;;  %6861 = vmatprep.mubr.msk.bf16.mxu1 %vm1314_vm6, %v6431_v4  ;;  %v3158_v48 = vsel %vm8007_vm11, %v3156_v6, %v3157_v44  ;;  %v2875_v31 = vshll.u32 %v2718_v45, 16  ;;  %v8153_v16 = vshll.u32 %v8139_v59, 16 }
 0x191   : > { %v2854_v39 = vor.u32 %v2853_v8, %v2850_v1  ;;  %v6458_v32 = vcombine.low %v3155_v56, %v3158_v48  ;;  %v2859_v22 = vrot.slane %v8144_v53, 5  ;;  %v2863_v62 = vrot.slane %v8147_v23, 4 }
 0x192   : > { %v2869_v37 = vrot.slane %v2867_v29, 5  ;;  %v2874_v38 = vrot.slane %v2872_v20, 4  ;;  %v2877_v33 = vrot.slane %v2875_v31, 5  ;;  %v2883_v51 = vrot.slane %v8153_v16, 5 }
 0x193   : > { %v2855_v58 = vrot.slane %v2854_v39, 4  ;;  %6879 = vmatprep.mubr.msk.bf16.mxu0 %vm1314_vm6, %v6458_v32  ;;  %v2864_v24 = vor.u32 %v2863_v62, %v2859_v22  ;;  %v8164_v44 = vshrl.u32 %v8139_v59, 16  ;;  %v2891_v25 = vshll.u32 %v2720_v52, 16 }
 0x194   : > { %v6449_v14 = vrot.slane %v8155_v26, 9  ;;  %v2878_v19 = vor.u32 %v2877_v33, %v2874_v38  ;;  %v3161_v11 = vrot.slane %v8133_v35, 5  ;;  %v3164_v45 = vrot.slane %v2717_v42, 5  ;;  %v8177_v42 = vld [vmem:[#allocation2 + $0xb4] sm:$0xf] }
 0x195   : > { %v2860_v7 = vsel %vm8017_vm12, %v2855_v58, %v2859_v22  ;;  %v2865_v36 = vrot.slane %v2864_v24, 4  ;;  %v2887_v0 = vrot.slane %v8164_v44, 4  ;;  %v2893_v56 = vrot.slane %v2891_v25, 5  ;;  %v2723_v25 = vld [vmem:[#allocation2 + $0xb8] sm:$0x1] }
 0x196   : > { %v6450_v4 = vrot.slane %v8160_v34, 9  ;;  %v2879_v6 = vrot.slane %v2878_v19, 4  ;;  %v3162_v1 = vsel %vm8007_vm11, %v6449_v14, %v3161_v11  ;;  %v3163_v8 = vrot.slane %v3161_v11, 4 }
 0x197   : > { %v3168_v29 = vrot.slane %v8139_v59, 5  ;;  %v2870_v20 = vsel %vm8017_vm12, %v2865_v36, %v2869_v37  ;;  %v2888_v48 = vor.u32 %v2887_v0, %v2883_v51  ;;  %v3171_v39 = vrot.slane %v2720_v52, 5 }
 0x198   : > { %v2896_v31 = vshrl.u32 %v2721_v57, 16  ;;  %v6432_v32 = vcombine.low %v2860_v7, %v2870_v20  ;;  %v2884_v22 = vsel %vm8017_vm12, %v2879_v6, %v2883_v51  ;;  %v3165_v62 = vsel %vm8007_vm11, %v3163_v8, %v3164_v45  ;;  %v3350_v45 = vld [vmem:[#allocation2 + $0x10] sm:$0x3] }
 0x199   : > { %v3169_v58 = vsel %vm8007_vm11, %v6450_v4, %v3168_v29  ;;  %v2889_v38 = vrot.slane %v2888_v48, 4  ;;  %v6459_v33 = vcombine.low %v3162_v1, %v3165_v62  ;;  %v3170_v24 = vrot.slane %v3168_v29, 4  ;;  %v8200_v8 = vld [vmem:[#allocation2 + $0xb0] sm:$0xe] }
 0x19a   : > { %v2898_v37 = vrot.slane %v2896_v31, 4  ;;  %6862 = vmatmul.mubr.msk.bf16.gmra.mxu1 %vm1314_vm6, %v6432_v32  ;;  %v2899_v52 = vshll.u32 %v2721_v57, 16  ;;  %v8187_v14 = vshll.u32 %v8177_v42, 16  ;;  %v8190_v7 = vshrl.u32 %v8177_v42, 16 }
 0x19b   : > { %v2915_v51 = vshll.u32 %v2723_v25, 16  ;;  %v2894_v19 = vsel %vm8017_vm12, %v2889_v38, %v2893_v56  ;;  %6880 = vmatmul.mubr.msk.bf16.gmra.mxu0 %vm1314_vm6, %v6459_v33  ;;  %v3172_v11 = vsel %vm8007_vm11, %v3170_v24, %v3171_v39  ;;  %v3359_v36 = vshrl.u32 %v7995_v13, 16 }
 0x19c   : > { %v3362_v57 = vshll.u32 %v7995_v13, 16  ;;  %v6433_v0 = vcombine.low %v2884_v22, %v2894_v19  ;;  %v6460_v4 = vcombine.low %v3169_v58, %v3172_v11  ;;  %v2901_v6 = vrot.slane %v2899_v52, 5  ;;  %v8209_v19 = vld [vmem:[#allocation2 + $0x8] sm:$0xc] }
 0x19d   : > { %v2907_v1 = vrot.slane %v8187_v14, 5  ;;  %v2911_v29 = vrot.slane %v8190_v7, 4  ;;  %v2917_v56 = vrot.slane %v2915_v51, 5  ;;  %v3361_v20 = vrot.slane %v3359_v36, 5 }
 0x19e   : > { %v3364_v48 = vrot.slane %v3362_v57, 6  ;;  %6865 = vmatprep.mubr.msk.bf16.mxu1 %vm1314_vm6, %v6433_v0  ;;  %6883 = vmatprep.mubr.msk.bf16.mxu0 %vm1314_vm6, %v6460_v4  ;;  %v2902_v39 = vor.u32 %v2901_v6, %v2898_v37  ;;  %v3367_v31 = vrot.slane %v7993_v21, 5  ;;  %v3368_v13 = vrot.slane %v7990_v2, 6 }
 0x19f   : > { %v3373_v32 = vshrl.u32 %v3350_v45, 16  ;;  %v2912_v22 = vor.u32 %v2911_v29, %v2907_v1  ;;  %v3376_v58 = vshll.u32 %v3350_v45, 16  ;;  %v6451_v38 = vrot.slane %v8200_v8, 9 }
 0x1a0   : > { %v3365_v62 = vor.u32 %v3364_v48, %v3361_v20  ;;  %v2903_v33 = vrot.slane %v2902_v39, 4  ;;  %v3369_v24 = vor.u32 %v3368_v13, %v3367_v31  ;;  %v3175_v51 = vrot.slane %v8177_v42, 5 }
 0x1a1   : > { %v3375_v52 = vrot.slane %v3373_v32, 5  ;;  %v2913_v11 = vrot.slane %v2912_v22, 4  ;;  %v3378_v37 = vrot.slane %v3376_v58, 6  ;;  %v3178_v57 = vrot.slane %v2723_v25, 5  ;;  %v3351_v22 = vld [vmem:[#allocation2 + $0x28] sm:$0x3] }
 0x1a2   : > { %v3366_v36 = vrot.slane %v3365_v62, 4  ;;  %v2908_v0 = vsel %vm8017_vm12, %v2903_v33, %v2907_v1  ;;  %v3371_v4 = vrot.slane %v3369_v24, 4  ;;  %v3176_v6 = vsel %vm8007_vm11, %v6451_v38, %v3175_v51 }
 0x1a3   : > { %v3177_v29 = vrot.slane %v3175_v51, 4  ;;  %v2918_v20 = vsel %vm8017_vm12, %v2913_v11, %v2917_v56  ;;  %v3379_v39 = vor.u32 %v3378_v37, %v3375_v52  ;;  %v6490_v31 = vrot.slane %v8209_v19, 10 }
 0x1a4   : > { %v3370_v48 = vsel %vm7518_vm9, %v3366_v36, %v3369_v24  ;;  %v6434_v13 = vcombine.low %v2908_v0, %v2918_v20  ;;  %v3738_v1 = vrot.slane %v7977_v46, 6  ;;  %v3741_v32 = vrot.slane %v3350_v45, 6  ;;  %v3352_v36 = vld [vmem:[#allocation2 + $0x40] sm:$0x3]  ;;  %v8238_v20 = vld [vmem:[#allocation2 + $0x20] sm:$0xc] }
 0x1a5   : > { %v3179_v25 = vsel %vm8007_vm11, %v3177_v29, %v3178_v57  ;;  %v3380_v62 = vsel %vm7518_vm9, %v3371_v4, %v3379_v39  ;;  %v3382_v43 = vshrl.u32 %v8042_v61, 16  ;;  %v3385_v56 = vshll.u32 %v8042_v61, 16 }
 0x1a6   : > { %v6461_v58 = vcombine.low %v3176_v6, %v3179_v25  ;;  %6866 = vmatmul.mubr.msk.bf16.gmra.mxu1 %vm1314_vm6, %v6434_v13  ;;  %v6473_v38 = vcombine.low %v3370_v48, %v3380_v62  ;;  %v3739_v33 = vsel %vm7456_vm5, %v6490_v31, %v3738_v1  ;;  %v3740_v5 = vrot.slane %v3738_v1, 4 }
 0x1a7   : > { %v3390_v24 = vrot.slane %v8031_v15, 5  ;;  %v3384_v46 = vrot.slane %v3382_v43, 5  ;;  %v3387_v45 = vrot.slane %v3385_v56, 6  ;;  %v3391_v52 = vrot.slane %v8024_v47, 6 }
 0x1a8   : > { %6884 = vmatmul.mubr.msk.bf16.gmra.mxu0 %vm1314_vm6, %v6461_v58  ;;  %v3396_v51 = vshrl.u32 %v3351_v22, 16  ;;  %6889 = vmatprep.mubr.msk.bf16.mxu1 %vm1314_vm6, %v6473_v38  ;;  %v3742_v61 = vsel %vm7456_vm5, %v3740_v5, %v3741_v32  ;;  %v3399_v11 = vshll.u32 %v3351_v22, 16  ;;  %v3405_v37 = vshrl.u32 %v8050_v10, 16 }
 0x1a9   : > { %v3408_v57 = vshll.u32 %v8050_v10, 16  ;;  %v6500_v0 = vcombine.low %v3739_v33, %v3742_v61  ;;  %v3388_v4 = vor.u32 %v3387_v45, %v3384_v46  ;;  %v3392_v6 = vor.u32 %v3391_v52, %v3390_v24  ;;  %v8247_v46 = vld [vmem:[#allocation2 + $0x38] sm:$0xc] }
 0x1aa   : > { %v3398_v29 = vrot.slane %v3396_v51, 5  ;;  %v3401_v48 = vrot.slane %v3399_v11, 6  ;;  %v3407_v39 = vrot.slane %v3405_v37, 5  ;;  %v3413_v13 = vrot.slane %v8048_v18, 5 }
 0x1ab   : > { %v3410_v31 = vrot.slane %v3408_v57, 6  ;;  %6907 = vmatprep.mubr.msk.bf16.mxu0 %vm1314_vm6, %v6500_v0  ;;  %v3389_v25 = vrot.slane %v3388_v4, 4  ;;  %v3394_v1 = vrot.slane %v3392_v6, 4  ;;  %v3414_v32 = vrot.slane %v8045_v12, 6 }
 0x1ac   : > { %v3419_v62 = vshrl.u32 %v3352_v36, 16  ;;  %v3402_v58 = vor.u32 %v3401_v48, %v3398_v29  ;;  %v3422_v43 = vshll.u32 %v3352_v36, 16  ;;  %v6491_v56 = vrot.slane %v8238_v20, 10 }
 0x1ad   : > { %v3411_v10 = vor.u32 %v3410_v31, %v3407_v39  ;;  %v3393_v38 = vsel %vm7518_vm9, %v3389_v25, %v3392_v6  ;;  %v3415_v33 = vor.u32 %v3414_v32, %v3413_v13  ;;  %v3745_v24 = vrot.slane %v8003_v28, 6  ;;  %v8260_v39 = vld [vmem:[#allocation2 + $0x58] sm:$0x3] }
 0x1ae   : > { %v3421_v5 = vrot.slane %v3419_v62, 5  ;;  %v3403_v45 = vsel %vm7518_vm9, %v3394_v1, %v3402_v58  ;;  %v3424_v51 = vrot.slane %v3422_v43, 6  ;;  %v3748_v61 = vrot.slane %v3351_v22, 6 }
 0x1af   : > { %v3412_v52 = vrot.slane %v3411_v10, 4  ;;  %v6474_v11 = vcombine.low %v3393_v38, %v3403_v45  ;;  %v3417_v37 = vrot.slane %v3415_v33, 4  ;;  %v3746_v57 = vsel %vm7456_vm5, %v6491_v56, %v3745_v24 }
 0x1b0   : > { %v3747_v0 = vrot.slane %v3745_v24, 4  ;;  %v3425_v6 = vor.u32 %v3424_v51, %v3421_v5  ;;  %v6492_v28 = vrot.slane %v8247_v46, 10  ;;  %v3752_v29 = vrot.slane %v8033_v50, 6  ;;  %v3354_v5 = vld [vmem:[#allocation2 + $0x70] sm:$0x3] }
 0x1b1   : > { %v3416_v4 = vsel %vm7518_vm9, %v3412_v52, %v3415_v33  ;;  %6890 = vmatmul.mubr.msk.bf16.vlgmr.msra.gmra.mxu1 %vm1314_vm6, %v6474_v11  ;;  %v3755_v22 = vrot.slane %v3352_v36, 6  ;;  %v3428_v31 = vshrl.u32 %v8106_v63, 16  ;;  %v3431_v13 = vshll.u32 %v8106_v63, 16 }
 0x1b2   : > { %v3749_v48 = vsel %vm7456_vm5, %v3747_v0, %v3748_v61  ;;  %6924 = vmatpush3.bf16.msra.mxu1 %v8095_v49  ;;  %v3426_v25 = vsel %vm7518_vm9, %v3417_v37, %v3425_v6  ;;  %v3753_v50 = vsel %vm7456_vm5, %v6492_v28, %v3752_v29  ;;  %v3754_v32 = vrot.slane %v3752_v29, 4  ;;  %v8280_v37 = vld [vmem:[#allocation2 + $0x50] sm:$0xc] }
 0x1b3   : > { %v6501_v1 = vcombine.low %v3746_v57, %v3749_v48  ;;  %v6475_v62 = vcombine.low %v3416_v4, %v3426_v25  ;;  %v3430_v58 = vrot.slane %v3428_v31, 5  ;;  %v3433_v10 = vrot.slane %v3431_v13, 6 }
 0x1b4   : > { %v3436_v36 = vrot.slane %v8090_v60, 5  ;;  %v3756_v63 = vsel %vm7456_vm5, %v3754_v32, %v3755_v22  ;;  %v3437_v49 = vrot.slane %v8078_v3, 6  ;;  %v3442_v43 = vshrl.u32 %v8260_v39, 16 }
 0x1b5   : > { %6908 = vmatmul.mubr.msk.bf16.vlgmr.msra.gmra.mxu0 %vm1314_vm6, %v6501_v1  ;;  %v3445_v56 = vshll.u32 %v8260_v39, 16  ;;  %6893 = vmatprep.mubr.msk.bf16.mxu1 %vm1314_vm6, %v6475_v62  ;;  %v6502_v38 = vcombine.low %v3753_v50, %v3756_v63  ;;  %v3434_v33 = vor.u32 %v3433_v10, %v3430_v58  ;;  %v3451_v24 = vshrl.u32 %v8111_v30, 16  ;;  %v8287_v1 = vld [vmem:[#allocation2 + $0x68] sm:$0xc] }
 0x1b6   : > { %v3454_v45 = vshll.u32 %v8111_v30, 16  ;;  %v3438_v52 = vor.u32 %v3437_v49, %v3436_v36  ;;  %v3444_v51 = vrot.slane %v3442_v43, 5  ;;  %v3459_v11 = vrot.slane %v8103_v17, 5 }
 0x1b7   : > { %v3447_v61 = vrot.slane %v3445_v56, 6  ;;  %6911 = vmatprep.mubr.msk.bf16.mxu0 %vm1314_vm6, %v6502_v38  ;;  %v3435_v57 = vrot.slane %v3434_v33, 4  ;;  %v3453_v0 = vrot.slane %v3451_v24, 5  ;;  %v3460_v6 = vrot.slane %v8100_v9, 6 }
 0x1b8   : > { %v3456_v4 = vrot.slane %v3454_v45, 6  ;;  %v3440_v28 = vrot.slane %v3438_v52, 4  ;;  %v3465_v48 = vshrl.u32 %v3354_v5, 16  ;;  %v3468_v22 = vshll.u32 %v3354_v5, 16 }
 0x1b9   : > { %v3448_v29 = vor.u32 %v3447_v61, %v3444_v51  ;;  %v3439_v30 = vsel %vm7518_vm9, %v3435_v57, %v3438_v52  ;;  %v3461_v13 = vor.u32 %v3460_v6, %v3459_v11  ;;  %v6493_v25 = vrot.slane %v8280_v37, 10  ;;  %v3355_v52 = vld [vmem:[#allocation2 + $0x88] sm:$0x3] }
 0x1ba   : > { %v3457_v31 = vor.u32 %v3456_v4, %v3453_v0  ;;  %v3467_v32 = vrot.slane %v3465_v48, 5  ;;  %v3470_v62 = vrot.slane %v3468_v22, 6  ;;  %v3759_v58 = vrot.slane %v8067_v54, 6 }
 0x1bb   : > { %v3449_v50 = vsel %vm7518_vm9, %v3440_v28, %v3448_v29  ;;  %v3463_v63 = vrot.slane %v3461_v13, 4  ;;  %v3762_v49 = vrot.slane %v8260_v39, 6  ;;  %v6494_v33 = vrot.slane %v8287_v1, 10 }
 0x1bc   : > { %v6476_v10 = vcombine.low %v3439_v30, %v3449_v50  ;;  %v3458_v36 = vrot.slane %v3457_v31, 4  ;;  %v3471_v43 = vor.u32 %v3470_v62, %v3467_v32  ;;  %v3760_v56 = vsel %vm7456_vm5, %v6493_v25, %v3759_v58  ;;  %v3356_v30 = vld [vmem:[#allocation2 + $0xa0] sm:$0x3] }
 0x1bd   : > { %v3761_v38 = vrot.slane %v3759_v58, 4  ;;  %v3766_v45 = vrot.slane %v8084_v27, 6  ;;  %v3769_v54 = vrot.slane %v3354_v5, 6  ;;  %v3474_v51 = vshrl.u32 %v8155_v26, 16  ;;  %v8316_v58 = vld [vmem:[#allocation2 + $0x80] sm:$0xc] }
 0x1be   : > { %6894 = vmatmul.mubr.msk.bf16.gmra.mxu1 %vm1314_vm6, %v6476_v10  ;;  %v3462_v24 = vsel %vm7518_vm9, %v3458_v36, %v3461_v13  ;;  %v3472_v39 = vsel %vm7518_vm9, %v3463_v63, %v3471_v43  ;;  %v3477_v11 = vshll.u32 %v8155_v26, 16  ;;  %v3482_v57 = vrot.slane %v8147_v23, 5 }
 0x1bf   : > { %v3763_v61 = vsel %vm7456_vm5, %v3761_v38, %v3762_v49  ;;  %v6477_v0 = vcombine.low %v3462_v24, %v3472_v39  ;;  %v3767_v6 = vsel %vm7456_vm5, %v6494_v33, %v3766_v45  ;;  %v3768_v27 = vrot.slane %v3766_v45, 4 }
 0x1c0   : > { %v6503_v4 = vcombine.low %v3760_v56, %v3763_v61  ;;  %v3476_v5 = vrot.slane %v3474_v51, 5  ;;  %v3479_v28 = vrot.slane %v3477_v11, 6  ;;  %v3483_v29 = vrot.slane %v8144_v53, 6 }
 0x1c1   : > { %v3488_v48 = vshrl.u32 %v3355_v52, 16  ;;  %6897 = vmatprep.mubr.msk.bf16.mxu1 %vm1314_vm6, %v6477_v0  ;;  %v3770_v26 = vsel %vm7456_vm5, %v3768_v27, %v3769_v54  ;;  %v3491_v22 = vshll.u32 %v3355_v52, 16  ;;  %v3497_v31 = vshrl.u32 %v8160_v34, 16 }
 0x1c2   : > { %6912 = vmatmul.mubr.msk.bf16.gmra.mxu0 %vm1314_vm6, %v6503_v4  ;;  %v3500_v13 = vshll.u32 %v8160_v34, 16  ;;  %v6504_v25 = vcombine.low %v3767_v6, %v3770_v26  ;;  %v3480_v50 = vor.u32 %v3479_v28, %v3476_v5  ;;  %v3484_v32 = vor.u32 %v3483_v29, %v3482_v57  ;;  %v8325_v57 = vld [vmem:[#allocation2 + $0x98] sm:$0xc] }
 0x1c3   : > { %v3490_v62 = vrot.slane %v3488_v48, 5  ;;  %v3493_v10 = vrot.slane %v3491_v22, 6  ;;  %v3499_v36 = vrot.slane %v3497_v31, 5  ;;  %v3505_v49 = vrot.slane %v8164_v44, 5 }
 0x1c4   : > { %v3502_v63 = vrot.slane %v3500_v13, 6  ;;  %6915 = vmatprep.mubr.msk.bf16.mxu0 %vm1314_vm6, %v6504_v25  ;;  %v3481_v43 = vrot.slane %v3480_v50, 4  ;;  %v3486_v56 = vrot.slane %v3484_v32, 4  ;;  %v3506_v38 = vrot.slane %v8153_v16, 6  ;;  %v8338_v25 = vld [vmem:[#allocation2 + $0xb8] sm:$0x3] }
 0x1c5   : > { %v3511_v33 = vshrl.u32 %v3356_v30, 16  ;;  %v3494_v24 = vor.u32 %v3493_v10, %v3490_v62  ;;  %v3514_v45 = vshll.u32 %v3356_v30, 16  ;;  %v6495_v54 = vrot.slane %v8316_v58, 10 }
 0x1c6   : > { %v3503_v34 = vor.u32 %v3502_v63, %v3499_v36  ;;  %v3485_v51 = vsel %vm7518_vm9, %v3481_v43, %v3484_v32  ;;  %v3507_v39 = vor.u32 %v3506_v38, %v3505_v49  ;;  %v3773_v11 = vrot.slane %v8133_v35, 6 }
 0x1c7   : > { %v3513_v61 = vrot.slane %v3511_v33, 5  ;;  %v3495_v0 = vsel %vm7518_vm9, %v3486_v56, %v3494_v24  ;;  %v3516_v6 = vrot.slane %v3514_v45, 6  ;;  %v3776_v27 = vrot.slane %v3355_v52, 6  ;;  %v3962_v45 = vld [vmem:[#allocation2 + $0x10] sm:$0x7] }
 0x1c8   : > { %v3504_v4 = vrot.slane %v3503_v34, 4  ;;  %v6478_v5 = vcombine.low %v3485_v51, %v3495_v0  ;;  %v3509_v28 = vrot.slane %v3507_v39, 4  ;;  %v3774_v29 = vsel %vm7456_vm5, %v6495_v54, %v3773_v11 }
 0x1c9   : > { %v3775_v48 = vrot.slane %v3773_v11, 4  ;;  %v3517_v22 = vor.u32 %v3516_v6, %v3513_v61  ;;  %v6496_v35 = vrot.slane %v8325_v57, 10  ;;  %v3780_v31 = vrot.slane %v8139_v59, 6 }
 0x1ca   : > { %v3508_v26 = vsel %vm7518_vm9, %v3504_v4, %v3507_v39  ;;  %6898 = vmatmul.mubr.msk.bf16.gmra.mxu1 %vm1314_vm6, %v6478_v5  ;;  %v3783_v52 = vrot.slane %v3356_v30, 6  ;;  %v3520_v50 = vshrl.u32 %v8200_v8, 16  ;;  %v3523_v32 = vshll.u32 %v8200_v8, 16  ;;  %v8357_v4 = vld [vmem:[#allocation2 + $0xb0] sm:$0xc] }
 0x1cb   : > { %v3777_v13 = vsel %vm7456_vm5, %v3775_v48, %v3776_v27  ;;  %v3518_v62 = vsel %vm7518_vm9, %v3509_v28, %v3517_v22  ;;  %v3781_v36 = vsel %vm7456_vm5, %v6496_v35, %v3780_v31  ;;  %v3782_v59 = vrot.slane %v3780_v31, 4 }
 0x1cc   : > { %v6505_v10 = vcombine.low %v3774_v29, %v3777_v13  ;;  %v6479_v63 = vcombine.low %v3508_v26, %v3518_v62  ;;  %v3522_v49 = vrot.slane %v3520_v50, 5  ;;  %v3525_v43 = vrot.slane %v3523_v32, 6 }
 0x1cd   : > { %v3528_v56 = vrot.slane %v8190_v7, 5  ;;  %v3784_v30 = vsel %vm7456_vm5, %v3782_v59, %v3783_v52  ;;  %v3529_v8 = vrot.slane %v8187_v14, 6  ;;  %v3534_v38 = vshrl.u32 %v8338_v25, 16 }
 0x1ce   : > { %6916 = vmatmul.mubr.msk.bf16.gmra.mxu0 %vm1314_vm6, %v6505_v10  ;;  %v3537_v33 = vshll.u32 %v8338_v25, 16  ;;  %6901 = vmatprep.mubr.msk.bf16.mxu1 %vm1314_vm6, %v6479_v63  ;;  %v6506_v24 = vcombine.low %v3781_v36, %v3784_v30  ;;  %v3526_v34 = vor.u32 %v3525_v43, %v3522_v49  ;;  %v3971_v54 = vshrl.u32 %v8209_v19, 16  ;;  %v3963_v63 = vld [vmem:[#allocation2 + $0x28] sm:$0x7] }
 0x1cf   : > { %v3974_v51 = vshll.u32 %v8209_v19, 16  ;;  %v3530_v39 = vor.u32 %v3529_v8, %v3528_v56  ;;  %v3536_v61 = vrot.slane %v3534_v38, 5  ;;  %v3979_v0 = vrot.slane %v7993_v21, 6  ;;  %v8364_v13 = vpop.f32.mrf.mxu1 }
 0x1d0   : > { %v3539_v11 = vrot.slane %v3537_v33, 6  ;;  %6919 = vmatprep.mubr.msk.bf16.mxu0 %vm1314_vm6, %v6506_v24  ;;  %v3527_v6 = vrot.slane %v3526_v34, 4  ;;  %v3973_v27 = vrot.slane %v3971_v54, 6  ;;  %v3980_v28 = vrot.slane %v7990_v2, 7 }
 0x1d1   : > { %v3976_v5 = vrot.slane %v3974_v51, 7  ;;  %v3532_v29 = vrot.slane %v3530_v39, 4  ;;  %v3985_v26 = vshrl.u32 %v3962_v45, 16  ;;  %v3988_v22 = vshll.u32 %v3962_v45, 16  ;;  %v8370_v49 = vpop.f32.mrf.mxu1 }
 0x1d2   : > { %v3540_v48 = vor.u32 %v3539_v11, %v3536_v61  ;;  %v3531_v19 = vsel %vm7518_vm9, %v3527_v6, %v3530_v39  ;;  %v3981_v31 = vor.u32 %v3980_v28, %v3979_v0  ;;  %v6497_v21 = vrot.slane %v8357_v4, 10  ;;  %v3964_v0 = vld [vmem:[#allocation2 + $0x40] sm:$0x7] }
 0x1d3   : > { %v3977_v35 = vor.u32 %v3976_v5, %v3973_v27  ;;  %v3987_v50 = vrot.slane %v3985_v26, 6  ;;  %v3990_v32 = vrot.slane %v3988_v22, 7  ;;  %v3787_v2 = vrot.slane %v8177_v42, 6  ;;  %v8381_v33 = vpop.f32.mrf.mxu1 }
 0x1d4   : > { %v3541_v52 = vsel %vm7518_vm9, %v3532_v29, %v3540_v48  ;;  %v3983_v36 = vrot.slane %v3981_v31, 4  ;;  %v3790_v59 = vrot.slane %v8338_v25, 6  ;;  %v3994_v55 = vshrl.u32 %v8238_v20, 16 }
 0x1d5   : > { %v6480_v62 = vcombine.low %v3531_v19, %v3541_v52  ;;  %v3978_v10 = vrot.slane %v3977_v35, 4  ;;  %v3991_v43 = vor.u32 %v3990_v32, %v3987_v50  ;;  %v3788_v56 = vsel %vm7456_vm5, %v6497_v21, %v3787_v2 }
 0x1d6   : > { %v3789_v30 = vrot.slane %v3787_v2, 4  ;;  %v3997_v8 = vshll.u32 %v8238_v20, 16  ;;  %v4002_v38 = vrot.slane %v8031_v15, 6  ;;  %v4003_v25 = vrot.slane %v8024_v47, 7  ;;  %v8387_v20 = vpop.f32.mrf.mxu1 }
 0x1d7   : > { %6902 = vmatmul.mubr.msk.bf16.gmra.mxu1 %vm1314_vm6, %v6480_v62  ;;  %v3982_v42 = vsel %vm7680_vm14, %v3978_v10, %v3981_v31  ;;  %v3992_v24 = vsel %vm7680_vm14, %v3983_v36, %v3991_v43  ;;  %v3996_v45 = vrot.slane %v3994_v55, 6  ;;  %v4008_v54 = vshrl.u32 %v3963_v63, 16  ;;  %v3965_v10 = vld [vmem:[#allocation2 + $0x58] sm:$0x7] }
 0x1d8   : > { %v3791_v34 = vsel %vm7456_vm5, %v3789_v30, %v3790_v59  ;;  %v6519_v51 = vcombine.low %v3982_v42, %v3992_v24  ;;  %v3999_v61 = vrot.slane %v3997_v8, 7  ;;  %v4004_v11 = vor.u32 %v4003_v25, %v4002_v38  ;;  %v8395_v48 = vpop.f32.mrf.mxu0  ;;  %v8397_v26 = vpop.f32.mrf.mxu1 }
 0x1d9   : > { %v6507_v39 = vcombine.low %v3788_v56, %v3791_v34  ;;  %v4010_v15 = vrot.slane %v4008_v54, 6  ;;  %v4011_v6 = vshll.u32 %v3963_v63, 16  ;;  %v4017_v47 = vshrl.u32 %v8247_v46, 16 }
 0x1da   : > { %v4020_v27 = vshll.u32 %v8247_v46, 16  ;;  %6925 = vmatprep.mubr.msk.bf16.mxu1 %vm1314_vm6, %v6519_v51  ;;  %v4000_v41 = vor.u32 %v3999_v61, %v3996_v45  ;;  %v4006_v5 = vrot.slane %v4004_v11, 4  ;;  %v4025_v28 = vrot.slane %v8048_v18, 6  ;;  %v8400_v32 = vpop.f32.mrf.mxu0  ;;  %v8402_v2 = vpop.f32.mrf.mxu1 }
 0x1db   : > { %6920 = vmatmul.mubr.msk.bf16.gmra.mxu0 %vm1314_vm6, %v6507_v39  ;;  %v4026_v29 = vrot.slane %v8045_v12, 7  ;;  %v4013_v22 = vrot.slane %v4011_v6, 7  ;;  %v4019_v19 = vrot.slane %v4017_v47, 6  ;;  %v4031_v31 = vshrl.u32 %v3964_v0, 16  ;;  %v3966_v6 = vld [vmem:[#allocation2 + $0x70] sm:$0x7] }
 0x1dc   : > { %v4022_v35 = vrot.slane %v4020_v27, 7  ;;  %v4001_v21 = vrot.slane %v4000_v41, 4  ;;  %v4034_v52 = vshll.u32 %v3964_v0, 16  ;;  %v4040_v50 = vshrl.u32 %v8280_v37, 16  ;;  %v8407_v30 = vpop.f32.mrf.mxu0  ;;  %v8409_v55 = vpop.f32.mrf.mxu1 }
 0x1dd   : > { %v4027_v46 = vor.u32 %v4026_v29, %v4025_v28  ;;  %v4014_v18 = vor.u32 %v4013_v22, %v4010_v15  ;;  %v4033_v12 = vrot.slane %v4031_v31, 6  ;;  %v4043_v36 = vshll.u32 %v8280_v37, 16 }
 0x1de   : > { %v4023_v62 = vor.u32 %v4022_v35, %v4019_v19  ;;  %v4005_v59 = vsel %vm7680_vm14, %v4001_v21, %v4004_v11  ;;  %v4036_v43 = vrot.slane %v4034_v52, 7  ;;  %v4042_v56 = vrot.slane %v4040_v50, 6  ;;  %v8418_v11 = vpop.f32.mrf.mxu0  ;;  %v8424_v47 = vpop.f32.mrf.mxu1 }
 0x1df   : > { %v4029_v63 = vrot.slane %v4027_v46, 4  ;;  %v4015_v42 = vsel %vm7680_vm14, %v4006_v5, %v4014_v18  ;;  %v4045_v38 = vrot.slane %v4043_v36, 7  ;;  %v4048_v25 = vrot.slane %v8090_v60, 6 }
 0x1e0   : > { %v4024_v8 = vrot.slane %v4023_v62, 4  ;;  %v6520_v24 = vcombine.low %v4005_v59, %v4015_v42  ;;  %v4037_v34 = vor.u32 %v4036_v43, %v4033_v12  ;;  %v4049_v37 = vrot.slane %v8078_v3, 7  ;;  %v3967_v62 = vld [vmem:[#allocation2 + $0x88] sm:$0x7] }
 0x1e1   : > { %v4054_v45 = vshrl.u32 %v3965_v10, 16  ;;  %v4046_v51 = vor.u32 %v4045_v38, %v4042_v56  ;;  %v4057_v39 = vshll.u32 %v3965_v10, 16  ;;  %v4063_v61 = vshrl.u32 %v8287_v1, 16 }
 0x1e2   : > { %v4028_v54 = vsel %vm7680_vm14, %v4024_v8, %v4027_v46  ;;  %6926 = vmatmul.mubr.msk.bf16.vlgmr.msra.gmra.mxu1 %vm1314_vm6, %v6520_v24  ;;  %v4038_v0 = vsel %vm7680_vm14, %v4029_v63, %v4037_v34  ;;  %v4050_v60 = vor.u32 %v4049_v37, %v4048_v25  ;;  %v4066_v3 = vshll.u32 %v8287_v1, 16 }
 0x1e3   : > { %v4056_v15 = vrot.slane %v4054_v45, 6  ;;  %v6521_v27 = vcombine.low %v4028_v54, %v4038_v0  ;;  %v4047_v41 = vrot.slane %v4046_v51, 4  ;;  %v4059_v5 = vrot.slane %v4057_v39, 7  ;;  %v8431_v52 = vpop.f32.mrf.mxu0 }
 0x1e4   : > { %v4065_v28 = vrot.slane %v4063_v61, 6  ;;  %v4052_v29 = vrot.slane %v4050_v60, 4  ;;  %v4068_v22 = vrot.slane %v4066_v3, 7  ;;  %v4071_v19 = vrot.slane %v8103_v17, 6  ;;  %v8435_v17 = vpop.f32.mrf.mxu1 }
 0x1e5   : > { %v4072_v35 = vrot.slane %v8100_v9, 7  ;;  %6929 = vmatprep.mubr.msk.bf16.mxu1 %vm1314_vm6, %v6521_v27  ;;  %v4051_v31 = vsel %vm7680_vm14, %v4047_v41, %v4050_v60  ;;  %v4060_v21 = vor.u32 %v4059_v5, %v4056_v15  ;;  %v4077_v46 = vshrl.u32 %v3966_v6, 16  ;;  %v8440_v43 = vpop.f32.mrf.mxu0 }
 0x1e6   : > { %v4080_v1 = vshll.u32 %v3966_v6, 16  ;;  %v4069_v50 = vor.u32 %v4068_v22, %v4065_v28  ;;  %v4086_v12 = vshrl.u32 %v8316_v58, 16  ;;  %v4089_v10 = vshll.u32 %v8316_v58, 16  ;;  %v8442_v25 = vpop.f32.mrf.mxu1  ;;  %v3968_v6 = vld [vmem:[#allocation2 + $0xa0] sm:$0x7] }
 0x1e7   : > { %v4073_v18 = vor.u32 %v4072_v35, %v4071_v19  ;;  %v4061_v9 = vsel %vm7680_vm14, %v4052_v29, %v4060_v21  ;;  %v4079_v36 = vrot.slane %v4077_v46, 6  ;;  %v4094_v63 = vrot.slane %v8147_v23, 6  ;;  %v8445_v45 = vpop.f32.mrf.mxu0 }
 0x1e8   : > { %v4082_v59 = vrot.slane %v4080_v1, 7  ;;  %v6522_v56 = vcombine.low %v4051_v31, %v4061_v9  ;;  %v4070_v42 = vrot.slane %v4069_v50, 4  ;;  %v4088_v38 = vrot.slane %v4086_v12, 6  ;;  %v8452_v61 = vpop.f32.mrf.mxu1 }
 0x1e9   : > { %v4075_v8 = vrot.slane %v4073_v18, 4  ;;  %v4091_v34 = vrot.slane %v4089_v10, 7  ;;  %v4095_v58 = vrot.slane %v8144_v53, 7  ;;  %v4100_v37 = vshrl.u32 %v3967_v62, 16  ;;  %v1543_v28 = vpop.f32.mrf.mxu0 }
 0x1ea   : > { %v4083_v24 = vor.u32 %v4082_v59, %v4079_v36  ;;  %6930 = vmatmul.mubr.msk.bf16.gmra.mxu1 %vm1314_vm6, %v6522_v56  ;;  %v4074_v23 = vsel %vm7680_vm14, %v4070_v42, %v4073_v18  ;;  %v4103_v54 = vshll.u32 %v3967_v62, 16  ;;  %v4109_v51 = vshrl.u32 %v8325_v57, 16  ;;  %v1408_v1 = vpop.f32.mrf.mxu1  ;;  %v3969_v36 = vld [vmem:[#allocation2 + $0xb8] sm:$0x7] }
 0x1eb   : > { %v4112_v39 = vshll.u32 %v8325_v57, 16  ;;  %v4092_v60 = vor.u32 %v4091_v34, %v4088_v38  ;;  %v4096_v53 = vor.u32 %v4095_v58, %v4094_v63  ;;  %v4102_v15 = vrot.slane %v4100_v37, 6 }
 0x1ec   : > { %v4084_v0 = vsel %vm7680_vm14, %v4075_v8, %v4083_v24  ;;  %v4105_v27 = vrot.slane %v4103_v54, 7  ;;  %v4111_v41 = vrot.slane %v4109_v51, 6  ;;  %v4117_v19 = vrot.slane %v8164_v44, 6 }
 0x1ed   : > { %v6523_v3 = vcombine.low %v4074_v23, %v4084_v0  ;;  %v4114_v5 = vrot.slane %v4112_v39, 7  ;;  %v4093_v29 = vrot.slane %v4092_v60, 4  ;;  %v4098_v22 = vrot.slane %v4096_v53, 4 }
 0x1ee   : > { %v4118_v57 = vrot.slane %v8153_v16, 7  ;;  %v4106_v35 = vor.u32 %v4105_v27, %v4102_v15  ;;  %v4123_v21 = vshrl.u32 %v3968_v6, 16  ;;  %v4126_v46 = vshll.u32 %v3968_v6, 16  ;;  %v6773_v59 = vpop.f32.mrf.mxu0 }
 0x1ef   : > { %6933 = vmatprep.mubr.msk.bf16.mxu1 %vm1314_vm6, %v6523_v3  ;;  %v4115_v31 = vor.u32 %v4114_v5, %v4111_v41  ;;  %v4097_v50 = vsel %vm7680_vm14, %v4093_v29, %v4096_v53  ;;  %v4132_v62 = vshrl.u32 %v8357_v4, 16  ;;  %v4135_v12 = vshll.u32 %v8357_v4, 16  ;;  %v6759_v37 = vpop.f32.mrf.mxu1 }
 0x1f0   : > { %v4119_v18 = vor.u32 %v4118_v57, %v4117_v19  ;;  %v4107_v44 = vsel %vm7680_vm14, %v4098_v22, %v4106_v35  ;;  %v4125_v16 = vrot.slane %v4123_v21, 6  ;;  %v4128_v9 = vrot.slane %v4126_v46, 7  ;;  %v1556_v58 = vpop.f32.mrf.mxu0 }
 0x1f1   : > { %v4116_v10 = vrot.slane %v4115_v31, 4  ;;  %v6524_v63 = vcombine.low %v4097_v50, %v4107_v44  ;;  %v4134_v42 = vrot.slane %v4132_v62, 6  ;;  %v4137_v8 = vrot.slane %v4135_v12, 7  ;;  %v1421_v5 = vpop.f32.mrf.mxu1 }
 0x1f2   : > { %v4121_v56 = vrot.slane %v4119_v18, 4  ;;  %v4129_v24 = vor.u32 %v4128_v9, %v4125_v16  ;;  %v4140_v34 = vrot.slane %v8190_v7, 6  ;;  %v4141_v4 = vrot.slane %v8187_v14, 7  ;;  %v6774_v7 = vpop.f32.mrf.mxu0 }
 0x1f3   : > { %v4120_v38 = vsel %vm7680_vm14, %v4116_v10, %v4119_v18  ;;  %6934 = vmatmul.mubr.msk.bf16.gmra.mxu1 %vm1314_vm6, %v6524_v63  ;;  %v4138_v23 = vor.u32 %v4137_v8, %v4134_v42  ;;  %v4146_v54 = vshrl.u32 %v3969_v36, 16  ;;  %v4149_v51 = vshll.u32 %v3969_v36, 16  ;;  %v6760_v19 = vpop.f32.mrf.mxu1 }
 0x1f4   : > { %v1533_v39 = vadd.f32 %v8395_v48, %v8364_v13  ;;  %v4130_v0 = vsel %vm7680_vm14, %v4121_v56, %v4129_v24  ;;  %v4142_v60 = vor.u32 %v4141_v4, %v4140_v34  ;;  %v1525_v53 = vadd.f32 %v8400_v32, %v8370_v49  ;;  %v1559_v29 = vpop.f32.mrf.mxu0 }
 0x1f5   : > { %v1536_v14 = vadd.f32 %v8407_v30, %v8381_v33  ;;  %v6525_v15 = vcombine.low %v4120_v38, %v4130_v0  ;;  %v4148_v6 = vrot.slane %v4146_v54, 6  ;;  %v4151_v3 = vrot.slane %v4149_v51, 7 }
 0x1f6   : > { %v4144_v27 = vrot.slane %v4142_v60, 4  ;;  %v1528_v41 = vadd.f32 %v8418_v11, %v8387_v20  ;;  %v1549_v13 = vadd.f32 %v8431_v52, %v8397_v26  ;;  %v1541_v48 = vadd.f32 %v8440_v43, %v8402_v2 }
 0x1f7   : > { %6937 = vmatprep.mubr.msk.bf16.mxu1 %vm1314_vm6, %v6525_v15  ;;  %v4139_v49 = vrot.slane %v4138_v23, 4  ;;  %v4152_v33 = vor.u32 %v4151_v3, %v4148_v6  ;;  %v1552_v32 = vadd.f32 %v8445_v45, %v8409_v55  ;;  %v1544_v30 = vadd.f32 %v1543_v28, %v8424_v47  ;;  %v1424_v47 = vpop.f32.mrf.mxu1 }
 0x1f8   : > { %v1565_v22 = vadd.f32 %v6773_v59, %v8435_v17  ;;  %v1557_v20 = vadd.f32 %v1556_v58, %v8442_v25  ;;  %v1568_v26 = vadd.f32 %v6774_v7, %v8452_v61  ;;  %v1560_v11 = vadd.f32 %v1559_v29, %v1408_v1 }
 0x1f9   : > { %v4143_v2 = vsel %vm7680_vm14, %v4139_v49, %v4142_v60  ;;  %v4153_v52 = vsel %vm7680_vm14, %v4144_v27, %v4152_v33  ;;  %vm4491_vm5 = vcmask 261120   ;;  %vm5880_vm9 = vcmask 1041409  }
 0x1fa   : > { %v6526_v43 = vcombine.low %v4143_v2, %v4153_v52  ;;  %v6777_v55 = vpop.f32.mrf.mxu0  ;;  %vm5882_vm14 = vcmask 1042434   ;;  %vm5884_vm15 = vcmask 1043459   ;;  %vm7137_vm0 = vmmov 0  }
 0x1fb   : > { %v1581_v45 = vadd.f32 %v6777_v55, %v6759_v37  ;;  %vm5888_vm2 = vcmask 1045509   ;;  %vm5890_vm3 = vcmask 1046534  }
 0x1fc   : > { %6938 = vmatmul.mubr.msk.bf16.gmra.mxu1 %vm1314_vm6, %v6526_v43  ;;  %v1572_v28 = vpop.f32.mrf.mxu0 }
 0x1fd   : > { %v1573_v17 = vadd.f32 %v1572_v28, %v1421_v5 }
 0x1fe   : > { %v6778_v57 = vpop.f32.mrf.mxu0 }
 0x1ff   : > { %v1584_v25 = vadd.f32 %v6778_v57, %v6760_v19 }
 0x200   : > { %v6783_v35 = vpop.f32.mrf.mxu1  ;;  %v1575_v61 = vpop.f32.mrf.mxu0 }
 0x201   : > { %v1938_v31 = vadd.f32 %v6783_v35, %v1533_v39  ;;  %v1576_v21 = vadd.f32 %v1575_v61, %v1424_v47 }
 0x202   : > { %v1873_v46 = vpop.f32.mrf.mxu1  ;;  %v6801_v1 = vpop.f32.mrf.mxu0 }
 0x203   : > { %v1936_v50 = vadd.f32 %v1873_v46, %v1525_v53  ;;  %v2191_v40 = vadd.f32 %v6801_v1, %v1938_v31 }
 0x204   : > { %v6784_v18 = vpop.f32.mrf.mxu1  ;;  %v2126_v62 = vpop.f32.mrf.mxu0 }
 0x205   : > { %v1939_v12 = vadd.f32 %v6784_v18, %v1536_v14  ;;  %v2189_v44 = vadd.f32 %v2126_v62, %v1936_v50 }
 0x206   : > { %v1876_v10 = vpop.f32.mrf.mxu1  ;;  %v6802_v16 = vpop.f32.mrf.mxu0 }
 0x207   : > { %v1937_v9 = vadd.f32 %v1876_v10, %v1528_v41  ;;  %v2192_v36 = vadd.f32 %v6802_v16, %v1939_v12 }
 0x208   : > { %v2129_v63 = vpop.f32.mrf.mxu0 }
 0x209   : > { %v2190_v42 = vadd.f32 %v2129_v63, %v1937_v9 }
 0x20a   : > { %v6787_v59 = vpop.f32.mrf.mxu1 }
 0x20b   : > { %v1942_v56 = vadd.f32 %v6787_v59, %v1549_v13 }
 0x20c   : > { %v1889_v8 = vpop.f32.mrf.mxu1  ;;  %v6805_v38 = vpop.f32.mrf.mxu0 }
 0x20d   : > { %v1940_v24 = vadd.f32 %v1889_v8, %v1541_v48  ;;  %v2195_v34 = vadd.f32 %v6805_v38, %v1942_v56 }
 0x20e   : > { %v6788_v4 = vpop.f32.mrf.mxu1  ;;  %v2142_v58 = vpop.f32.mrf.mxu0 }
 0x20f   : > { %v1943_v37 = vadd.f32 %v6788_v4, %v1552_v32  ;;  %v2193_v23 = vadd.f32 %v2142_v58, %v1940_v24 }
 0x210   : > { %v1892_v54 = vpop.f32.mrf.mxu1  ;;  %v6806_v51 = vpop.f32.mrf.mxu0 }
 0x211   : > { %v1941_v39 = vadd.f32 %v1892_v54, %v1544_v30  ;;  %v2196_v0 = vadd.f32 %v6806_v51, %v1943_v37 }
 0x212   : > { %v2145_v60 = vpop.f32.mrf.mxu0 }
 0x213   : > { %v2194_v53 = vadd.f32 %v2145_v60, %v1941_v39 }
 0x214   : > { %v6791_v14 = vpop.f32.mrf.mxu1  ;;  %v6809_v7 = vpop.f32.mrf.mxu0 }
 0x215   : > { %v1946_v15 = vadd.f32 %v6791_v14, %v1565_v22 }
 0x216   : > { %v1905_v6 = vpop.f32.mrf.mxu1  ;;  %v2158_v3 = vpop.f32.mrf.mxu0 }
 0x217   : > { %v1944_v27 = vadd.f32 %v1905_v6, %v1557_v20  ;;  %v2199_v41 = vadd.f32 %v6809_v7, %v1946_v15 }
 0x218   : > { %v6792_v13 = vpop.f32.mrf.mxu1  ;;  %v6810_v48 = vpop.f32.mrf.mxu0 }
 0x219   : > { %v1947_v5 = vadd.f32 %v6792_v13, %v1568_v26  ;;  %v2197_v29 = vadd.f32 %v2158_v3, %v1944_v27 }
 0x21a   : > { %v1908_v49 = vpop.f32.mrf.mxu1  ;;  %v2161_v33 = vpop.f32.mrf.mxu0 }
 0x21b   : > { %v1945_v32 = vadd.f32 %v1908_v49, %v1560_v11  ;;  %v2200_v2 = vadd.f32 %v6810_v48, %v1947_v5 }
 0x21d   : > { %v6795_v52 = vpop.f32.mrf.mxu1  ;;  %v2198_v30 = vadd.f32 %v2161_v33, %v1945_v32 }
 0x21e   : > { %v6813_v43 = vpop.f32.mrf.mxu0  ;;  %v1950_v19 = vadd.f32 %v6795_v52, %v1581_v45 }
 0x21f   : > { %v1921_v55 = vpop.f32.mrf.mxu1 }
 0x220   : > { %v2174_v47 = vpop.f32.mrf.mxu0  ;;  %v1948_v28 = vadd.f32 %v1921_v55, %v1573_v17  ;;  %v2203_v22 = vadd.f32 %v6813_v43, %v1950_v19 }
 0x221   : > { %v6796_v57 = vpop.f32.mrf.mxu1 }
 0x222   : > { %v6814_v35 = vpop.f32.mrf.mxu0  ;;  %v1951_v20 = vadd.f32 %v6796_v57, %v1584_v25  ;;  %v2201_v61 = vadd.f32 %v2174_v47, %v1948_v28 }
 0x223   : > { %v1924_v31 = vpop.f32.mrf.mxu1 }
 0x224   : > { %v2177_v46 = vpop.f32.mrf.mxu0  ;;  %v1949_v26 = vadd.f32 %v1924_v31, %v1576_v21  ;;  %v2204_v1 = vadd.f32 %v6814_v35, %v1951_v20 }
 0x225   : > { %v6819_v50 = vpop.f32.mrf.mxu1 }
 0x226   : > { %v8496_v18 = vpop.f32.mrf.mxu0  ;;  %v8498_v11 = vadd.f32 %v6819_v50, %v2191_v40  ;;  %v2202_v62 = vadd.f32 %v2177_v46, %v1949_v26 }
 0x227   : > { %v2443_v12 = vpop.f32.mrf.mxu1 }
 0x228   : > { %v8500_v45 = vpop.f32.mrf.mxu0  ;;  %v8502_v10 = vadd.f32 %v2443_v12, %v2189_v44 }
 0x229   : > { %v6820_v17 = vpop.f32.mrf.mxu1 }
 0x22a   : > { %v8504_v16 = vpop.f32.mrf.mxu0  ;;  %v8506_v25 = vadd.f32 %v6820_v17, %v2192_v36 }
 0x22b   : > { %v2446_v9 = vpop.f32.mrf.mxu1 }
 0x22c   : > { %v8508_v59 = vpop.f32.mrf.mxu0  ;;  %v8510_v21 = vadd.f32 %v2446_v9, %v2190_v42 }
 0x22d   : > { %v6823_v63 = vpop.f32.mrf.mxu1 }
 0x22e   : > { %v8512_v56 = vpop.f32.mrf.mxu0  ;;  %v8514_v40 = vadd.f32 %v6823_v63, %v2195_v34 }
 0x22f   : > { %v2459_v8 = vpop.f32.mrf.mxu1 }
 0x230   : > { %v8516_v38 = vpop.f32.mrf.mxu0  ;;  %v8518_v44 = vadd.f32 %v2459_v8, %v2193_v23  ;;  %v9650_v8 = vmov 0.0  }
 0x231   : > { %v6824_v24 = vpop.f32.mrf.mxu1  ;;  %4499 = vst.msk [vmem:[#allocation3 + $0xe0] sm:$0xff] %vm4491_vm5, %v9650_v8  ;;  %4492 = vst.msk [vmem:[#allocation3] sm:$0xff] %vm4491_vm5, %v9650_v8  ;;  %6941 = vmatprep.subr.mxu0 %v9650_v8  ;;  %6952 = vmatprep.subr.mxu1 %v9650_v8 }
 0x232   : > { %v8520_v4 = vpop.f32.mrf.mxu0  ;;  %v8522_v36 = vadd.f32 %v6824_v24, %v2196_v0  ;;  %4493 = vst.msk [vmem:[#allocation3 + $0x20] sm:$0xff] %vm4491_vm5, %v9650_v8  ;;  %4494 = vst.msk [vmem:[#allocation3 + $0x40] sm:$0xff] %vm4491_vm5, %v9650_v8 }
 0x233   : > { %v2462_v58 = vpop.f32.mrf.mxu1  ;;  %4495 = vst.msk [vmem:[#allocation3 + $0x60] sm:$0xff] %vm4491_vm5, %v9650_v8  ;;  %4496 = vst.msk [vmem:[#allocation3 + $0x80] sm:$0xff] %vm4491_vm5, %v9650_v8 }
 0x234   : > { %v8524_v37 = vpop.f32.mrf.mxu0  ;;  %v8526_v42 = vadd.f32 %v2462_v58, %v2194_v53  ;;  %4497 = vst.msk [vmem:[#allocation3 + $0xa0] sm:$0xff] %vm4491_vm5, %v9650_v8  ;;  %4498 = vst.msk [vmem:[#allocation3 + $0xc0] sm:$0xff] %vm4491_vm5, %v9650_v8 }
 0x235   : > { %v6827_v54 = vpop.f32.mrf.mxu1  ;;  %4500 = vst.msk [vmem:[#allocation3 + $0x18] sm:$0xff] %vm4491_vm5, %v9650_v8  ;;  %4501 = vst.msk [vmem:[#allocation3 + $0x38] sm:$0xff] %vm4491_vm5, %v9650_v8 }
 0x236   : > { %v8528_v51 = vpop.f32.mrf.mxu0  ;;  %v8530_v34 = vadd.f32 %v6827_v54, %v2199_v41  ;;  %4502 = vst.msk [vmem:[#allocation3 + $0x58] sm:$0xff] %vm4491_vm5, %v9650_v8  ;;  %4503 = vst.msk [vmem:[#allocation3 + $0x78] sm:$0xff] %vm4491_vm5, %v9650_v8 }
 0x237   : > { %v2475_v39 = vpop.f32.mrf.mxu1  ;;  %4504 = vst.msk [vmem:[#allocation3 + $0x98] sm:$0xff] %vm4491_vm5, %v9650_v8  ;;  %4505 = vst.msk [vmem:[#allocation3 + $0xb8] sm:$0xff] %vm4491_vm5, %v9650_v8 }
 0x238   : > { %v8532_v60 = vpop.f32.mrf.mxu0  ;;  %v8534_v23 = vadd.f32 %v2475_v39, %v2197_v29  ;;  %4506 = vst.msk [vmem:[#allocation3 + $0xd8] sm:$0xff] %vm4491_vm5, %v9650_v8  ;;  %4507 = vst.msk [vmem:[#allocation3 + $0xf8] sm:$0xff] %vm4491_vm5, %v9650_v8 }
 0x239   : > { %v6828_v14 = vpop.f32.mrf.mxu1 }
 0x23a   : > { %v8536_v7 = vpop.f32.mrf.mxu0  ;;  %v8538_v0 = vadd.f32 %v6828_v14, %v2200_v2 }
 0x23b   : > { %v2478_v15 = vpop.f32.mrf.mxu1 }
 0x23c   : > { %v8540_v6 = vpop.f32.mrf.mxu0  ;;  %v8542_v53 = vadd.f32 %v2478_v15, %v2198_v30 }
 0x23d   : > { %v6831_v3 = vpop.f32.mrf.mxu1 }
 0x23e   : > { %v8544_v27 = vpop.f32.mrf.mxu0  ;;  %v8546_v41 = vadd.f32 %v6831_v3, %v2203_v22 }
 0x23f   : > { %v2491_v13 = vpop.f32.mrf.mxu1 }
 0x240   : > { %v8548_v48 = vpop.f32.mrf.mxu0  ;;  %v8550_v5 = vadd.f32 %v2491_v13, %v2201_v61 }
 0x241   : > { %v6832_v29 = vpop.f32.mrf.mxu1 }
 0x242   : > { %v8552_v49 = vpop.f32.mrf.mxu0  ;;  %v8554_v33 = vadd.f32 %v6832_v29, %v2204_v1 }
 0x243   : > { %v2494_v32 = vpop.f32.mrf.mxu1 }
 0x244   : > { %v2672_v2 = vpop.f32.mrf.mxu0  ;;  %v2519_v52 = vadd.f32 %v2494_v32, %v2202_v62 }
 0x245   : > { %v8556_v30 = vpop.f32.mrf.mxu1 }
 0x246   : > { %v8558_v43 = vpop.f32.mrf.mxu0  ;;  %v2697_v19 = vadd.f32 %v2672_v2, %v2519_v52 }
 0x247   : > { %v8560_v55 = vpop.f32.mrf.mxu1 }
 0x248   : > { %v8562_v47 = vpop.f32.mrf.mxu0 }
 0x249   : > { %v8564_v28 = vpop.f32.mrf.mxu1 }
 0x24a   : > { %v8566_v22 = vpop.f32.mrf.mxu0 }
 0x24b   : > { %v8568_v57 = vpop.f32.mrf.mxu1 }
 0x24c   : > { %v8570_v35 = vpop.f32.mrf.mxu0 }
 0x24f   : > { %v8572_v20 = vpop.f32.mrf.mxu1  ;;  %v8574_v61 = vpop.f32.mrf.mxu0 }
 0x251   : > { %v8576_v31 = vpop.f32.mrf.mxu1  ;;  %v8578_v46 = vpop.f32.mrf.mxu0 }
 0x253   : > { %v8580_v26 = vpop.f32.mrf.mxu1  ;;  %v8582_v1 = vpop.f32.mrf.mxu0 }
 0x255   : > { %v8584_v50 = vpop.f32.mrf.mxu1  ;;  %v8586_v62 = vpop.f32.mrf.mxu0 }
 0x25a   : > { %v8588_v12 = vpop.f32.mrf.mxu1 }
 0x25b   : > { %v8592_v9 = vpop.f32.mrf.mxu0 }
 0x25c   : > { %v8590_v17 = vpop.f32.mrf.mxu1 }
 0x25d   : > { %v8630_v24 = vpop.f32.mrf.mxu0 }
 0x25e   : > { %v8594_v63 = vpop.f32.mrf.mxu1  ;;  %9709 = vst [vmem:[#allocation5_spill] sm:$0xff] %v8630_v24 }
 0x25f   : > { %v8634_v54 = vpop.f32.mrf.mxu0 }
 0x260   : > { %v8632_v58 = vpop.f32.mrf.mxu1  ;;  %9711 = vst [vmem:[#allocation6_spill] sm:$0xff] %v8634_v54 }
 0x261   : > { %9710 = vst [vmem:[#allocation10_spill] sm:$0xff] %v8632_v58  ;;  %v8640_v15 = vpop.f32.mrf.mxu0 }
 0x262   : > { %9714 = vst [vmem:[#allocation7_spill] sm:$0xff] %v8640_v15 }
 0x266   : > { %v8636_v39 = vpop.f32.mrf.mxu1 }
 0x267   : > { %9712 = vst [vmem:[#allocation11_spill] sm:$0xff] %v8636_v39 }
 0x268   : > { %v8638_v14 = vpop.f32.mrf.mxu1  ;;  %v8644_v29 = vpop.f32.mrf.mxu0 }
 0x269   : > { %9713 = vst [vmem:[#allocation13_spill] sm:$0xff] %v8638_v14  ;;  %9716 = vst [vmem:[#allocation9_spill] sm:$0xff] %v8644_v29 }
 0x26a   : > { %v8642_v3 = vpop.f32.mrf.mxu1  ;;  %v8648_v2 = vpop.f32.mrf.mxu0 }
 0x26b   : > { %9715 = vst [vmem:[#allocation16_spill] sm:$0xff] %v8642_v3  ;;  %9718 = vst [vmem:[#allocation12_spill] sm:$0xff] %v8648_v2 }
 0x26c   : > { %v3061_v13 = vpop.f32.mrf.mxu1  ;;  %v8652_v58 = vpop.f32.mrf.mxu0 }
 0x26d   : > { %v8646_v32 = vadd.f32 %v3061_v13, %v2697_v19  ;;  %9719 = vst [vmem:[#allocation8_spill] sm:$0xff] %v8652_v58 }
 0x26e   : > { %v8656_v39 = vpop.f32.mrf.mxu0 }
 0x26f   : > { %9717 = vst [vmem:[#allocation14_spill] sm:$0xff] %v8646_v32  ;;  %9721 = vst [vmem:[#allocation17_spill] sm:$0xff] %v8656_v39 }
 0x271   : > { %v6891_v52 = vpop.f32.mrf.mxu1 }
 0x273   : > { %v8650_v8 = vpop.f32.mrf.mxu1 }
 0x275   : > { %v8654_v54 = vpop.f32.mrf.mxu1  ;;  %v6909_v15 = vpop.f32.mrf.mxu0 }
 0x276   : > { %9720 = vst [vmem:[#allocation15_spill] sm:$0xff] %v8654_v54 }
 0x277   : > { %v8658_v14 = vpop.f32.mrf.mxu1  ;;  %v8664_v19 = vpop.f32.mrf.mxu0 }
 0x278   : > { %9722 = vst [vmem:[#allocation18_spill] sm:$0xff] %v8658_v14  ;;  %9725 = vst [vmem:[#allocation21_spill] sm:$0xff] %v8664_v19 }
 0x279   : > { %v8668_v32 = vpop.f32.mrf.mxu0 }
 0x27b   : > { %v8672_v58 = vpop.f32.mrf.mxu0 }
 0x27e   : > { %v8660_v3 = vpop.f32.mrf.mxu1 }
 0x27f   : > { %9723 = vst [vmem:[#allocation19_spill] sm:$0xff] %v8660_v3 }
 0x280   : > { %v8662_v24 = vpop.f32.mrf.mxu1 }
 0x281   : > { %9724 = vst [vmem:[#allocation20_spill] sm:$0xff] %v8662_v24 }
 0x282   : > { %v8666_v13 = vpop.f32.mrf.mxu1  ;;  %v8678_v14 = vpop.f32.mrf.mxu0 }
 0x283   : > { %9726 = vst [vmem:[#allocation22_spill] sm:$0xff] %v8666_v13  ;;  %9730 = vst [vmem:[#allocation26_spill] sm:$0xff] %v8678_v14 }
 0x284   : > { %v8670_v2 = vpop.f32.mrf.mxu1  ;;  %v8682_v3 = vpop.f32.mrf.mxu0 }
 0x285   : > { %9727 = vst [vmem:[#allocation23_spill] sm:$0xff] %v8670_v2  ;;  %v2686_v2 = vadd.f32 %v8496_v18, %v8498_v11  ;;  %v2691_v18 = vadd.f32 %v8520_v4, %v8522_v36  ;;  %v2696_v4 = vadd.f32 %v8548_v48, %v8550_v5  ;;  %v2699_v36 = vadd.f32 %v8552_v49, %v8554_v33 }
 0x286   : > { %v8686_v19 = vpop.f32.mrf.mxu0 }
 0x288   : > { %v8706_v11 = vpop.f32.mrf.mxu0 }
 0x28a   : > { %v8674_v29 = vpop.f32.mrf.mxu1 }
 0x28b   : > { %9728 = vst [vmem:[#allocation24_spill] sm:$0xff] %v8674_v29  ;;  %v2684_v29 = vadd.f32 %v8500_v45, %v8502_v10  ;;  %v2689_v45 = vadd.f32 %v8524_v37, %v8526_v42  ;;  %v2694_v10 = vadd.f32 %v8528_v51, %v8530_v34 }
 0x28c   : > { %v8676_v39 = vpop.f32.mrf.mxu1 }
 0x28d   : > { %9729 = vst [vmem:[#allocation25_spill] sm:$0xff] %v8676_v39  ;;  %v2687_v39 = vadd.f32 %v8504_v16, %v8506_v25  ;;  %v2692_v16 = vadd.f32 %v8532_v60, %v8534_v23  ;;  %v2695_v25 = vadd.f32 %v8536_v7, %v8538_v0  ;;  %v3083_v48 = vadd.f32 %v8588_v12, %v2694_v10  ;;  %v9737_v12 = vld [vmem:[#allocation6_spill] sm:$0xff] }
 0x28e   : > { %v8680_v54 = vpop.f32.mrf.mxu1  ;;  %v6917_v23 = vpop.f32.mrf.mxu0 }
 0x28f   : > { %9731 = vst [vmem:[#allocation27_spill] sm:$0xff] %v8680_v54  ;;  %v2685_v54 = vadd.f32 %v8508_v59, %v8510_v21  ;;  %v2693_v21 = vadd.f32 %v8540_v6, %v8542_v53  ;;  %v3080_v6 = vadd.f32 %v8580_v26, %v2691_v18  ;;  %v3078_v53 = vadd.f32 %v8584_v50, %v2689_v45  ;;  %v9736_v26 = vld [vmem:[#allocation11_spill] sm:$0xff]  ;;  %v9744_v45 = vld [vmem:[#allocation12_spill] sm:$0xff] }
 0x290   : > { %v8684_v24 = vpop.f32.mrf.mxu1  ;;  %v3081_v5 = vadd.f32 %v8590_v17, %v2692_v16  ;;  %v9738_v17 = vld [vmem:[#allocation13_spill] sm:$0xff]  ;;  %v9745_v16 = vld [vmem:[#allocation18_spill] sm:$0xff] }
 0x291   : > { %9732 = vst [vmem:[#allocation28_spill] sm:$0xff] %v8684_v24  ;;  %v2690_v24 = vadd.f32 %v8512_v56, %v8514_v40  ;;  %v3075_v56 = vadd.f32 %v8556_v30, %v2686_v2  ;;  %v3073_v40 = vadd.f32 %v8560_v55, %v2684_v29  ;;  %v3074_v37 = vadd.f32 %v8568_v57, %v2685_v54  ;;  %v9740_v54 = vld [vmem:[#allocation15_spill] sm:$0xff] }
 0x292   : > { %v3341_v30 = vadd.f32 %v8582_v1, %v3080_v6  ;;  %v3084_v55 = vadd.f32 %v8594_v63, %v2695_v25  ;;  %v3085_v1 = vadd.f32 %v9738_v17, %v2696_v4  ;;  %v9742_v2 = vld [vmem:[#allocation7_spill] sm:$0xff] }
 0x293   : > { %v3336_v42 = vadd.f32 %v8558_v43, %v3075_v56  ;;  %v3334_v51 = vadd.f32 %v8562_v47, %v3073_v40  ;;  %v3079_v34 = vadd.f32 %v8572_v20, %v2690_v24  ;;  %v3335_v0 = vadd.f32 %v8570_v35, %v3074_v37  ;;  %v3915_v20 = vpop.f32.mrf.mxu0  ;;  %v9746_v56 = vld [vmem:[#allocation8_spill] sm:$0xff]  ;;  %v9747_v37 = vld [vmem:[#allocation14_spill] sm:$0xff] }
 0x294   : > { %v3339_v43 = vadd.f32 %v8586_v62, %v3078_v53  ;;  %v3344_v47 = vadd.f32 %v8592_v9, %v3083_v48  ;;  %v8757_v62 = vld [vmem:[%s9634_s4] ss:$0 sm:$0xff]  ;;  %v3346_v10 = vadd.f32 %v9744_v45, %v3085_v1  ;;  %v9751_v48 = vld [vmem:[#allocation22_spill] sm:$0xff]  ;;  %v9755_v1 = vld [vmem:[#allocation25_spill] sm:$0xff] }
 0x295   : > { %v3698_v49 = vadd.f32 %v6891_v52, %v3336_v42  ;;  %v3696_v57 = vadd.f32 %v8650_v8, %v3334_v51  ;;  %v9739_v9 = vld [vmem:[#allocation16_spill] sm:$0xff]  ;;  %v3697_v25 = vadd.f32 %v9745_v16, %v3335_v0  ;;  %v9748_v42 = vld [vmem:[#allocation17_spill] sm:$0xff] }
 0x296   : > { %v3088_v63 = vadd.f32 %v9739_v9, %v2699_v36  ;;  %v8775_v51 = vadd.f32 %v9748_v42, %v9747_v37 }
 0x297   : > { %v8688_v13 = vpop.f32.mrf.mxu1  ;;  %v3948_v35 = vadd.f32 %v6909_v15, %v3698_v49  ;;  %v3947_v0 = vadd.f32 %v8672_v58, %v3697_v25 }
 0x298   : > { %9733 = vst [vmem:[#allocation29_spill] sm:$0xff] %v8688_v13  ;;  %v2688_v13 = vadd.f32 %v8516_v38, %v8518_v44  ;;  %v3076_v38 = vadd.f32 %v8564_v28, %v2687_v39  ;;  %v2698_v44 = vadd.f32 %v8544_v27, %v8546_v41  ;;  %v3340_v41 = vadd.f32 %v8574_v61, %v3079_v34  ;;  %v9734_v28 = vld [vmem:[#allocation5_spill] sm:$0xff]  ;;  %v9735_v61 = vld [vmem:[#allocation10_spill] sm:$0xff]  ;;  %v9749_v34 = vld [vmem:[#allocation19_spill] sm:$0xff] }
 0x299   : > { %v8696_v14 = vpop.f32.mrf.mxu1  ;;  %v9741_v39 = vld [vmem:[#allocation21_spill] sm:$0xff]  ;;  %v8767_v40 = vadd.f32 %v9746_v56, %v3088_v63 }
 0x29a   : > { %v3337_v60 = vadd.f32 %v8566_v22, %v3076_v38  ;;  %v3077_v7 = vadd.f32 %v8576_v31, %v2688_v13  ;;  %v3342_v22 = vadd.f32 %v9734_v28, %v3081_v5  ;;  %v3082_v31 = vadd.f32 %v9735_v61, %v2693_v21  ;;  %v9743_v13 = vld [vmem:[#allocation9_spill] sm:$0xff]  ;;  %v9752_v28 = vld [vmem:[#allocation26_spill] sm:$0xff] }
 0x29b   : > { %v8716_v59 = vpop.f32.mrf.mxu1  ;;  %v3087_v50 = vadd.f32 %v9736_v26, %v2698_v44  ;;  %v3946_v15 = vadd.f32 %v9741_v39, %v3696_v57  ;;  %v6918_v44 = vpop.f32.mrf.mxu0  ;;  %v3703_v5 = vadd.f32 %v9751_v48, %v3341_v30  ;;  %v5864_v48 = vld [vmem:[%s9637_s7 + $0x18] sm:$0xff] }
 0x29c   : > { %v3338_v33 = vadd.f32 %v8578_v46, %v3077_v7  ;;  %v3345_v46 = vadd.f32 %v9737_v12, %v3084_v55  ;;  %v3699_v8 = vadd.f32 %v9740_v54, %v3337_v60  ;;  %v3343_v52 = vadd.f32 %v9742_v2, %v3082_v31  ;;  %v9750_v7 = vld [vmem:[#allocation20_spill] sm:$0xff]  ;;  %v9756_v54 = vld [vmem:[#allocation27_spill] sm:$0xff]  ;;  %6942 = vmatpush3.msra.mxu0 %v5864_v48 }
 0x29d   : > { %v8738_v27 = vpop.f32.mrf.mxu1  ;;  %v3348_v18 = vadd.f32 %v9743_v13, %v3087_v50  ;;  %v3702_v60 = vadd.f32 %v9749_v34, %v3340_v41  ;;  %v9754_v41 = vld [vmem:[#allocation24_spill] sm:$0xff]  ;;  %v3953_v58 = vadd.f32 %v8686_v19, %v3703_v5  ;;  %v3918_v50 = vpop.f32.mrf.mxu0  ;;  %v3708_v5 = vadd.f32 %v8696_v14, %v3346_v10 }
 0x29e   : > { %v3949_v38 = vadd.f32 %v8668_v32, %v3699_v8  ;;  %v3700_v6 = vadd.f32 %v9750_v7, %v3338_v33  ;;  %v3706_v26 = vadd.f32 %v9754_v41, %v3344_v47  ;;  %v3707_v47 = vadd.f32 %v9756_v54, %v3345_v46 }
 0x29f   : > { %v3952_v57 = vadd.f32 %v9752_v28, %v3702_v60  ;;  %v9758_v60 = vld [vmem:[#allocation29_spill] sm:$0xff]  ;;  %v3711_v14 = vadd.f32 %v8716_v59, %v8767_v40 }
 0x2a0   : > { %v3950_v31 = vadd.f32 %v8682_v3, %v3700_v6  ;;  %v3710_v7 = vadd.f32 %v9758_v60, %v3348_v18 }
 0x2a2   : > { %v6927_v24 = vpop.f32.mrf.mxu1 }
 0x2a3   : > { %v4310_v29 = vadd.f32 %v6927_v24, %v3948_v35  ;;  %v9753_v35 = vld [vmem:[#allocation23_spill] sm:$0xff]  ;;  %v3704_v24 = vadd.f32 %v9755_v1, %v3342_v22 }
 0x2a4   : > { %v4245_v21 = vpop.f32.mrf.mxu1  ;;  %v3701_v61 = vadd.f32 %v9753_v35, %v3339_v43  ;;  %v3956_v43 = vadd.f32 %v6917_v23, %v3706_v26 }
 0x2a5   : > { %v8771_v4 = vadd.f32 %v8757_v62, %v4310_v29  ;;  %v4308_v36 = vadd.f32 %v4245_v21, %v3946_v15  ;;  %v9757_v15 = vld [vmem:[#allocation28_spill] sm:$0xff]  ;;  %v3954_v2 = vadd.f32 %v3915_v20, %v3704_v24  ;;  %v8808_v21 = vadd.f32 %v6918_v44, %v3707_v47 }
 0x2a6   : > { %v6928_v53 = vpop.f32.mrf.mxu1  ;;  %v3951_v9 = vadd.f32 %v8706_v11, %v3701_v61  ;;  %v3705_v29 = vadd.f32 %v9757_v15, %v3343_v52  ;;  %v6921_v11 = vpop.f32.mrf.mxu0  ;;  %v3709_v47 = vadd.f32 %v8738_v27, %v8775_v51 }
 0x2a7   : > { %v4365_v32 = vmul.f32 0.044715, %v8771_v4  ;;  %v8783_v49 = vadd.f32 %v8757_v62, %v4308_v36  ;;  %v4311_v55 = vadd.f32 %v6928_v53, %v3949_v38 }
 0x2a8   : > { %v4248_v33 = vpop.f32.mrf.mxu1  ;;  %v8810_v56 = vadd.f32 %v3918_v50, %v3705_v29 }
 0x2a9   : > { %v4381_v30 = vmul.f32 %v4365_v32, %v8771_v4  ;;  %v4363_v12 = vmul.f32 0.044715, %v8783_v49  ;;  %v8793_v17 = vadd.f32 %v8757_v62, %v4311_v55  ;;  %v4309_v63 = vadd.f32 %v4248_v33, %v3947_v0  ;;  %v3931_v32 = vpop.f32.mrf.mxu0 }
 0x2aa   : > { %v6931_v3 = vpop.f32.mrf.mxu1  ;;  %v3960_v33 = vadd.f32 %v6921_v11, %v3710_v7 }
 0x2ab   : > { %v4397_v8 = vmul.f32 %v4381_v30, %v8771_v4  ;;  %v4379_v19 = vmul.f32 %v4363_v12, %v8783_v49  ;;  %v4366_v39 = vmul.f32 0.044715, %v8793_v17  ;;  %v8803_v13 = vadd.f32 %v8757_v62, %v4309_v63  ;;  %v6922_v12 = vpop.f32.mrf.mxu0 }
 0x2ac   : > { %v4314_v22 = vadd.f32 %v6931_v3, %v3952_v57  ;;  %v4261_v45 = vpop.f32.mrf.mxu1 }
 0x2ad   : > { %v4413_v23 = vadd.f32 %v4397_v8, %v8771_v4  ;;  %v4395_v16 = vmul.f32 %v4379_v19, %v8783_v49  ;;  %v4382_v46 = vmul.f32 %v4366_v39, %v8793_v17  ;;  %v4312_v25 = vadd.f32 %v4261_v45, %v3950_v31 }
 0x2ae   : > { %v4364_v52 = vmul.f32 0.044715, %v8803_v13  ;;  %v8814_v20 = vadd.f32 %v8757_v62, %v4314_v22  ;;  %v6932_v38 = vpop.f32.mrf.mxu1  ;;  %v9759_v31 = vmov 0.0   ;;  %v3958_v45 = vadd.f32 %v3931_v32, %v3708_v5 }
 0x2af   : > { %v4429_v36 = vmul.f32 0.7978846, %v4413_v23  ;;  %v4411_v37 = vadd.f32 %v4395_v16, %v8783_v49  ;;  %v4398_v42 = vmul.f32 %v4382_v46, %v8793_v17  ;;  %v8819_v34 = vadd.f32 %v8757_v62, %v4312_v25  ;;  %6943 = vmatprep.subr.mxu0 %v9759_v31  ;;  %6949 = vmatprep.mubr.msk.f32.mxu0 %vm7137_vm0, %v9759_v31 }
 0x2b0   : > { %v4380_v44 = vmul.f32 %v4364_v52, %v8803_v13  ;;  %v4369_v6 = vmul.f32 0.044715, %v8814_v20  ;;  %v4315_v0 = vadd.f32 %v6932_v38, %v3953_v58  ;;  %v4264_v53 = vpop.f32.mrf.mxu1  ;;  %v3961_v16 = vadd.f32 %v6922_v12, %v3711_v14  ;;  %6956 = vmatprep.mubr.msk.f32.mxu1 %vm7137_vm0, %v9759_v31 }
 0x2b1   : > { %7034 = vtanh.f32 %v4429_v36  ;;  %v4427_v55 = vmul.f32 0.7978846, %v4411_v37  ;;  %v4414_v28 = vadd.f32 %v4398_v42, %v8793_v17  ;;  %v4367_v35 = vmul.f32 0.044715, %v8819_v34 }
 0x2b2   : > { %v4396_v18 = vmul.f32 %v4380_v44, %v8803_v13  ;;  %v4385_v57 = vmul.f32 %v4369_v6, %v8814_v20  ;;  %v8833_v61 = vadd.f32 %v8757_v62, %v4315_v0  ;;  %v4313_v41 = vadd.f32 %v4264_v53, %v3951_v9 }
 0x2b3   : > { %7036 = vtanh.f32 %v4427_v55  ;;  %v4430_v10 = vmul.f32 0.7978846, %v4414_v28  ;;  %v6935_v26 = vpop.f32.mrf.mxu1  ;;  %v4383_v30 = vmul.f32 %v4367_v35, %v8819_v34  ;;  %v4349_v32 = vmul.f32 0.5, %v8771_v4 }
 0x2b4   : > { %v4412_v58 = vadd.f32 %v4396_v18, %v8803_v13  ;;  %v4401_v50 = vmul.f32 %v4385_v57, %v8814_v20  ;;  %v4370_v1 = vmul.f32 0.044715, %v8833_v61  ;;  %v8843_v24 = vadd.f32 %v8757_v62, %v4313_v41 }
 0x2b5   : > { %7038 = vtanh.f32 %v4430_v10  ;;  %v4318_v63 = vadd.f32 %v6935_v26, %v3956_v43  ;;  %v4277_v59 = vpop.f32.mrf.mxu1  ;;  %v4399_v3 = vmul.f32 %v4383_v30, %v8819_v34  ;;  %v4347_v10 = vmul.f32 0.5, %v8783_v49 }
 0x2b6   : > { %v4428_v40 = vmul.f32 0.7978846, %v4412_v58  ;;  %v4417_v9 = vadd.f32 %v4401_v50, %v8814_v20  ;;  %v4316_v54 = vadd.f32 %v4277_v59, %v3954_v2  ;;  %v4386_v8 = vmul.f32 %v4370_v1, %v8833_v61  ;;  %v3934_v2 = vpop.f32.mrf.mxu0 }
 0x2b7   : > { %v4368_v19 = vmul.f32 0.044715, %v8843_v24  ;;  %v8852_v39 = vadd.f32 %v8757_v62, %v4318_v63  ;;  %v6936_v15 = vpop.f32.mrf.mxu1  ;;  %v4415_v29 = vadd.f32 %v4399_v3, %v8819_v34  ;;  %v3959_v42 = vadd.f32 %v3934_v2, %v3709_v47 }
 0x2b8   : > { %7040 = vtanh.f32 %v4428_v40  ;;  %v4433_v43 = vmul.f32 0.7978846, %v4417_v9  ;;  %v8856_v22 = vadd.f32 %v8757_v62, %v4316_v54  ;;  %v4402_v11 = vmul.f32 %v4386_v8, %v8833_v61 }
 0x2b9   : > { %v4384_v27 = vmul.f32 %v4368_v19, %v8843_v24  ;;  %v4373_v51 = vmul.f32 0.044715, %v8852_v39  ;;  %v4280_v23 = vpop.f32.mrf.mxu1  ;;  %v4431_v46 = vmul.f32 0.7978846, %v4415_v29  ;;  %v4319_v37 = vadd.f32 %v6936_v15, %v8808_v21 }
 0x2ba   : > { %7042 = vtanh.f32 %v4433_v43  ;;  %v4371_v25 = vmul.f32 0.044715, %v8856_v22  ;;  %v4418_v52 = vadd.f32 %v4402_v11, %v8833_v61  ;;  %v4317_v7 = vadd.f32 %v4280_v23, %v8810_v56 }
 0x2bb   : > { %v4400_v38 = vmul.f32 %v4384_v27, %v8843_v24  ;;  %v4389_v36 = vmul.f32 %v4373_v51, %v8852_v39  ;;  %7044 = vtanh.f32 %v4431_v46  ;;  %v8871_v48 = vadd.f32 %v8757_v62, %v4319_v37 }
 0x2bc   : > { %v4387_v60 = vmul.f32 %v4371_v25, %v8856_v22  ;;  %v6939_v44 = vpop.f32.mrf.mxu1  ;;  %v4434_v6 = vmul.f32 0.7978846, %v4418_v52  ;;  %v8876_v55 = vadd.f32 %v8757_v62, %v4317_v7  ;;  %v4350_v41 = vmul.f32 0.5, %v8793_v17 }
 0x2bd   : > { %v4416_v0 = vadd.f32 %v4400_v38, %v8843_v24  ;;  %v4405_v53 = vmul.f32 %v4389_v36, %v8852_v39  ;;  %v4322_v28 = vadd.f32 %v6939_v44, %v3960_v33  ;;  %v4374_v4 = vmul.f32 0.044715, %v8871_v48 }
 0x2be   : > { %v7035_v5 = vpop.eup %7034  ;;  %v4403_v21 = vmul.f32 %v4387_v60, %v8856_v22  ;;  %v4293_v18 = vpop.f32.mrf.mxu1  ;;  %7046 = vtanh.f32 %v4434_v6  ;;  %v4372_v59 = vmul.f32 0.044715, %v8876_v55  ;;  %v4348_v3 = vmul.f32 0.5, %v8803_v13 }
 0x2bf   : > { %v4461_v56 = vadd.f32 1.0, %v7035_v5  ;;  %v4432_v57 = vmul.f32 0.7978846, %v4416_v0  ;;  %v4421_v35 = vadd.f32 %v4405_v53, %v8852_v39  ;;  %v4390_v63 = vmul.f32 %v4374_v4, %v8871_v48  ;;  %v5863_v0 = vld [vmem:[%s9637_s7 + $0x10] sm:$0xff] }
 0x2c0   : > { %v7037_v14 = vpop.eup %7036  ;;  %v4419_v26 = vadd.f32 %v4403_v21, %v8856_v22  ;;  %v6940_v58 = vpop.f32.mrf.mxu1  ;;  %v8886_v40 = vadd.f32 %v8757_v62, %v4322_v28  ;;  %v4320_v9 = vadd.f32 %v4293_v18, %v3958_v45  ;;  %v4388_v47 = vmul.f32 %v4372_v59, %v8876_v55  ;;  %6944 = vmatpush3.msra.mxu0 %v5863_v0 }
 0x2c1   : > { %v4477_v50 = vmul.f32 %v4461_v56, %v4349_v32  ;;  %v4459_v30 = vadd.f32 1.0, %v7037_v14  ;;  %7048 = vtanh.f32 %v4432_v57  ;;  %v4437_v33 = vmul.f32 0.7978846, %v4421_v35  ;;  %6945 = vmatprep.subr.mxu0 %v9759_v31 }
 0x2c2   : > { %v7039_v12 = vpop.eup %7038  ;;  %v4435_v1 = vmul.f32 0.7978846, %v4419_v26  ;;  %v4406_v54 = vmul.f32 %v4390_v63, %v8871_v48  ;;  %v4296_v8 = vpop.f32.mrf.mxu1  ;;  %v4377_v43 = vmul.f32 0.044715, %v8886_v40  ;;  %v8895_v29 = vadd.f32 %v8757_v62, %v4320_v9 }
 0x2c3   : > { %4510 = vst.msk [vmem:[#allocation3 + $0x28] sm:$0xff] %vm4491_vm5, %v4477_v50  ;;  %v4475_v49 = vmul.f32 %v4459_v30, %v4347_v10  ;;  %v4462_v17 = vadd.f32 1.0, %v7039_v12  ;;  %7050 = vtanh.f32 %v4437_v33  ;;  %v4323_v2 = vadd.f32 %v6940_v58, %v3961_v16 }
 0x2c4   : > { %7052 = vtanh.f32 %v4435_v1  ;;  %v4353_v45 = vmul.f32 0.5, %v8814_v20  ;;  %v4422_v13 = vadd.f32 %v4406_v54, %v8871_v48  ;;  %v4404_v27 = vmul.f32 %v4388_v47, %v8876_v55 }
 0x2c5   : > { %v7041_v19 = vpop.eup %7040  ;;  %4508 = vst.msk [vmem:[#allocation3 + $0x8] sm:$0xff] %vm4491_vm5, %v4475_v49  ;;  %v4478_v15 = vmul.f32 %v4462_v17, %v4350_v41  ;;  %v4393_v23 = vmul.f32 %v4377_v43, %v8886_v40  ;;  %v4375_v46 = vmul.f32 0.044715, %v8895_v29  ;;  %v8904_v25 = vadd.f32 %v8757_v62, %v4323_v2  ;;  %v8955_v43 = vld [vmem:[%s9635_s5 + $0x3] ss:$0 sm:$0xff] }
 0x2c6   : > { %v4460_v11 = vadd.f32 1.0, %v7041_v19  ;;  %v4321_v52 = vadd.f32 %v4296_v8, %v3959_v42  ;;  %v4438_v36 = vmul.f32 0.7978846, %v4422_v13  ;;  %v4420_v20 = vadd.f32 %v4404_v27, %v8876_v55 }
 0x2c7   : > { %v7043_v51 = vpop.eup %7042  ;;  %4511 = vst.msk [vmem:[#allocation3 + $0x30] sm:$0xff] %vm4491_vm5, %v4478_v15  ;;  %v4351_v60 = vmul.f32 0.5, %v8819_v34  ;;  %v4409_v7 = vmul.f32 %v4393_v23, %v8886_v40  ;;  %v4391_v44 = vmul.f32 %v4375_v46, %v8895_v29  ;;  %v4378_v6 = vmul.f32 0.044715, %v8904_v25  ;;  %v8919_v34 = vld [vmem:[%s9635_s5] ss:$0 sm:$0xff] }
 0x2c8   : > { %v4476_v38 = vmul.f32 %v4460_v11, %v4348_v3  ;;  %v4465_v16 = vadd.f32 1.0, %v7043_v51  ;;  %v7045_v37 = vpop.eup %7044  ;;  %7054 = vtanh.f32 %v4438_v36  ;;  %v4436_v5 = vmul.f32 0.7978846, %v4420_v20  ;;  %v8946_v3 = vld [vmem:[%s9635_s5 + $0x2] ss:$0 sm:$0xff] }
 0x2c9   : > { %v4463_v53 = vadd.f32 1.0, %v7045_v37  ;;  %v4425_v32 = vadd.f32 %v4409_v7, %v8886_v40  ;;  %v4407_v21 = vmul.f32 %v4391_v44, %v8895_v29  ;;  %v4394_v28 = vmul.f32 %v4378_v6, %v8904_v25  ;;  %v8965_v36 = vld [vmem:[%s9635_s5 + $0x4] ss:$0 sm:$0xff] }
 0x2ca   : > { %4509 = vst.msk [vmem:[#allocation3 + $0x10] sm:$0xff] %vm4491_vm5, %v4476_v38  ;;  %v4481_v42 = vmul.f32 %v4465_v16, %v4353_v45  ;;  %v8924_v18 = vadd.f32 %v8757_v62, %v4321_v52  ;;  %v4528_v56 = vld [vmem:[#allocation3 + $0x21] ss:$2 sm:$0xff]  ;;  %v4354_v14 = vmul.f32 0.5, %v8833_v61  ;;  %v4352_v10 = vmul.f32 0.5, %v8843_v24 }
 0x2cb   : > { %v7047_v57 = vpop.eup %7046  ;;  %v4479_v35 = vmul.f32 %v4463_v53, %v4351_v60  ;;  %7056 = vtanh.f32 %v4436_v5  ;;  %v4441_v26 = vmul.f32 0.7978846, %v4425_v32  ;;  %v4423_v4 = vadd.f32 %v4407_v21, %v8895_v29  ;;  %v8935_v62 = vld [vmem:[%s9635_s5 + $0x1] ss:$0 sm:$0xff]  ;;  %v8972_v60 = vld [vmem:[%s9635_s5 + $0x5] ss:$0 sm:$0xff] }
 0x2cc   : > { %4514 = vst.msk [vmem:[#allocation3 + $0x68] sm:$0xff] %vm4491_vm5, %v4481_v42  ;;  %v4466_v41 = vadd.f32 1.0, %v7047_v57  ;;  %v4410_v58 = vmul.f32 %v4394_v28, %v8904_v25  ;;  %v4357_v30 = vmul.f32 0.5, %v8852_v39  ;;  %v4355_v61 = vmul.f32 0.5, %v8856_v22  ;;  %v8982_v28 = vld [vmem:[%s9635_s5 + $0x6] ss:$0 sm:$0xff] }
 0x2cd   : > { %4512 = vst.msk [vmem:[#allocation3 + $0x48] sm:$0xff] %vm4491_vm5, %v4479_v35  ;;  %v4376_v24 = vmul.f32 0.044715, %v8924_v18  ;;  %v4546_v33 = vmul.f32 %v8919_v34, %v4528_v56  ;;  %7058 = vtanh.f32 %v4441_v26  ;;  %v4439_v59 = vmul.f32 0.7978846, %v4423_v4 }
 0x2ce   : > { %v7049_v50 = vpop.eup %7048  ;;  %v4564_v12 = vld [vmem:[#allocation3 + $0x22] ss:$2 sm:$0xff]  ;;  %v4482_v1 = vmul.f32 %v4466_v41, %v4354_v14  ;;  %v4617_v49 = vld [vmem:[#allocation3 + $0x23] ss:$2 sm:$0xff]  ;;  %v4426_v9 = vadd.f32 %v4410_v58, %v8904_v25  ;;  %v4358_v42 = vmul.f32 0.5, %v8871_v48  ;;  %v4356_v53 = vmul.f32 0.5, %v8876_v55 }
 0x2cf   : > { %v4464_v63 = vadd.f32 1.0, %v7049_v50  ;;  %v4392_v39 = vmul.f32 %v4376_v24, %v8924_v18  ;;  %v4578_v22 = vmul.f32 %v8919_v34, %v4564_v12  ;;  %v4599_v54 = vmul.f32 %v8935_v62, %v4564_v12  ;;  %v4670_v47 = vld [vmem:[#allocation3 + $0x24] ss:$2 sm:$0xff]  ;;  %v4723_v51 = vld [vmem:[#allocation3 + $0x25] ss:$2 sm:$0xff] }
 0x2d0   : > { %v7051_v17 = vpop.eup %7050  ;;  %4515 = vst.msk [vmem:[#allocation3 + $0x70] sm:$0xff] %vm4491_vm5, %v4482_v1  ;;  %7060 = vtanh.f32 %v4439_v59  ;;  %v4631_v2 = vmul.f32 %v8935_v62, %v4617_v49  ;;  %v4442_v45 = vmul.f32 0.7978846, %v4426_v9  ;;  %v4652_v52 = vmul.f32 %v8946_v3, %v4617_v49  ;;  %v4776_v37 = vld [vmem:[#allocation3 + $0x26] ss:$2 sm:$0xff] }
 0x2d1   : > { %v7053_v8 = vpop.eup %7052  ;;  %v4480_v19 = vmul.f32 %v4464_v63, %v4352_v10  ;;  %v4469_v15 = vadd.f32 1.0, %v7051_v17  ;;  %v4408_v13 = vmul.f32 %v4392_v39, %v8924_v18  ;;  %v4607_v27 = vadd.f32 %v4599_v54, %v4546_v33  ;;  %v4829_v32 = vld [vmem:[#allocation3 + $0x27] ss:$2 sm:$0xff]  ;;  %v4882_v26 = vld [vmem:[#allocation3 + $0x28] ss:$2 sm:$0xff] }
 0x2d2   : > { %v4467_v11 = vadd.f32 1.0, %v7053_v8  ;;  %v4639_v46 = vadd.f32 %v4631_v2, %v4578_v22  ;;  %v4684_v38 = vmul.f32 %v8946_v3, %v4670_v47  ;;  %7062 = vtanh.f32 %v4442_v45  ;;  %v8987_v56 = vld [vmem:[%s9635_s5 + $0x7] ss:$0 sm:$0xff]  ;;  %v8996_v58 = vld [vmem:[%s9635_s5 + $0x8] ss:$0 sm:$0xff] }
 0x2d3   : > { %4513 = vst.msk [vmem:[#allocation3 + $0x50] sm:$0xff] %vm4491_vm5, %v4480_v19  ;;  %v4485_v23 = vmul.f32 %v4469_v15, %v4357_v30  ;;  %v4424_v20 = vadd.f32 %v4408_v13, %v8924_v18  ;;  %v4660_v7 = vadd.f32 %v4652_v52, %v4607_v27  ;;  %v4705_v6 = vmul.f32 %v8955_v43, %v4670_v47  ;;  %v4935_v33 = vld [vmem:[#allocation3 + $0x29] ss:$2 sm:$0xff]  ;;  %v4988_v59 = vld [vmem:[#allocation3 + $0x2a] ss:$2 sm:$0xff] }
 0x2d4   : > { %v4483_v16 = vmul.f32 %v4467_v11, %v4355_v61  ;;  %v4692_v44 = vadd.f32 %v4684_v38, %v4639_v46  ;;  %v4737_v0 = vmul.f32 %v8955_v43, %v4723_v51  ;;  %v4758_v14 = vmul.f32 %v8965_v36, %v4723_v51  ;;  %v5041_v22 = vld [vmem:[#allocation3 + $0x2b] ss:$2 sm:$0xff]  ;;  %v9014_v54 = vld [vmem:[%s9635_s5 + $0xa] ss:$0 sm:$0xff]  ;;  %v5094_v47 = vld [vmem:[#allocation3 + $0x2c] ss:$2 sm:$0xff] }
 0x2d5   : > { %4518 = vst.msk [vmem:[#allocation3 + $0xa8] sm:$0xff] %vm4491_vm5, %v4485_v23  ;;  %v4440_v5 = vmul.f32 0.7978846, %v4424_v20  ;;  %v7055_v21 = vpop.eup %7054  ;;  %v4713_v57 = vadd.f32 %v4705_v6, %v4660_v7  ;;  %v4790_v48 = vmul.f32 %v8965_v36, %v4776_v37  ;;  %v4361_v10 = vmul.f32 0.5, %v8886_v40  ;;  %v9003_v40 = vld [vmem:[%s9635_s5 + $0x9] ss:$0 sm:$0xff] }
 0x2d6   : > { %4516 = vst.msk [vmem:[#allocation3 + $0x88] sm:$0xff] %vm4491_vm5, %v4483_v16  ;;  %v4745_v35 = vadd.f32 %v4737_v0, %v4692_v44  ;;  %v4470_v55 = vadd.f32 1.0, %v7055_v21  ;;  %v4359_v41 = vmul.f32 0.5, %v8895_v29  ;;  %v4811_v61 = vmul.f32 %v8972_v60, %v4776_v37  ;;  %v4532_v2 = vld [vmem:[#allocation3 + $0x61] ss:$2 sm:$0xff] }
 0x2d7   : > { %7064 = vtanh.f32 %v4440_v5  ;;  %v4766_v50 = vadd.f32 %v4758_v14, %v4713_v57  ;;  %v4843_v24 = vmul.f32 %v8972_v60, %v4829_v32  ;;  %v4362_v1 = vmul.f32 0.5, %v8904_v25  ;;  %v4568_v51 = vld [vmem:[#allocation3 + $0x62] ss:$2 sm:$0xff]  ;;  %v4621_v23 = vld [vmem:[#allocation3 + $0x63] ss:$2 sm:$0xff] }
 0x2d8   : > { %v7057_v4 = vpop.eup %7056  ;;  %v4798_v30 = vadd.f32 %v4790_v48, %v4745_v35  ;;  %v4486_v29 = vmul.f32 %v4470_v55, %v4358_v42  ;;  %v9007_v63 = vmul.f32 0.5, %v8924_v18  ;;  %v4864_v9 = vmul.f32 %v8982_v28, %v4829_v32  ;;  %v5862_v46 = vld [vmem:[%s9637_s7 + $0x8] sm:$0xff] }
 0x2d9   : > { %v4468_v12 = vadd.f32 1.0, %v7057_v4  ;;  %v4819_v49 = vadd.f32 %v4811_v61, %v4766_v50  ;;  %v4896_v39 = vmul.f32 %v8982_v28, %v4882_v26  ;;  %v4917_v18 = vmul.f32 %v8987_v56, %v4882_v26  ;;  %6946 = vmatpush3.msra.mxu0 %v5862_v46  ;;  %v4674_v42 = vld [vmem:[#allocation3 + $0x64] ss:$2 sm:$0xff]  ;;  %v4727_v26 = vld [vmem:[#allocation3 + $0x65] ss:$2 sm:$0xff] }
 0x2da   : > { %v4851_v17 = vadd.f32 %v4843_v24, %v4798_v30  ;;  %v7059_v8 = vpop.eup %7058  ;;  %4519 = vst.msk [vmem:[#allocation3 + $0xb0] sm:$0xff] %vm4491_vm5, %v4486_v29  ;;  %v4949_v19 = vmul.f32 %v8987_v56, %v4935_v33  ;;  %v4970_v15 = vmul.f32 %v8996_v58, %v4935_v33  ;;  %v5002_v27 = vmul.f32 %v8996_v58, %v4988_v59  ;;  %v5147_v50 = vld [vmem:[#allocation3 + $0x2d] ss:$2 sm:$0xff] }
 0x2db   : > { %v4484_v25 = vmul.f32 %v4468_v12, %v4356_v53  ;;  %v4473_v11 = vadd.f32 1.0, %v7059_v8  ;;  %v4872_v45 = vadd.f32 %v4864_v9, %v4819_v49  ;;  %v5023_v38 = vmul.f32 %v9003_v40, %v4988_v59  ;;  %6947 = vmatprep.subr.mxu0 %v9759_v31  ;;  %v9033_v53 = vld [vmem:[%s9635_s5 + $0xb] ss:$0 sm:$0xff]  ;;  %v5200_v9 = vld [vmem:[#allocation3 + $0x2e] ss:$2 sm:$0xff] }
 0x2dc   : > { %v4904_v13 = vadd.f32 %v4896_v39, %v4851_v17  ;;  %v5055_v16 = vmul.f32 %v9003_v40, %v5041_v22  ;;  %v5076_v20 = vmul.f32 %v9014_v54, %v5041_v22  ;;  %v5108_v37 = vmul.f32 %v9014_v54, %v5094_v47  ;;  %v9048_v17 = vld [vmem:[%s9635_s5 + $0xc] ss:$0 sm:$0xff] }
 0x2dd   : > { %v7061_v52 = vpop.eup %7060  ;;  %4517 = vst.msk [vmem:[#allocation3 + $0x90] sm:$0xff] %vm4491_vm5, %v4484_v25  ;;  %v4489_v7 = vmul.f32 %v4473_v11, %v4361_v10  ;;  %v4925_v6 = vadd.f32 %v4917_v18, %v4872_v45  ;;  %v4548_v5 = vmul.f32 %v8919_v34, %v4532_v2  ;;  %v4580_v32 = vmul.f32 %v8919_v34, %v4568_v51  ;;  %v5253_v11 = vld [vmem:[#allocation3 + $0x2f] ss:$2 sm:$0xff] }
 0x2de   : > { %v4471_v44 = vadd.f32 1.0, %v7061_v52  ;;  %v4957_v0 = vadd.f32 %v4949_v19, %v4904_v13  ;;  %v4601_v21 = vmul.f32 %v8935_v62, %v4568_v51  ;;  %v4633_v57 = vmul.f32 %v8935_v62, %v4621_v23 }
 0x2df   : > { %v7063_v35 = vpop.eup %7062  ;;  %4522 = vst.msk [vmem:[#allocation3 + $0xe8] sm:$0xff] %vm4491_vm5, %v4489_v7  ;;  %v4978_v48 = vadd.f32 %v4970_v15, %v4925_v6  ;;  %v4654_v10 = vmul.f32 %v8946_v3, %v4621_v23  ;;  %v4686_v24 = vmul.f32 %v8946_v3, %v4674_v42  ;;  %v5129_v12 = vmul.f32 %v9033_v53, %v5094_v47  ;;  %v9055_v47 = vld [vmem:[%s9635_s5 + $0xd] ss:$0 sm:$0xff] }
 0x2e0   : > { %v4487_v14 = vmul.f32 %v4471_v44, %v4359_v41  ;;  %v5010_v55 = vadd.f32 %v5002_v27, %v4957_v0  ;;  %v4474_v4 = vadd.f32 1.0, %v7063_v35  ;;  %v4609_v30 = vadd.f32 %v4601_v21, %v4548_v5  ;;  %v4780_v41 = vld [vmem:[#allocation3 + $0x66] ss:$2 sm:$0xff] }
 0x2e1   : > { %v4641_v61 = vadd.f32 %v4633_v57, %v4580_v32  ;;  %v5031_v33 = vadd.f32 %v5023_v38, %v4978_v48  ;;  %v4707_v59 = vmul.f32 %v8955_v43, %v4674_v42  ;;  %v4739_v8 = vmul.f32 %v8955_v43, %v4727_v26  ;;  %v9065_v38 = vld [vmem:[%s9635_s5 + $0xe] ss:$0 sm:$0xff]  ;;  %v5306_v44 = vld [vmem:[#allocation3 + $0x30] ss:$2 sm:$0xff] }
 0x2e2   : > { %4520 = vst.msk [vmem:[#allocation3 + $0xc8] sm:$0xff] %vm4491_vm5, %v4487_v14  ;;  %v5063_v29 = vadd.f32 %v5055_v16, %v5010_v55  ;;  %v4490_v49 = vmul.f32 %v4474_v4, %v4362_v1  ;;  %v4662_v39 = vadd.f32 %v4654_v10, %v4609_v30  ;;  %v5161_v15 = vmul.f32 %v9033_v53, %v5147_v50  ;;  %v4833_v16 = vld [vmem:[#allocation3 + $0x67] ss:$2 sm:$0xff]  ;;  %v4886_v57 = vld [vmem:[#allocation3 + $0x68] ss:$2 sm:$0xff] }
 0x2e3   : > { %v4694_v22 = vadd.f32 %v4686_v24, %v4641_v61  ;;  %v5084_v18 = vadd.f32 %v5076_v20, %v5031_v33  ;;  %v4760_v1 = vmul.f32 %v8965_v36, %v4727_v26  ;;  %v4792_v27 = vmul.f32 %v8965_v36, %v4780_v41  ;;  %v4526_v20 = vld [vmem:[#allocation3 + $0x1] ss:$2 sm:$0xff]  ;;  %v4992_v55 = vld [vmem:[#allocation3 + $0x6a] ss:$2 sm:$0xff] }
 0x2e4   : > { %v7065_v25 = vpop.eup %7064  ;;  %v5116_v19 = vadd.f32 %v5108_v37, %v5063_v29  ;;  %4523 = vst.msk [vmem:[#allocation3 + $0xf0] sm:$0xff] %vm4491_vm5, %v4490_v49  ;;  %v4715_v45 = vadd.f32 %v4707_v59, %v4662_v39  ;;  %v5182_v46 = vmul.f32 %v9048_v17, %v5147_v50  ;;  %v5214_v52 = vmul.f32 %v9048_v17, %v5200_v9 }
 0x2e5   : > { %v4472_v2 = vadd.f32 1.0, %v7065_v25  ;;  %v4747_v13 = vadd.f32 %v4739_v8, %v4694_v22  ;;  %v5137_v51 = vadd.f32 %v5129_v12, %v5084_v18  ;;  %v5235_v7 = vmul.f32 %v9055_v47, %v5200_v9  ;;  %v5045_v12 = vld [vmem:[#allocation3 + $0x6b] ss:$2 sm:$0xff] }
 0x2e6   : > { %v5169_v23 = vadd.f32 %v5161_v15, %v5116_v19  ;;  %v4768_v6 = vadd.f32 %v4760_v1, %v4715_v45  ;;  %v5267_v32 = vmul.f32 %v9055_v47, %v5253_v11  ;;  %v4813_v21 = vmul.f32 %v8972_v60, %v4780_v41  ;;  %v4540_v35 = vld [vmem:[#allocation3 + $0xe1] ss:$2 sm:$0xff]  ;;  %v5098_v15 = vld [vmem:[#allocation3 + $0x6c] ss:$2 sm:$0xff] }
 0x2e7   : > { %v4488_v37 = vmul.f32 %v4472_v2, %v9007_v63  ;;  %v4800_v0 = vadd.f32 %v4792_v27, %v4747_v13  ;;  %v5190_v42 = vadd.f32 %v5182_v46, %v5137_v51  ;;  %v5288_v14 = vmul.f32 %v9065_v38, %v5253_v11  ;;  %v4939_v63 = vld [vmem:[#allocation3 + $0x69] ss:$2 sm:$0xff] }
 0x2e8   : > { %v5222_v5 = vadd.f32 %v5214_v52, %v5169_v23  ;;  %v4845_v48 = vmul.f32 %v8972_v60, %v4833_v16  ;;  %v9075_v10 = vmul.f32 %v8919_v34, %v4526_v20  ;;  %v5320_v50 = vmul.f32 %v9065_v38, %v5306_v44  ;;  %v5151_v1 = vld [vmem:[#allocation3 + $0x6d] ss:$2 sm:$0xff]  ;;  %v9093_v52 = vld [vmem:[%s9636_s6] ss:$0 sm:$0xff] }
 0x2e9   : > { %4521 = vst.msk [vmem:[#allocation3 + $0xd0] sm:$0xff] %vm4491_vm5, %v4488_v37  ;;  %v5243_v26 = vadd.f32 %v5235_v7, %v5190_v42  ;;  %v4821_v30 = vadd.f32 %v4813_v21, %v4768_v6  ;;  %v4866_v24 = vmul.f32 %v8982_v28, %v4833_v16  ;;  %v4898_v33 = vmul.f32 %v8982_v28, %v4886_v57 }
 0x2ea   : > { %v5275_v4 = vadd.f32 %v5267_v32, %v5222_v5  ;;  %v4853_v61 = vadd.f32 %v4845_v48, %v4800_v0  ;;  %v4919_v29 = vmul.f32 %v8987_v56, %v4886_v57  ;;  %v4552_v59 = vmul.f32 %v8919_v34, %v4540_v35 }
 0x2eb   : > { %v4576_v41 = vld [vmem:[#allocation3 + $0xe2] ss:$2 sm:$0xff]  ;;  %v4629_v49 = vld [vmem:[#allocation3 + $0xe3] ss:$2 sm:$0xff]  ;;  %v4951_v9 = vmul.f32 %v8987_v56, %v4939_v63  ;;  %v4972_v39 = vmul.f32 %v8996_v58, %v4939_v63  ;;  %v5004_v22 = vmul.f32 %v8996_v58, %v4992_v55  ;;  %v5025_v19 = vmul.f32 %v9003_v40, %v4992_v55 }
 0x2ec   : > { %v4584_v8 = vmul.f32 %v8919_v34, %v4576_v41  ;;  %v4605_v25 = vmul.f32 %v8935_v62, %v4576_v41  ;;  %v4637_v18 = vmul.f32 %v8935_v62, %v4629_v49  ;;  %v4682_v2 = vld [vmem:[#allocation3 + $0xe4] ss:$2 sm:$0xff]  ;;  %v4735_v11 = vld [vmem:[#allocation3 + $0xe5] ss:$2 sm:$0xff]  ;;  %v5296_v45 = vadd.f32 %v5288_v14, %v5243_v26 }
 0x2ed   : > { %v5328_v13 = vadd.f32 %v5320_v50, %v5275_v4  ;;  %v4874_v27 = vadd.f32 %v4866_v24, %v4821_v30  ;;  %v5057_v51 = vmul.f32 %v9003_v40, %v5045_v12  ;;  %v4906_v16 = vadd.f32 %v4898_v33, %v4853_v61  ;;  %v4788_v7 = vld [vmem:[#allocation3 + $0xe6] ss:$2 sm:$0xff]  ;;  %v4841_v57 = vld [vmem:[#allocation3 + $0xe7] ss:$2 sm:$0xff] }
 0x2ee   : > { %v4613_v23 = vadd.f32 %v4605_v25, %v4552_v59  ;;  %v4645_v46 = vadd.f32 %v4637_v18, %v4584_v8  ;;  %v5078_v20 = vmul.f32 %v9014_v54, %v5045_v12  ;;  %v4658_v37 = vmul.f32 %v8946_v3, %v4629_v49  ;;  %v4894_v14 = vld [vmem:[#allocation3 + $0xe8] ss:$2 sm:$0xff]  ;;  %v5861_v26 = vld [vmem:[%s9637_s7] sm:$0xff]  ;;  %v4947_v61 = vld [vmem:[#allocation3 + $0xe9] ss:$2 sm:$0xff] }
 0x2ef   : > { %v5110_v44 = vmul.f32 %v9014_v54, %v5098_v15  ;;  %v5131_v6 = vmul.f32 %v9033_v53, %v5098_v15  ;;  %v5163_v0 = vmul.f32 %v9033_v53, %v5151_v1  ;;  %v4690_v42 = vmul.f32 %v8946_v3, %v4682_v2  ;;  %6948 = vmatpush3.msra.mxu0 %v5861_v26 }
 0x2f0   : > { %v4711_v5 = vmul.f32 %v8955_v43, %v4682_v2  ;;  %v4743_v32 = vmul.f32 %v8955_v43, %v4735_v11  ;;  %v9104_v21 = vmul.f32 %v8965_v36, %v4735_v11  ;;  %v4666_v35 = vadd.f32 %v4658_v37, %v4613_v23  ;;  %6959 = vmatprep.subr.mxu0 %v9759_v31  ;;  %v5204_v11 = vld [vmem:[#allocation3 + $0x6e] ss:$2 sm:$0xff] }
 0x2f1   : > { %v5343_v48 = vadd.f32 %v9093_v52, %v5296_v45  ;;  %v5423_v63 = vadd.f32 %v9093_v52, %v5328_v13  ;;  %v4927_v55 = vadd.f32 %v4919_v29, %v4874_v27  ;;  %v4698_v4 = vadd.f32 %v4690_v42, %v4645_v46  ;;  %v5257_v46 = vld [vmem:[#allocation3 + $0x6f] ss:$2 sm:$0xff] }
 0x2f2   : > { %v9112_v50 = vmul.f32 %v8965_v36, %v4788_v7  ;;  %v9115_v30 = vmul.f32 %v8972_v60, %v4788_v7  ;;  %v4959_v24 = vadd.f32 %v4951_v9, %v4906_v16  ;;  %v9118_v33 = vmul.f32 %v8972_v60, %v4841_v57  ;;  %v4562_v16 = vld [vmem:[#allocation3 + $0x2] ss:$2 sm:$0xff] }
 0x2f3   : > { %v9121_v12 = vmul.f32 %v8982_v28, %v4841_v57  ;;  %v5359_v29 = vmul.f32 0.044715, %v5343_v48  ;;  %v5439_v59 = vmul.f32 0.044715, %v5423_v63  ;;  %v9125_v41 = vmul.f32 %v8982_v28, %v4894_v14 }
 0x2f4   : > { %v9128_v49 = vmul.f32 %v8987_v56, %v4894_v14  ;;  %v4980_v8 = vadd.f32 %v4972_v39, %v4927_v55  ;;  %v5012_v25 = vadd.f32 %v5004_v22, %v4959_v24  ;;  %v4719_v9 = vadd.f32 %v4711_v5, %v4666_v35  ;;  %v4615_v22 = vld [vmem:[#allocation3 + $0x3] ss:$2 sm:$0xff] }
 0x2f5   : > { %9760 = vst [vmem:[#allocation5_spill] sm:$0xff] %v9125_v41  ;;  %v9131_v18 = vmul.f32 %v8987_v56, %v4947_v61  ;;  %v5367_v15 = vmul.f32 %v5359_v29, %v5343_v48  ;;  %v5447_v2 = vmul.f32 %v5439_v59, %v5423_v63  ;;  %v4751_v45 = vadd.f32 %v4743_v32, %v4698_v4  ;;  %v5310_v4 = vld [vmem:[#allocation3 + $0x70] ss:$2 sm:$0xff] }
 0x2f6   : > { %9761 = vst [vmem:[#allocation10_spill] sm:$0xff] %v9128_v49  ;;  %v5033_v13 = vadd.f32 %v5025_v19, %v4980_v8  ;;  %v5065_v27 = vadd.f32 %v5057_v51, %v5012_v25  ;;  %v5184_v23 = vmul.f32 %v9048_v17, %v5151_v1  ;;  %v9134_v37 = vmul.f32 0.5, %v5343_v48  ;;  %v4668_v29 = vld [vmem:[#allocation3 + $0x4] ss:$2 sm:$0xff] }
 0x2f7   : > { %9762 = vst [vmem:[#allocation11_spill] sm:$0xff] %v9131_v18  ;;  %v5375_v7 = vmul.f32 %v5367_v15, %v5343_v48  ;;  %v9136_v42 = vmul.f32 0.5, %v5423_v63  ;;  %v5455_v39 = vmul.f32 %v5447_v2, %v5423_v63  ;;  %v5216_v35 = vmul.f32 %v9048_v17, %v5204_v11  ;;  %v4721_v2 = vld [vmem:[#allocation3 + $0x5] ss:$2 sm:$0xff] }
 0x2f8   : > { %v5086_v5 = vadd.f32 %v5078_v20, %v5033_v13  ;;  %v5118_v57 = vadd.f32 %v5110_v44, %v5065_v27  ;;  %v5237_v14 = vmul.f32 %v9055_v47, %v5204_v11  ;;  %v5269_v51 = vmul.f32 %v9055_v47, %v5257_v46 }
 0x2f9   : > { %v5383_v32 = vadd.f32 %v5375_v7, %v5343_v48  ;;  %v5463_v19 = vadd.f32 %v5455_v39, %v5423_v63  ;;  %v4577_v1 = vmul.f32 %v8919_v34, %v4562_v16  ;;  %v4598_v61 = vmul.f32 %v8935_v62, %v4562_v16  ;;  %v4827_v7 = vld [vmem:[#allocation3 + $0x7] ss:$2 sm:$0xff] }
 0x2fa   : > { %v5139_v55 = vadd.f32 %v5131_v6, %v5086_v5  ;;  %v5171_v26 = vadd.f32 %v5163_v0, %v5118_v57  ;;  %v4630_v24 = vmul.f32 %v8935_v62, %v4615_v22  ;;  %v5290_v59 = vmul.f32 %v9065_v38, %v5257_v46  ;;  %v4774_v46 = vld [vmem:[#allocation3 + $0x6] ss:$2 sm:$0xff] }
 0x2fb   : > { %v5391_v20 = vmul.f32 0.7978846, %v5383_v32  ;;  %v5471_v44 = vmul.f32 0.7978846, %v5463_v19  ;;  %v4651_v8 = vmul.f32 %v8946_v3, %v4615_v22  ;;  %v4606_v25 = vadd.f32 %v4598_v61, %v9075_v10  ;;  %v4880_v19 = vld [vmem:[#allocation3 + $0x8] ss:$2 sm:$0xff] }
 0x2fc   : > { %v5192_v48 = vadd.f32 %v5184_v23, %v5139_v55  ;;  %v5224_v63 = vadd.f32 %v5216_v35, %v5171_v26  ;;  %v4638_v15 = vadd.f32 %v4630_v24, %v4577_v1  ;;  %v5322_v6 = vmul.f32 %v9065_v38, %v5310_v4  ;;  %v5039_v61 = vld [vmem:[#allocation3 + $0xb] ss:$2 sm:$0xff] }
 0x2fd   : > { %7066 = vtanh.f32 %v5391_v20  ;;  %v4683_v0 = vmul.f32 %v8946_v3, %v4668_v29  ;;  %v4704_v11 = vmul.f32 %v8955_v43, %v4668_v29  ;;  %v4659_v16 = vadd.f32 %v4651_v8, %v4606_v25 }
 0x2fe   : > { %7068 = vtanh.f32 %v5471_v44  ;;  %v5245_v13 = vadd.f32 %v5237_v14, %v5192_v48  ;;  %v5277_v27 = vadd.f32 %v5269_v51, %v5224_v63  ;;  %v9151_v23 = vadd.f32 %v9104_v21, %v4719_v9  ;;  %v4933_v14 = vld [vmem:[#allocation3 + $0x9] ss:$2 sm:$0xff]  ;;  %v4986_v9 = vld [vmem:[#allocation3 + $0xa] ss:$2 sm:$0xff] }
 0x2ff   : > { %v9154_v10 = vadd.f32 %v9112_v50, %v4751_v45  ;;  %v4691_v39 = vadd.f32 %v4683_v0, %v4638_v15  ;;  %v4736_v22 = vmul.f32 %v8955_v43, %v4721_v2  ;;  %v4712_v35 = vadd.f32 %v4704_v11, %v4659_v16  ;;  %v5145_v15 = vld [vmem:[#allocation3 + $0xd] ss:$2 sm:$0xff] }
 0x300   : > { %v5298_v5 = vadd.f32 %v5290_v59, %v5245_v13  ;;  %v5330_v57 = vadd.f32 %v5322_v6, %v5277_v27  ;;  %v4757_v32 = vmul.f32 %v8965_v36, %v4721_v2  ;;  %v4789_v1 = vmul.f32 %v8965_v36, %v4774_v46  ;;  %v5092_v59 = vld [vmem:[#allocation3 + $0xc] ss:$2 sm:$0xff] }
 0x301   : > { %v4744_v51 = vadd.f32 %v4736_v22, %v4691_v39  ;;  %v4810_v55 = vmul.f32 %v8972_v60, %v4774_v46  ;;  %v4842_v21 = vmul.f32 %v8972_v60, %v4827_v7  ;;  %v4863_v4 = vmul.f32 %v8982_v28, %v4827_v7  ;;  %v5198_v13 = vld [vmem:[#allocation3 + $0xe] ss:$2 sm:$0xff]  ;;  %v5251_v39 = vld [vmem:[#allocation3 + $0xf] ss:$2 sm:$0xff] }
 0x302   : > { %v9162_v50 = vadd.f32 %v9093_v52, %v5298_v5  ;;  %v9165_v45 = vadd.f32 %v9093_v52, %v5330_v57  ;;  %v4765_v26 = vadd.f32 %v4757_v32, %v4712_v35  ;;  %v4895_v29 = vmul.f32 %v8982_v28, %v4880_v19  ;;  %v4530_v32 = vld [vmem:[#allocation3 + $0x41] ss:$2 sm:$0xff] }
 0x303   : > { %v4797_v24 = vadd.f32 %v4789_v1, %v4744_v51  ;;  %v4916_v20 = vmul.f32 %v8987_v56, %v4880_v19  ;;  %v4948_v44 = vmul.f32 %v8987_v56, %v4933_v14  ;;  %v4969_v63 = vmul.f32 %v8996_v58, %v4933_v14  ;;  %v4566_v19 = vld [vmem:[#allocation3 + $0x42] ss:$2 sm:$0xff] }
 0x304   : > { %v5361_v8 = vmul.f32 0.044715, %v9162_v50  ;;  %v5441_v48 = vmul.f32 0.044715, %v9165_v45  ;;  %v5001_v25 = vmul.f32 %v8996_v58, %v4986_v9  ;;  %v4818_v2 = vadd.f32 %v4810_v55, %v4765_v26 }
 0x305   : > { %v4850_v6 = vadd.f32 %v4842_v21, %v4797_v24  ;;  %v5022_v0 = vmul.f32 %v9003_v40, %v4986_v9  ;;  %v5054_v11 = vmul.f32 %v9003_v40, %v5039_v61  ;;  %v5075_v46 = vmul.f32 %v9014_v54, %v5039_v61  ;;  %v4619_v61 = vld [vmem:[#allocation3 + $0x43] ss:$2 sm:$0xff] }
 0x306   : > { %v5369_v27 = vmul.f32 %v5361_v8, %v9162_v50  ;;  %v5449_v16 = vmul.f32 %v5441_v48, %v9165_v45  ;;  %v5107_v7 = vmul.f32 %v9014_v54, %v5092_v59  ;;  %v4871_v22 = vadd.f32 %v4863_v4, %v4818_v2 }
 0x307   : > { %v4903_v5 = vadd.f32 %v4895_v29, %v4850_v6  ;;  %v5128_v57 = vmul.f32 %v9033_v53, %v5092_v59  ;;  %v5160_v35 = vmul.f32 %v9033_v53, %v5145_v15  ;;  %v5181_v1 = vmul.f32 %v9048_v17, %v5145_v15 }
 0x308   : > { %v5377_v14 = vmul.f32 %v5369_v27, %v9162_v50  ;;  %v5457_v51 = vmul.f32 %v5449_v16, %v9165_v45  ;;  %v5213_v55 = vmul.f32 %v9048_v17, %v5198_v13  ;;  %v4924_v21 = vadd.f32 %v4916_v20, %v4871_v22 }
 0x309   : > { %v4956_v9 = vadd.f32 %v4948_v44, %v4903_v5  ;;  %v5234_v26 = vmul.f32 %v9055_v47, %v5198_v13  ;;  %v5266_v4 = vmul.f32 %v9055_v47, %v5251_v39  ;;  %v4547_v8 = vmul.f32 %v8919_v34, %v4530_v32  ;;  %v4672_v44 = vld [vmem:[#allocation3 + $0x44] ss:$2 sm:$0xff] }
 0x30a   : > { %v7067_v24 = vpop.eup %7066  ;;  %v5385_v29 = vadd.f32 %v5377_v14, %v9162_v50  ;;  %v5465_v59 = vadd.f32 %v5457_v51, %v9165_v45  ;;  %v4579_v48 = vmul.f32 %v8919_v34, %v4566_v19  ;;  %v4977_v6 = vadd.f32 %v4969_v63, %v4924_v21 }
 0x30b   : > { %v7069_v2 = vpop.eup %7068  ;;  %v5407_v15 = vadd.f32 1.0, %v7067_v24  ;;  %v5009_v27 = vadd.f32 %v5001_v25, %v4956_v9  ;;  %v4600_v20 = vmul.f32 %v8935_v62, %v4566_v19  ;;  %v4632_v5 = vmul.f32 %v8935_v62, %v4619_v61  ;;  %v4725_v25 = vld [vmem:[#allocation3 + $0x45] ss:$2 sm:$0xff]  ;;  %v4778_v24 = vld [vmem:[#allocation3 + $0x46] ss:$2 sm:$0xff] }
 0x30c   : > { %v5487_v13 = vadd.f32 1.0, %v7069_v2  ;;  %v5393_v16 = vmul.f32 0.7978846, %v5385_v29  ;;  %v5473_v22 = vmul.f32 0.7978846, %v5465_v59  ;;  %v5030_v18 = vadd.f32 %v5022_v0, %v4977_v6 }
 0x30d   : > { %v5415_v14 = vmul.f32 %v5407_v15, %v9134_v37  ;;  %v5062_v51 = vadd.f32 %v5054_v11, %v5009_v27  ;;  %v4608_v49 = vadd.f32 %v4600_v20, %v4547_v8  ;;  %v4640_v41 = vadd.f32 %v4632_v5, %v4579_v48  ;;  %v4884_v20 = vld [vmem:[#allocation3 + $0x48] ss:$2 sm:$0xff] }
 0x30e   : > { %v5495_v32 = vmul.f32 %v5487_v13, %v9136_v42  ;;  %7070 = vtanh.f32 %v5393_v16  ;;  %v4653_v63 = vmul.f32 %v8946_v3, %v4619_v61  ;;  %v5083_v19 = vadd.f32 %v5075_v46, %v5030_v18  ;;  %v5304_v42 = vld [vmem:[#allocation3 + $0x10] ss:$2 sm:$0xff]  ;;  %v4831_v61 = vld [vmem:[#allocation3 + $0x47] ss:$2 sm:$0xff] }
 0x30f   : > { %7072 = vtanh.f32 %v5473_v22  ;;  %v5115_v21 = vadd.f32 %v5107_v7, %v5062_v51  ;;  %v4685_v9 = vmul.f32 %v8946_v3, %v4672_v44  ;;  %v5287_v59 = vmul.f32 %v9065_v38, %v5251_v39 }
 0x310   : > { %v5503_v29 = vmax.f32 %v5415_v14, %v5495_v32  ;;  %v4661_v37 = vadd.f32 %v4653_v63, %v4608_v49  ;;  %v4706_v0 = vmul.f32 %v8955_v43, %v4672_v44  ;;  %v5136_v11 = vadd.f32 %v5128_v57, %v5083_v19 }
 0x311   : > { %v5168_v8 = vadd.f32 %v5160_v35, %v5115_v21  ;;  %v4693_v2 = vadd.f32 %v4685_v9, %v4640_v41  ;;  %v4738_v48 = vmul.f32 %v8955_v43, %v4725_v25  ;;  %v4759_v7 = vmul.f32 %v8965_v36, %v4725_v25  ;;  %v4937_v21 = vld [vmem:[#allocation3 + $0x49] ss:$2 sm:$0xff]  ;;  %v4990_v9 = vld [vmem:[#allocation3 + $0x4a] ss:$2 sm:$0xff] }
 0x312   : > { %5546 = vxpose.xlu0.b32.start.end [1/1] (short) (narrow) %v5503_v29, 32  ;;  %v5812_v18 = vsel %vm4491_vm5, %v5503_v29, -inf  ;;  %v4714_v46 = vadd.f32 %v4706_v0, %v4661_v37  ;;  %v4791_v15 = vmul.f32 %v8965_v36, %v4778_v24  ;;  %v5189_v39 = vadd.f32 %v5181_v1, %v5136_v11 }
 0x313   : > { %v5813_v6 = vrot.slane %v5812_v18, 4  ;;  %v5221_v49 = vadd.f32 %v5213_v55, %v5168_v8  ;;  %v4746_v27 = vadd.f32 %v4738_v48, %v4693_v2  ;;  %v5319_v57 = vmul.f32 %v9065_v38, %v5304_v42 }
 0x314   : > { %v4767_v35 = vadd.f32 %v4759_v7, %v4714_v46  ;;  %v4812_v41 = vmul.f32 %v8972_v60, %v4778_v24  ;;  %v4844_v44 = vmul.f32 %v8972_v60, %v4831_v61  ;;  %v5242_v16 = vadd.f32 %v5234_v26, %v5189_v39  ;;  %v5149_v39 = vld [vmem:[#allocation3 + $0x4d] ss:$2 sm:$0xff] }
 0x315   : > { %v5814_v13 = vmax.f32 %v5812_v18, %v5813_v6  ;;  %v5274_v22 = vadd.f32 %v5266_v4, %v5221_v49  ;;  %v4799_v5 = vadd.f32 %v4791_v15, %v4746_v27  ;;  %v9210_v14 = vadd.f32 %v9115_v30, %v9151_v23  ;;  %v5043_v23 = vld [vmem:[#allocation3 + $0x4b] ss:$2 sm:$0xff] }
 0x316   : > { %v4820_v51 = vadd.f32 %v4812_v41, %v4767_v35  ;;  %v4865_v1 = vmul.f32 %v8982_v28, %v4831_v61  ;;  %v4897_v55 = vmul.f32 %v8982_v28, %v4884_v20  ;;  %v5295_v63 = vadd.f32 %v5287_v59, %v5242_v16  ;;  %v5202_v16 = vld [vmem:[#allocation3 + $0x4e] ss:$2 sm:$0xff] }
 0x317   : > { %v5815_v32 = vrot.slane %v5814_v13, 2  ;;  %v5327_v25 = vadd.f32 %v5319_v57, %v5274_v22  ;;  %v4852_v19 = vadd.f32 %v4844_v44, %v4799_v5  ;;  %v9216_v26 = vadd.f32 %v9118_v33, %v9154_v10 }
 0x318   : > { %v5353_v4 = vmul.f32 0.5, %v9162_v50  ;;  %v4873_v24 = vadd.f32 %v4865_v1, %v4820_v51  ;;  %v4918_v30 = vmul.f32 %v8987_v56, %v4884_v20  ;;  %v5433_v29 = vmul.f32 0.5, %v9165_v45  ;;  %v5096_v50 = vld [vmem:[#allocation3 + $0x4c] ss:$2 sm:$0xff] }
 0x319   : > { %v9222_v37 = vadd.f32 %v9093_v52, %v5295_v63  ;;  %v9225_v59 = vadd.f32 %v9093_v52, %v5327_v25  ;;  %v4905_v0 = vadd.f32 %v4897_v55, %v4852_v19  ;;  %v4950_v8 = vmul.f32 %v8987_v56, %v4937_v21  ;;  %v5255_v55 = vld [vmem:[#allocation3 + $0x4f] ss:$2 sm:$0xff] }
 0x31a   : > { %v4926_v11 = vadd.f32 %v4918_v30, %v4873_v24  ;;  %v4971_v33 = vmul.f32 %v8996_v58, %v4937_v21  ;;  %v5003_v10 = vmul.f32 %v8996_v58, %v4990_v9  ;;  %v9230_v2 = vmax.f32 %v5814_v13, %v5815_v32  ;;  %v4570_v21 = vld [vmem:[#allocation3 + $0x82] ss:$2 sm:$0xff] }
 0x31b   : > { %v7071_v42 = vpop.eup %7070  ;;  %v5358_v45 = vmul.f32 0.044715, %v9222_v37  ;;  %v5024_v48 = vmul.f32 %v9003_v40, %v4990_v9  ;;  %v5056_v61 = vmul.f32 %v9003_v40, %v5043_v23  ;;  %v5438_v7 = vmul.f32 0.044715, %v9225_v59 }
 0x31c   : > { %v7073_v18 = vpop.eup %7072  ;;  %v5409_v46 = vadd.f32 1.0, %v7071_v42  ;;  %v4958_v15 = vadd.f32 %v4950_v8, %v4905_v0  ;;  %v4979_v6 = vadd.f32 %v4971_v33, %v4926_v11  ;;  %v5077_v20 = vmul.f32 %v9014_v54, %v5043_v23  ;;  %v4534_v8 = vld [vmem:[#allocation3 + $0x81] ss:$2 sm:$0xff] }
 0x31d   : > { %v5489_v49 = vadd.f32 1.0, %v7073_v18  ;;  %v5366_v27 = vmul.f32 %v5358_v45, %v9222_v37  ;;  %v5109_v57 = vmul.f32 %v9014_v54, %v5096_v50  ;;  %v5446_v41 = vmul.f32 %v5438_v7, %v9225_v59  ;;  %v4623_v33 = vld [vmem:[#allocation3 + $0x83] ss:$2 sm:$0xff]  ;;  %v4676_v7 = vld [vmem:[#allocation3 + $0x84] ss:$2 sm:$0xff] }
 0x31e   : > { %v5417_v35 = vmul.f32 %v5409_v46, %v5353_v4  ;;  %v5011_v44 = vadd.f32 %v5003_v10, %v4958_v15  ;;  %v5032_v13 = vadd.f32 %v5024_v48, %v4979_v6  ;;  %v5130_v51 = vmul.f32 %v9033_v53, %v5096_v50  ;;  %v5308_v15 = vld [vmem:[#allocation3 + $0x50] ss:$2 sm:$0xff] }
 0x31f   : > { %v5497_v22 = vmul.f32 %v5489_v49, %v5433_v29  ;;  %v5374_v5 = vmul.f32 %v5366_v27, %v9222_v37  ;;  %v5162_v1 = vmul.f32 %v9033_v53, %v5149_v39  ;;  %v5454_v32 = vmul.f32 %v5446_v41, %v9225_v59  ;;  %v5976_v27 = vld [vmem:[%s9639_s9 + $0x8] sm:$0xff] }
 0x320   : > { %v5064_v63 = vadd.f32 %v5056_v61, %v5011_v44  ;;  %v5085_v25 = vadd.f32 %v5077_v20, %v5032_v13  ;;  %v5183_v19 = vmul.f32 %v9048_v17, %v5149_v39  ;;  %v5215_v24 = vmul.f32 %v9048_v17, %v5202_v16  ;;  %v4729_v41 = vld [vmem:[#allocation3 + $0x85] ss:$2 sm:$0xff]  ;;  %6953 = vmatpush3.msra.mxu1 %v5976_v27 }
 0x321   : > { %v5505_v9 = vmax.f32 %v5417_v35, %v5497_v22  ;;  %v5382_v4 = vadd.f32 %v5374_v5, %v9222_v37  ;;  %v5236_v30 = vmul.f32 %v9055_v47, %v5202_v16  ;;  %v5462_v23 = vadd.f32 %v5454_v32, %v9225_v59  ;;  %6954 = vmatprep.subr.mxu1 %v9759_v31 }
 0x322   : > { %v5117_v29 = vadd.f32 %v5109_v57, %v5064_v63  ;;  %v5138_v0 = vadd.f32 %v5130_v51, %v5085_v25  ;;  %v5268_v11 = vmul.f32 %v9055_v47, %v5255_v55  ;;  %v5289_v42 = vmul.f32 %v9065_v38, %v5255_v55 }
 0x323   : > { %5620 = vxpose.xlu1.b32.start.end [1/1] (short) (narrow) %v5505_v9, 32  ;;  %v5826_v10 = vsel %vm4491_vm5, %v5505_v9, -inf  ;;  %v5390_v50 = vmul.f32 0.7978846, %v5382_v4  ;;  %v4581_v45 = vmul.f32 %v8919_v34, %v4570_v21  ;;  %v5470_v61 = vmul.f32 0.7978846, %v5462_v23 }
 0x324   : > { %v5827_v48 = vrot.slane %v5826_v10, 4  ;;  %v5170_v18 = vadd.f32 %v5162_v1, %v5117_v29  ;;  %v5191_v46 = vadd.f32 %v5183_v19, %v5138_v0  ;;  %v4549_v6 = vmul.f32 %v8919_v34, %v4534_v8  ;;  %v4782_v1 = vld [vmem:[#allocation3 + $0x86] ss:$2 sm:$0xff]  ;;  %v4835_v4 = vld [vmem:[#allocation3 + $0x87] ss:$2 sm:$0xff] }
 0x325   : > { %7074 = vtanh.f32 %v5390_v50  ;;  %v4602_v39 = vmul.f32 %v8935_v62, %v4570_v21  ;;  %v4634_v49 = vmul.f32 %v8935_v62, %v4623_v33  ;;  %v4655_v16 = vmul.f32 %v8946_v3, %v4623_v33 }
 0x326   : > { %v5828_v20 = vmax.f32 %v5826_v10, %v5827_v48  ;;  %7076 = vtanh.f32 %v5470_v61  ;;  %v5223_v57 = vadd.f32 %v5215_v24, %v5170_v18  ;;  %v5244_v35 = vadd.f32 %v5236_v30, %v5191_v46 }
 0x327   : > { %v4610_v44 = vadd.f32 %v4602_v39, %v4549_v6  ;;  %v4642_v13 = vadd.f32 %v4634_v49, %v4581_v45  ;;  %v4687_v34 = vmul.f32 %v8946_v3, %v4676_v7  ;;  %v5321_v51 = vmul.f32 %v9065_v38, %v5308_v15  ;;  %v4994_v15 = vld [vmem:[#allocation3 + $0x8a] ss:$2 sm:$0xff] }
 0x328   : > { %v5829_v22 = vrot.slane %v5828_v20, 2  ;;  %v5276_v62 = vadd.f32 %v5268_v11, %v5223_v57  ;;  %v5297_v5 = vadd.f32 %v5289_v42, %v5244_v35  ;;  %v4708_v63 = vmul.f32 %v8955_v43, %v4676_v7  ;;  %v5047_v57 = vld [vmem:[#allocation3 + $0x8b] ss:$2 sm:$0xff] }
 0x329   : > { %v4663_v55 = vadd.f32 %v4655_v16, %v4610_v44  ;;  %v4695_v32 = vadd.f32 %v4687_v34, %v4642_v13  ;;  %v4740_v25 = vmul.f32 %v8955_v43, %v4729_v41  ;;  %v9267_v19 = vadd.f32 %v9121_v12, %v9210_v14  ;;  %v4888_v14 = vld [vmem:[#allocation3 + $0x88] ss:$2 sm:$0xff] }
 0x32a   : > { %v5817_v3 = vrot.slane %v9230_v2, 1  ;;  %v5329_v21 = vadd.f32 %v5321_v51, %v5276_v62  ;;  %v5344_v9 = vadd.f32 %v9093_v52, %v5297_v5  ;;  %v4761_v23 = vmul.f32 %v8965_v36, %v4729_v41  ;;  %v5100_v51 = vld [vmem:[#allocation3 + $0x8c] ss:$2 sm:$0xff] }
 0x32b   : > { %v4716_v24 = vadd.f32 %v4708_v63, %v4663_v55  ;;  %v4748_v30 = vadd.f32 %v4740_v25, %v4695_v32  ;;  %v4793_v29 = vmul.f32 %v8965_v36, %v4782_v1  ;;  %v9273_v0 = vmax.f32 %v5828_v20, %v5829_v22  ;;  %v5153_v63 = vld [vmem:[#allocation3 + $0x8d] ss:$2 sm:$0xff] }
 0x32c   : > { %v5350_v43 = vmul.f32 0.5, %v9222_v37  ;;  %v5360_v11 = vmul.f32 0.044715, %v5344_v9  ;;  %v9277_v12 = vadd.f32 %v9093_v52, %v5329_v21  ;;  %v4814_v10 = vmul.f32 %v8972_v60, %v4782_v1  ;;  %v4941_v37 = vld [vmem:[#allocation3 + $0x89] ss:$2 sm:$0xff] }
 0x32d   : > { %v4769_v8 = vadd.f32 %v4761_v23, %v4716_v24  ;;  %v4801_v33 = vadd.f32 %v4793_v29, %v4748_v30  ;;  %v4846_v50 = vmul.f32 %v8972_v60, %v4835_v4  ;;  %v9282_v42 = vmax.f32 %v9230_v2, %v5817_v3  ;;  %v4572_v23 = vld [vmem:[#allocation3 + $0xa2] ss:$2 sm:$0xff] }
 0x32e   : > { %v5430_v36 = vmul.f32 0.5, %v9225_v59  ;;  %v5368_v45 = vmul.f32 %v5360_v11, %v5344_v9  ;;  %v5440_v48 = vmul.f32 0.044715, %v9277_v12  ;;  %v4867_v46 = vmul.f32 %v8982_v28, %v4835_v4 }
 0x32f   : > { %v4822_v61 = vadd.f32 %v4814_v10, %v4769_v8  ;;  %v4854_v18 = vadd.f32 %v4846_v50, %v4801_v33  ;;  %v4899_v7 = vmul.f32 %v8982_v28, %v4888_v14  ;;  %v5831_v6 = vrot.slane %v9273_v0, 1  ;;  %v4625_v33 = vld [vmem:[#allocation3 + $0xa3] ss:$2 sm:$0xff] }
 0x330   : > { %v9289_v39 = vmul.f32 0.5, %v5344_v9  ;;  %v5376_v60 = vmul.f32 %v5368_v45, %v5344_v9  ;;  %v5448_v2 = vmul.f32 %v5440_v48, %v9277_v12  ;;  %v4920_v27 = vmul.f32 %v8987_v56, %v4888_v14 }
 0x331   : > { %v4875_v49 = vadd.f32 %v4867_v46, %v4822_v61  ;;  %v4907_v59 = vadd.f32 %v4899_v7, %v4854_v18  ;;  %v4952_v20 = vmul.f32 %v8987_v56, %v4941_v37  ;;  %v4973_v28 = vmul.f32 %v8996_v58, %v4941_v37  ;;  %v9310_v37 = vld [vmem:[%s9635_s5] ss:$0 sm:$0xff]  ;;  %v4678_v61 = vld [vmem:[#allocation3 + $0xa4] ss:$2 sm:$0xff] }
 0x332   : > { %v7075_v35 = vpop.eup %7074  ;;  %v5384_v41 = vadd.f32 %v5376_v60, %v5344_v9  ;;  %v5456_v44 = vmul.f32 %v5448_v2, %v9277_v12  ;;  %v5005_v13 = vmul.f32 %v8996_v58, %v4994_v15  ;;  %v5026_v5 = vmul.f32 %v9003_v40, %v4994_v15  ;;  %v5206_v58 = vld [vmem:[#allocation3 + $0x8e] ss:$2 sm:$0xff] }
 0x333   : > { %v7077_v16 = vpop.eup %7076  ;;  %v5406_v34 = vadd.f32 1.0, %v7075_v35  ;;  %v4928_v22 = vadd.f32 %v4920_v27, %v4875_v49  ;;  %v4960_v62 = vadd.f32 %v4952_v20, %v4907_v59  ;;  %v5058_v32 = vmul.f32 %v9003_v40, %v5047_v57  ;;  %v4536_v40 = vld [vmem:[#allocation3 + $0xa1] ss:$2 sm:$0xff]  ;;  %v5312_v20 = vld [vmem:[#allocation3 + $0x90] ss:$2 sm:$0xff] }
 0x334   : > { %v5486_v1 = vadd.f32 1.0, %v7077_v16  ;;  %v5392_v55 = vmul.f32 0.7978846, %v5384_v41  ;;  %v5464_v56 = vadd.f32 %v5456_v44, %v9277_v12  ;;  %v5079_v9 = vmul.f32 %v9014_v54, %v5047_v57  ;;  %v4731_v27 = vld [vmem:[#allocation3 + $0xa5] ss:$2 sm:$0xff] }
 0x335   : > { %v5414_v25 = vmul.f32 %v5406_v34, %v5350_v43  ;;  %v4981_v3 = vadd.f32 %v4973_v28, %v4928_v22  ;;  %v5013_v21 = vadd.f32 %v5005_v13, %v4960_v62  ;;  %v5111_v30 = vmul.f32 %v9014_v54, %v5100_v51  ;;  %v9326_v41 = vld [vmem:[%s9635_s5 + $0x2] ss:$0 sm:$0xff] }
 0x336   : > { %v5494_v4 = vmul.f32 %v5486_v1, %v5430_v36  ;;  %7078 = vtanh.f32 %v5392_v55  ;;  %v5472_v24 = vmul.f32 0.7978846, %v5464_v56  ;;  %v5132_v14 = vmul.f32 %v9033_v53, %v5100_v51  ;;  %v5259_v36 = vld [vmem:[#allocation3 + $0x8f] ss:$2 sm:$0xff]  ;;  %v9334_v51 = vld [vmem:[%s9635_s5 + $0x3] ss:$0 sm:$0xff] }
 0x337   : > { %v5034_v29 = vadd.f32 %v5026_v5, %v4981_v3  ;;  %v5066_v11 = vadd.f32 %v5058_v32, %v5013_v21  ;;  %v5164_v8 = vmul.f32 %v9033_v53, %v5153_v63  ;;  %v5185_v10 = vmul.f32 %v9048_v17, %v5153_v63  ;;  %v4837_v3 = vld [vmem:[#allocation3 + $0xa7] ss:$2 sm:$0xff] }
 0x338   : > { %v5502_v43 = vmax.f32 %v5414_v25, %v5494_v4  ;;  %7080 = vtanh.f32 %v5472_v24  ;;  %v5217_v50 = vmul.f32 %v9048_v17, %v5206_v58  ;;  %v5238_v54 = vmul.f32 %v9055_v47, %v5206_v58  ;;  %v9318_v17 = vld [vmem:[%s9635_s5 + $0x1] ss:$0 sm:$0xff]  ;;  %v9342_v58 = vld [vmem:[%s9635_s5 + $0x4] ss:$0 sm:$0xff] }
 0x339   : > { %v5087_v45 = vadd.f32 %v5079_v9, %v5034_v29  ;;  %v5119_v48 = vadd.f32 %v5111_v30, %v5066_v11  ;;  %v4582_v53 = vmul.f32 %v9310_v37, %v4572_v23  ;;  %v4550_v46 = vmul.f32 %v9310_v37, %v4536_v40  ;;  %v9350_v40 = vld [vmem:[%s9635_s5 + $0x5] ss:$0 sm:$0xff] }
 0x33a   : > { %5510 = vxpose.xlu0.b32.start.end [1/1] (short) (narrow) %v5502_v43, 32  ;;  %v5805_v18 = vsel %vm4491_vm5, %v5502_v43, -inf  ;;  %v4603_v7 = vmul.f32 %v9318_v17, %v4572_v23  ;;  %v4635_v15 = vmul.f32 %v9318_v17, %v4625_v33  ;;  %v5270_v59 = vmul.f32 %v9055_v47, %v5259_v36  ;;  %v4784_v47 = vld [vmem:[#allocation3 + $0xa6] ss:$2 sm:$0xff] }
 0x33b   : > { %v5806_v60 = vrot.slane %v5805_v18, 4  ;;  %v5140_v2 = vadd.f32 %v5132_v14, %v5087_v45  ;;  %v5172_v49 = vadd.f32 %v5164_v8, %v5119_v48  ;;  %v4656_v44 = vmul.f32 %v9326_v41, %v4625_v33  ;;  %v4890_v14 = vld [vmem:[#allocation3 + $0xa8] ss:$2 sm:$0xff]  ;;  %v9363_v48 = vld [vmem:[%s9635_s5 + $0x6] ss:$0 sm:$0xff] }
 0x33c   : > { %v4611_v57 = vadd.f32 %v4603_v7, %v4550_v46  ;;  %v4643_v35 = vadd.f32 %v4635_v15, %v4582_v53  ;;  %v4688_v28 = vmul.f32 %v9326_v41, %v4678_v61  ;;  %v5291_v22 = vmul.f32 %v9065_v38, %v5259_v36 }
 0x33d   : > { %v5807_v13 = vmax.f32 %v5805_v18, %v5806_v60  ;;  %v5193_v16 = vadd.f32 %v5185_v10, %v5140_v2  ;;  %v5225_v34 = vadd.f32 %v5217_v50, %v5172_v49  ;;  %v4709_v1 = vmul.f32 %v9334_v51, %v4678_v61  ;;  %v4943_v10 = vld [vmem:[#allocation3 + $0xa9] ss:$2 sm:$0xff] }
 0x33e   : > { %v4664_v62 = vadd.f32 %v4656_v44, %v4611_v57  ;;  %v4696_v5 = vadd.f32 %v4688_v28, %v4643_v35  ;;  %v4741_v55 = vmul.f32 %v9334_v51, %v4731_v27  ;;  %v5323_v25 = vmul.f32 %v9065_v38, %v5312_v20  ;;  %v5049_v44 = vld [vmem:[#allocation3 + $0xab] ss:$2 sm:$0xff] }
 0x33f   : > { %v5808_v56 = vrot.slane %v5807_v13, 2  ;;  %v5246_v32 = vadd.f32 %v5238_v54, %v5193_v16  ;;  %v5278_v63 = vadd.f32 %v5270_v59, %v5225_v34  ;;  %v4762_v4 = vmul.f32 %v9342_v58, %v4731_v27  ;;  %v4996_v59 = vld [vmem:[#allocation3 + $0xaa] ss:$2 sm:$0xff]  ;;  %v9385_v34 = vld [vmem:[%s9635_s5 + $0x8] ss:$0 sm:$0xff] }
 0x340   : > { %v4717_v21 = vadd.f32 %v4709_v1, %v4664_v62  ;;  %v4749_v9 = vadd.f32 %v4741_v55, %v4696_v5  ;;  %v4794_v24 = vmul.f32 %v9342_v58, %v4784_v47  ;;  %v5432_v23 = vmul.f32 0.5, %v9277_v12  ;;  %v5102_v1 = vld [vmem:[#allocation3 + $0xac] ss:$2 sm:$0xff] }
 0x341   : > { %v5809_v30 = vmax.f32 %v5807_v13, %v5808_v56  ;;  %v5299_v29 = vadd.f32 %v5291_v22, %v5246_v32  ;;  %v5331_v11 = vadd.f32 %v5323_v25, %v5278_v63  ;;  %v4815_v33 = vmul.f32 %v9350_v40, %v4784_v47  ;;  %v9394_v56 = vld [vmem:[%s9635_s5 + $0x9] ss:$0 sm:$0xff]  ;;  %v5155_v25 = vld [vmem:[#allocation3 + $0xad] ss:$2 sm:$0xff] }
 0x342   : > { %v4770_v8 = vadd.f32 %v4762_v4, %v4717_v21  ;;  %v4802_v38 = vadd.f32 %v4794_v24, %v4749_v9  ;;  %v4847_v43 = vmul.f32 %v9350_v40, %v4837_v3  ;;  %v4868_v54 = vmul.f32 %v9363_v48, %v4837_v3  ;;  %v9402_v4 = vld [vmem:[%s9635_s5 + $0xa] ss:$0 sm:$0xff] }
 0x343   : > { %v7079_v50 = vpop.eup %7078  ;;  %v5810_v36 = vrot.slane %v5809_v30, 1  ;;  %v9355_v45 = vadd.f32 %v9093_v52, %v5299_v29  ;;  %v9358_v12 = vadd.f32 %v9093_v52, %v5331_v11  ;;  %v4900_v46 = vmul.f32 %v9363_v48, %v4890_v14  ;;  %v9371_v52 = vld [vmem:[%s9635_s5 + $0x7] ss:$0 sm:$0xff]  ;;  %v9410_v11 = vld [vmem:[%s9635_s5 + $0xb] ss:$0 sm:$0xff] }
 0x344   : > { %v5408_v53 = vadd.f32 1.0, %v7079_v50  ;;  %v4823_v61 = vadd.f32 %v4815_v33, %v4770_v8  ;;  %v4855_v18 = vadd.f32 %v4847_v43, %v4802_v38  ;;  %v4921_v2 = vmul.f32 %v9371_v52, %v4890_v14  ;;  %v5208_v8 = vld [vmem:[#allocation3 + $0xae] ss:$2 sm:$0xff]  ;;  %v4538_v50 = vld [vmem:[#allocation3 + $0xc1] ss:$2 sm:$0xff] }
 0x345   : > { %v7081_v7 = vpop.eup %7080  ;;  %v5811_v15 = vmax.f32 %v5809_v30, %v5810_v36  ;;  %v5362_v60 = vmul.f32 0.044715, %v9355_v45  ;;  %v4953_v49 = vmul.f32 %v9371_v52, %v4943_v10  ;;  %v5442_v57 = vmul.f32 0.044715, %v9358_v12 }
 0x346   : > { %v5416_v27 = vmul.f32 %v5408_v53, %v9289_v39  ;;  %v5488_v20 = vadd.f32 1.0, %v7081_v7  ;;  %v4876_v35 = vadd.f32 %v4868_v54, %v4823_v61  ;;  %v4908_v16 = vadd.f32 %v4900_v46, %v4855_v18  ;;  %v9419_v61 = vld [vmem:[%s9635_s5 + $0xc] ss:$0 sm:$0xff] }
 0x347   : > { %v9379_v28 = vsel %vm5880_vm9, %v9282_v42, %v5811_v15  ;;  %v5370_v13 = vmul.f32 %v5362_v60, %v9355_v45  ;;  %v4974_v22 = vmul.f32 %v9385_v34, %v4943_v10  ;;  %v5450_v47 = vmul.f32 %v5442_v57, %v9358_v12  ;;  %v4574_v46 = vld [vmem:[#allocation3 + $0xc2] ss:$2 sm:$0xff] }
 0x348   : > { %v5496_v39 = vmul.f32 %v5488_v20, %v5432_v23  ;;  %v4929_v62 = vadd.f32 %v4921_v2, %v4876_v35  ;;  %v5006_v5 = vmul.f32 %v9385_v34, %v4996_v59  ;;  %v4961_v55 = vadd.f32 %v4953_v49, %v4908_v16  ;;  %v9426_v2 = vld [vmem:[%s9635_s5 + $0xd] ss:$0 sm:$0xff] }
 0x349   : > { %v5378_v42 = vmul.f32 %v5370_v13, %v9355_v45  ;;  %v5027_v32 = vmul.f32 %v9394_v56, %v4996_v59  ;;  %v5059_v63 = vmul.f32 %v9394_v56, %v5049_v44  ;;  %v5458_v21 = vmul.f32 %v5450_v47, %v9358_v12  ;;  %v5261_v59 = vld [vmem:[#allocation3 + $0xaf] ss:$2 sm:$0xff] }
 0x34a   : > { %v5504_v3 = vmax.f32 %v5416_v27, %v5496_v39  ;;  %v4982_v9 = vadd.f32 %v4974_v22, %v4929_v62  ;;  %v5080_v24 = vmul.f32 %v9402_v4, %v5049_v44  ;;  %v5014_v23 = vadd.f32 %v5006_v5, %v4961_v55  ;;  %v4627_v27 = vld [vmem:[#allocation3 + $0xc3] ss:$2 sm:$0xff]  ;;  %v4680_v22 = vld [vmem:[#allocation3 + $0xc4] ss:$2 sm:$0xff] }
 0x34b   : > { %v5386_v30 = vadd.f32 %v5378_v42, %v9355_v45  ;;  %v5112_v29 = vmul.f32 %v9402_v4, %v5102_v1  ;;  %v5133_v14 = vmul.f32 %v9410_v11, %v5102_v1  ;;  %v5466_v33 = vadd.f32 %v5458_v21, %v9358_v12  ;;  %v5314_v5 = vld [vmem:[#allocation3 + $0xb0] ss:$2 sm:$0xff]  ;;  %v9437_v55 = vld [vmem:[%s9635_s5 + $0xe] ss:$0 sm:$0xff] }
 0x34c   : > { %5583 = vxpose.xlu1.b32.start.end [1/1] (short) (narrow) %v5504_v3, 32  ;;  %v5819_v38 = vsel %vm4491_vm5, %v5504_v3, -inf  ;;  %v5035_v43 = vadd.f32 %v5027_v32, %v4982_v9  ;;  %v5165_v10 = vmul.f32 %v9410_v11, %v5155_v25  ;;  %v5067_v53 = vadd.f32 %v5059_v63, %v5014_v23 }
 0x34d   : > { %v5820_v36 = vrot.slane %v5819_v38, 4  ;;  %v5394_v54 = vmul.f32 0.7978846, %v5386_v30  ;;  %v5186_v18 = vmul.f32 %v9419_v61, %v5155_v25  ;;  %v5474_v7 = vmul.f32 0.7978846, %v5466_v33 }
 0x34e   : > { %v5088_v15 = vadd.f32 %v5080_v24, %v5035_v43  ;;  %v5218_v60 = vmul.f32 %v9419_v61, %v5208_v8  ;;  %v5239_v49 = vmul.f32 %v9426_v2, %v5208_v8  ;;  %v5120_v57 = vadd.f32 %v5112_v29, %v5067_v53  ;;  %v4733_v25 = vld [vmem:[#allocation3 + $0xc5] ss:$2 sm:$0xff] }
 0x34f   : > { %v5821_v20 = vmax.f32 %v5819_v38, %v5820_v36  ;;  %7082 = vtanh.f32 %v5394_v54  ;;  %v4551_v35 = vmul.f32 %v9310_v37, %v4538_v50  ;;  %v4583_v13 = vmul.f32 %v9310_v37, %v4574_v46  ;;  %v4839_v54 = vld [vmem:[#allocation3 + $0xc7] ss:$2 sm:$0xff] }
 0x350   : > { %7084 = vtanh.f32 %v5474_v7  ;;  %v5141_v44 = vadd.f32 %v5133_v14, %v5088_v15  ;;  %v4604_v16 = vmul.f32 %v9318_v17, %v4574_v46  ;;  %v5173_v47 = vadd.f32 %v5165_v10, %v5120_v57  ;;  %v4786_v14 = vld [vmem:[#allocation3 + $0xc6] ss:$2 sm:$0xff]  ;;  %v9453_v15 = vld [vmem:[%s9636_s6] ss:$0 sm:$0xff] }
 0x351   : > { %v5822_v39 = vrot.slane %v5821_v20, 2  ;;  %v5271_v62 = vmul.f32 %v9426_v2, %v5261_v59  ;;  %v4636_v1 = vmul.f32 %v9318_v17, %v4627_v27  ;;  %v5292_v32 = vmul.f32 %v9437_v55, %v5261_v59  ;;  %v4892_v59 = vld [vmem:[#allocation3 + $0xc8] ss:$2 sm:$0xff] }
 0x352   : > { %v5194_v42 = vadd.f32 %v5186_v18, %v5141_v44  ;;  %v4612_v63 = vadd.f32 %v4604_v16, %v4551_v35  ;;  %v4657_v37 = vmul.f32 %v9326_v41, %v4627_v27  ;;  %v5226_v21 = vadd.f32 %v5218_v60, %v5173_v47 }
 0x353   : > { %v5823_v3 = vmax.f32 %v5821_v20, %v5822_v39  ;;  %v4644_v9 = vadd.f32 %v4636_v1, %v4583_v13  ;;  %v4689_v24 = vmul.f32 %v9326_v41, %v4680_v22  ;;  %v5324_v17 = vmul.f32 %v9437_v55, %v5314_v5  ;;  %v4945_v13 = vld [vmem:[#allocation3 + $0xc9] ss:$2 sm:$0xff] }
 0x354   : > { %v5247_v30 = vadd.f32 %v5239_v49, %v5194_v42  ;;  %v4665_v23 = vadd.f32 %v4657_v37, %v4612_v63  ;;  %v4710_v29 = vmul.f32 %v9334_v51, %v4680_v22  ;;  %v5279_v38 = vadd.f32 %v5271_v62, %v5226_v21  ;;  %v4998_v42 = vld [vmem:[#allocation3 + $0xca] ss:$2 sm:$0xff] }
 0x355   : > { %v5824_v8 = vrot.slane %v5823_v3, 1  ;;  %v4697_v33 = vadd.f32 %v4689_v24, %v4644_v9  ;;  %v4742_v43 = vmul.f32 %v9334_v51, %v4733_v25  ;;  %v4763_v36 = vmul.f32 %v9342_v58, %v4733_v25 }
 0x356   : > { %v5300_v10 = vadd.f32 %v5292_v32, %v5247_v30  ;;  %v4718_v50 = vadd.f32 %v4710_v29, %v4665_v23  ;;  %v5332_v41 = vadd.f32 %v5324_v17, %v5279_v38  ;;  %v4795_v46 = vmul.f32 %v9342_v58, %v4786_v14 }
 0x357   : > { %v5825_v53 = vmax.f32 %v5823_v3, %v5824_v8  ;;  %v4750_v18 = vadd.f32 %v4742_v43, %v4697_v33  ;;  %v5832_v7 = vmax.f32 %v9273_v0, %v5831_v6  ;;  %v4816_v49 = vmul.f32 %v9350_v40, %v4786_v14  ;;  %v9763_v33 = vld [vmem:[#allocation5_spill] sm:$0xff] }
 0x358   : > { %v9456_v51 = vadd.f32 %v9453_v15, %v5300_v10  ;;  %v4771_v60 = vadd.f32 %v4763_v36, %v4718_v50  ;;  %v9462_v58 = vadd.f32 %v9453_v15, %v5332_v41  ;;  %v4848_v0 = vmul.f32 %v9350_v40, %v4839_v54  ;;  %v5000_v10 = vld [vmem:[#allocation3 + $0xea] ss:$2 sm:$0xff] }
 0x359   : > { %v5883_v27 = vsel %vm5882_vm14, %v5825_v53, %v9379_v28  ;;  %v4803_v20 = vadd.f32 %v4795_v46, %v4750_v18  ;;  %v4869_v44 = vmul.f32 %v9363_v48, %v4839_v54  ;;  %v5354_v16 = vmul.f32 0.5, %v9355_v45 }
 0x35a   : > { %v9466_v6 = vsel %vm5884_vm15, %v5832_v7, %v5883_v27  ;;  %v5363_v57 = vmul.f32 0.044715, %v9456_v51  ;;  %v4824_v35 = vadd.f32 %v4816_v49, %v4771_v60  ;;  %v5443_v22 = vmul.f32 0.044715, %v9462_v58  ;;  %v5157_v7 = vld [vmem:[#allocation3 + $0xcd] ss:$2 sm:$0xff] }
 0x35b   : > { %v4856_v28 = vadd.f32 %v4848_v0, %v4803_v20  ;;  %v4901_v39 = vmul.f32 %v9363_v48, %v4892_v59  ;;  %v5434_v62 = vmul.f32 0.5, %v9358_v12  ;;  %v4922_v1 = vmul.f32 %v9371_v52, %v4892_v59  ;;  %v5051_v12 = vld [vmem:[#allocation3 + $0xcb] ss:$2 sm:$0xff] }
 0x35c   : > { %v7083_v47 = vpop.eup %7082  ;;  %v5371_v40 = vmul.f32 %v5363_v57, %v9456_v51  ;;  %v4877_v5 = vadd.f32 %v4869_v44, %v4824_v35  ;;  %v5451_v37 = vmul.f32 %v5443_v22, %v9462_v58  ;;  %v4954_v45 = vmul.f32 %v9371_v52, %v4945_v13  ;;  %v5104_v52 = vld [vmem:[#allocation3 + $0xcc] ss:$2 sm:$0xff]  ;;  %v7126_v60 = vld [vmem:[#allocation3 + $0xe9] ss:$2 sm:$0xff] }
 0x35d   : > { %v7085_v32 = vpop.eup %7084  ;;  %v5410_v63 = vadd.f32 1.0, %v7083_v47  ;;  %v4909_v25 = vadd.f32 %v4901_v39, %v4856_v28  ;;  %v4975_v9 = vmul.f32 %v9385_v34, %v4945_v13  ;;  %v5007_v23 = vmul.f32 %v9385_v34, %v4998_v42  ;;  %v5210_v35 = vld [vmem:[#allocation3 + $0xce] ss:$2 sm:$0xff]  ;;  %v5263_v39 = vld [vmem:[#allocation3 + $0xcf] ss:$2 sm:$0xff] }
 0x35e   : > { %v5490_v3 = vadd.f32 1.0, %v7085_v32  ;;  %v5379_v21 = vmul.f32 %v5371_v40, %v9456_v51  ;;  %v4930_v48 = vadd.f32 %v4922_v1, %v4877_v5  ;;  %v5459_v30 = vmul.f32 %v5451_v37, %v9462_v58 }
 0x35f   : > { %v5418_v24 = vmul.f32 %v5410_v63, %v5354_v16  ;;  %v4962_v17 = vadd.f32 %v4954_v45, %v4909_v25  ;;  %v5028_v38 = vmul.f32 %v9394_v56, %v4998_v42  ;;  %v4910_v43 = vadd.f32 %v9763_v33, %v9216_v26  ;;  %v5053_v16 = vld [vmem:[#allocation3 + $0xeb] ss:$2 sm:$0xff]  ;;  %v5106_v63 = vld [vmem:[#allocation3 + $0xec] ss:$2 sm:$0xff] }
 0x360   : > { %v5498_v29 = vmul.f32 %v5490_v3, %v5434_v62  ;;  %v5387_v14 = vadd.f32 %v5379_v21, %v9456_v51  ;;  %v4983_v8 = vadd.f32 %v4975_v9, %v4930_v48  ;;  %v5467_v50 = vadd.f32 %v5459_v30, %v9462_v58  ;;  %v9765_v62 = vld [vmem:[#allocation11_spill] sm:$0xff] }
 0x361   : > { %v5015_v36 = vadd.f32 %v5007_v23, %v4962_v17  ;;  %v5060_v54 = vmul.f32 %v9394_v56, %v5051_v12  ;;  %v5081_v46 = vmul.f32 %v9402_v4, %v5051_v12  ;;  %v4976_v49 = vmul.f32 %v7126_v60, %v9385_v34  ;;  %v5316_v25 = vld [vmem:[#allocation3 + $0xd0] ss:$2 sm:$0xff] }
 0x362   : > { %v9488_v53 = vmax.f32 %v5418_v24, %v5498_v29  ;;  %v5395_v41 = vmul.f32 0.7978846, %v5387_v14  ;;  %v5036_v18 = vadd.f32 %v5028_v38, %v4983_v8  ;;  %v5475_v59 = vmul.f32 0.7978846, %v5467_v50  ;;  %v5159_v24 = vld [vmem:[#allocation3 + $0xed] ss:$2 sm:$0xff] }
 0x363   : > { %v5068_v27 = vadd.f32 %v5060_v54, %v5015_v36  ;;  %v5113_v26 = vmul.f32 %v9402_v4, %v5104_v52  ;;  %v5008_v20 = vmul.f32 %v9385_v34, %v5000_v10  ;;  %v5134_v57 = vmul.f32 %v9410_v11, %v5104_v52  ;;  %v9764_v34 = vld [vmem:[#allocation10_spill] sm:$0xff] }
 0x364   : > { %5657 = vxpose.xlu0.b32.start.end [1/1] (short) (narrow) %v9488_v53, 32  ;;  %7086 = vtanh.f32 %v5395_v41  ;;  %v5089_v0 = vadd.f32 %v5081_v46, %v5036_v18  ;;  %v5166_v13 = vmul.f32 %v9410_v11, %v5157_v7  ;;  %v5187_v28 = vmul.f32 %v9419_v61, %v5157_v7  ;;  %v5212_v52 = vld [vmem:[#allocation3 + $0xee] ss:$2 sm:$0xff]  ;;  %v5265_v54 = vld [vmem:[#allocation3 + $0xef] ss:$2 sm:$0xff] }
 0x365   : > { %7088 = vtanh.f32 %v5475_v59  ;;  %v5121_v44 = vadd.f32 %v5113_v26, %v5068_v27  ;;  %v4931_v47 = vadd.f32 %v9764_v34, %v9267_v19  ;;  %v4963_v40 = vadd.f32 %v9765_v62, %v4910_v43  ;;  %v5318_v7 = vld [vmem:[#allocation3 + $0xf0] ss:$2 sm:$0xff] }
 0x366   : > { %v5142_v22 = vadd.f32 %v5134_v57, %v5089_v0  ;;  %v5219_v1 = vmul.f32 %v9419_v61, %v5210_v35  ;;  %v5240_v42 = vmul.f32 %v9426_v2, %v5210_v35  ;;  %v5029_v32 = vmul.f32 %v9394_v56, %v5000_v10 }
 0x367   : > { %v5174_v5 = vadd.f32 %v5166_v13, %v5121_v44  ;;  %v4984_v45 = vadd.f32 %v4976_v49, %v4931_v47  ;;  %v5016_v3 = vadd.f32 %v5008_v20, %v4963_v40  ;;  %v5061_v21 = vmul.f32 %v9394_v56, %v5053_v16 }
 0x368   : > { %v5195_v37 = vadd.f32 %v5187_v28, %v5142_v22  ;;  %v5272_v48 = vmul.f32 %v9426_v2, %v5263_v39  ;;  %v5293_v9 = vmul.f32 %v9437_v55, %v5263_v39  ;;  %v5082_v12 = vmul.f32 %v9402_v4, %v5053_v16 }
 0x369   : > { %v5227_v19 = vadd.f32 %v5219_v1, %v5174_v5  ;;  %v5037_v17 = vadd.f32 %v5029_v32, %v4984_v45  ;;  %v5069_v23 = vadd.f32 %v5061_v21, %v5016_v3  ;;  %v5114_v29 = vmul.f32 %v9402_v4, %v5106_v63 }
 0x36a   : > { %v5248_v30 = vadd.f32 %v5240_v42, %v5195_v37  ;;  %v5325_v8 = vmul.f32 %v9437_v55, %v5316_v25  ;;  %v5135_v38 = vmul.f32 %v9410_v11, %v5106_v63  ;;  %v5167_v10 = vmul.f32 %v9410_v11, %v5159_v24 }
 0x36b   : > { %v5280_v14 = vadd.f32 %v5272_v48, %v5227_v19  ;;  %v5090_v33 = vadd.f32 %v5082_v12, %v5037_v17  ;;  %v5122_v43 = vadd.f32 %v5114_v29, %v5069_v23  ;;  %v5188_v36 = vmul.f32 %v9419_v61, %v5159_v24 }
 0x36c   : > { %v5301_v56 = vadd.f32 %v5293_v9, %v5248_v30  ;;  %v5220_v4 = vmul.f32 %v9419_v61, %v5212_v52  ;;  %v5241_v49 = vmul.f32 %v9426_v2, %v5212_v52  ;;  %v5273_v11 = vmul.f32 %v9426_v2, %v5265_v54 }
 0x36d   : > { %v5333_v50 = vadd.f32 %v5325_v8, %v5280_v14  ;;  %v5143_v18 = vadd.f32 %v5135_v38, %v5090_v33  ;;  %v5175_v46 = vadd.f32 %v5167_v10, %v5122_v43  ;;  %v5355_v0 = vmul.f32 0.5, %v9456_v51 }
 0x36e   : > { %v5348_v41 = vadd.f32 %v9453_v15, %v5301_v56  ;;  %v5294_v35 = vmul.f32 %v9437_v55, %v5265_v54  ;;  %v5326_v44 = vmul.f32 %v9437_v55, %v5318_v7  ;;  %v5435_v39 = vmul.f32 0.5, %v9462_v58 }
 0x36f   : > { %v5428_v60 = vadd.f32 %v9453_v15, %v5333_v50  ;;  %v5196_v27 = vadd.f32 %v5188_v36, %v5143_v18  ;;  %v5228_v26 = vadd.f32 %v5220_v4, %v5175_v46 }
 0x370   : > { %v5364_v59 = vmul.f32 0.044715, %v5348_v41  ;;  %v5356_v38 = vmul.f32 0.5, %v5348_v41 }
 0x371   : > { %v7087_v20 = vpop.eup %7086  ;;  %v5444_v57 = vmul.f32 0.044715, %v5428_v60  ;;  %v5249_v22 = vadd.f32 %v5241_v49, %v5196_v27  ;;  %v5281_v28 = vadd.f32 %v5273_v11, %v5228_v26  ;;  %v5436_v33 = vmul.f32 0.5, %v5428_v60 }
 0x372   : > { %v7089_v13 = vpop.eup %7088  ;;  %v5411_v61 = vadd.f32 1.0, %v7087_v20  ;;  %v5372_v16 = vmul.f32 %v5364_v59, %v5348_v41 }
 0x373   : > { %v5491_v34 = vadd.f32 1.0, %v7089_v13  ;;  %v5452_v47 = vmul.f32 %v5444_v57, %v5428_v60  ;;  %v5302_v2 = vadd.f32 %v5294_v35, %v5249_v22  ;;  %v5334_v5 = vadd.f32 %v5326_v44, %v5281_v28 }
 0x374   : > { %v5419_v62 = vmul.f32 %v5411_v61, %v5355_v0  ;;  %v5380_v40 = vmul.f32 %v5372_v16, %v5348_v41 }
 0x375   : > { %v5499_v1 = vmul.f32 %v5491_v34, %v5435_v39  ;;  %v5460_v51 = vmul.f32 %v5452_v47, %v5428_v60  ;;  %v5349_v32 = vadd.f32 %v9453_v15, %v5302_v2  ;;  %v5429_v55 = vadd.f32 %v9453_v15, %v5334_v5 }
 0x376   : > { %v5388_v42 = vadd.f32 %v5380_v40, %v5348_v41  ;;  %v5833_v15 = vsel %vm4491_vm5, %v9488_v53, -inf }
 0x377   : > { %v5507_v63 = vmax.f32 %v5419_v62, %v5499_v1  ;;  %v5468_v37 = vadd.f32 %v5460_v51, %v5428_v60  ;;  %v5365_v45 = vmul.f32 0.044715, %v5349_v32  ;;  %v5445_v58 = vmul.f32 0.044715, %v5429_v55 }
 0x378   : > { %v5396_v25 = vmul.f32 0.7978846, %v5388_v42  ;;  %v5834_v23 = vrot.slane %v5833_v15, 4  ;;  %v5357_v59 = vmul.f32 0.5, %v5349_v32  ;;  %v5437_v41 = vmul.f32 0.5, %v5429_v55 }
 0x379   : > { %5694 = vxpose.xlu1.b32.start.end [1/1] (short) (narrow) %v5507_v63, 32  ;;  %v5476_v3 = vmul.f32 0.7978846, %v5468_v37  ;;  %v5373_v21 = vmul.f32 %v5365_v45, %v5349_v32  ;;  %v5453_v19 = vmul.f32 %v5445_v58, %v5429_v55  ;;  %v5840_v14 = vsel %vm4491_vm5, %v5507_v63, -inf }
 0x37a   : > { %7090 = vtanh.f32 %v5396_v25  ;;  %v5835_v56 = vmax.f32 %v5833_v15, %v5834_v23  ;;  %v5841_v10 = vrot.slane %v5840_v14, 4  ;;  %v6581_v25 = vld [vmem:[%s9638_s8] ss:$0 sm:$0xff] }
 0x37b   : > { %7092 = vtanh.f32 %v5476_v3  ;;  %v5381_v48 = vmul.f32 %v5373_v21, %v5349_v32  ;;  %v5461_v9 = vmul.f32 %v5453_v19, %v5429_v55  ;;  %v6066_v15 = vld [vmem:[%s9641_s11] sm:$0xff] }
 0x37c   : > { %v5836_v54 = vrot.slane %v5835_v56, 2  ;;  %v5842_v46 = vmax.f32 %v5840_v14, %v5841_v10 }
 0x37d   : > { %v5389_v12 = vadd.f32 %v5381_v48, %v5349_v32  ;;  %v5469_v24 = vadd.f32 %v5461_v9, %v5429_v55 }
 0x37e   : > { %v5837_v26 = vmax.f32 %v5835_v56, %v5836_v54  ;;  %v5843_v20 = vrot.slane %v5842_v46, 2 }
 0x37f   : > { %v5397_v30 = vmul.f32 0.7978846, %v5389_v12  ;;  %v5477_v17 = vmul.f32 0.7978846, %v5469_v24 }
 0x380   : > { %v5838_v44 = vrot.slane %v5837_v26, 1  ;;  %v5844_v61 = vmax.f32 %v5842_v46, %v5843_v20  ;;  %v6583_v46 = vld [vmem:[%s9640_s10] ss:$0 sm:$0xff] }
 0x381   : > { %7094 = vtanh.f32 %v5397_v30 }
 0x382   : > { %7096 = vtanh.f32 %v5477_v17  ;;  %v5839_v39 = vmax.f32 %v5837_v26, %v5838_v44  ;;  %v5845_v47 = vrot.slane %v5844_v61, 1 }
 0x384   : > { %v5887_v2 = vsel %vm1977_vm13, %v5839_v39, %v9466_v6  ;;  %v5846_v1 = vmax.f32 %v5844_v61, %v5845_v47  ;;  %v5975_v6 = vld [vmem:[%s9639_s9] sm:$0xff] }
 0x385   : > { %6955 = vmatpush3.msra.mxu1 %v5975_v6 }
 0x386   : > { %v5889_v32 = vsel %vm5888_vm2, %v5846_v1, %v5887_v2 }
 0x387   : > { %v7091_v29 = vpop.eup %7090 }
 0x388   : > { %v7093_v8 = vpop.eup %7092  ;;  %v5412_v52 = vadd.f32 1.0, %v7091_v29 }
 0x389   : > { %v5492_v43 = vadd.f32 1.0, %v7093_v8 }
 0x38a   : > { %v5420_v50 = vmul.f32 %v5412_v52, %v5356_v38 }
 0x38b   : > { %v5500_v36 = vmul.f32 %v5492_v43, %v5436_v33 }
 0x38d   : > { %v5508_v18 = vmax.f32 %v5420_v50, %v5500_v36 }
 0x38e   : > { %v7095_v4 = vpop.eup %7094  ;;  %v5562_v23 = vpop.trf.xlu0 }
 0x38f   : > { %v5847_v53 = vsel %vm4491_vm5, %v5508_v18, -inf  ;;  %5731 = vxpose.xlu0.b32.start.end [1/1] (short) (narrow) %v5508_v18, 32  ;;  %v7097_v7 = vpop.eup %7096  ;;  %v5413_v27 = vadd.f32 1.0, %v7095_v4  ;;  %6553 = vst.msk [vmem:[%s9552_s20 + $0x20] sm:$0xff] %vm554_vm1, %v5562_v23 }
 0x390   : > { %v5848_v49 = vrot.slane %v5847_v53, 4  ;;  %v5493_v11 = vadd.f32 1.0, %v7097_v7 }
 0x391   : > { %v5421_v0 = vmul.f32 %v5413_v27, %v5357_v59 }
 0x392   : > { %v5849_v60 = vmax.f32 %v5847_v53, %v5848_v49  ;;  %v5501_v57 = vmul.f32 %v5493_v11, %v5437_v41  ;;  %v5563_v14 = vpop.trf.xlu0 }
 0x393   : > { %6554 = vst.msk [vmem:[%s9552_s20 + $0x28] sm:$0xff] %vm554_vm1, %v5563_v14 }
 0x394   : > { %v5850_v35 = vrot.slane %v5849_v60, 2  ;;  %v5509_v13 = vmax.f32 %v5421_v0, %v5501_v57 }
 0x396   : > { %v5851_v16 = vmax.f32 %v5849_v60, %v5850_v35  ;;  %v5854_v22 = vsel %vm4491_vm5, %v5509_v13, -inf  ;;  %5768 = vxpose.xlu1.b32.start.end [1/1] (short) (narrow) %v5509_v13, 32  ;;  %v5564_v38 = vpop.trf.xlu0 }
 0x397   : > { %v5855_v28 = vrot.slane %v5854_v22, 4  ;;  %6555 = vst.msk [vmem:[%s9552_s20 + $0x30] sm:$0xff] %vm554_vm1, %v5564_v38 }
 0x398   : > { %v5852_v34 = vrot.slane %v5851_v16, 1 }
 0x399   : > { %v5856_v62 = vmax.f32 %v5854_v22, %v5855_v28 }
 0x39a   : > { %v5853_v5 = vmax.f32 %v5851_v16, %v5852_v34  ;;  %v5565_v56 = vpop.trf.xlu0 }
 0x39b   : > { %v5857_v40 = vrot.slane %v5856_v62, 2  ;;  %6556 = vst.msk [vmem:[%s9552_s20 + $0x38] sm:$0xff] %vm554_vm1, %v5565_v56 }
 0x39c   : > { %v5891_v55 = vsel %vm5890_vm3, %v5853_v5, %v5889_v32  ;;  %v6585_v32 = vld [vmem:[#allocation4] ss:$0 sm:$0xff] }
 0x39d   : > { %v5858_v51 = vmax.f32 %v5856_v62, %v5857_v40 }
 0x39f   : > { %v5859_v42 = vrot.slane %v5858_v51, 1  ;;  %v5636_v29 = vpop.trf.xlu1 }
 0x3a0   : > { %6561 = vst.msk [vmem:[%s9552_s20 + $0x60] sm:$0xff] %vm554_vm1, %v5636_v29 }
 0x3a1   : > { %v5860_v63 = vmax.f32 %v5858_v51, %v5859_v42 }
 0x3a3   : > { %v5893_v37 = vsel %vm5892_vm4, %v5860_v63, %v5891_v55  ;;  %v5637_v8 = vpop.trf.xlu1 }
 0x3a4   : > { %6950 = vmatmul.mubr.msk.f32.vlgmr.msra.gmra.mxu0 %vm4491_vm5, %v5893_v37  ;;  %6562 = vst.msk [vmem:[%s9552_s20 + $0x68] sm:$0xff] %vm554_vm1, %v5637_v8 }
 0x3a5   : > { %6961 = vmatprep.mubr.msk.f32.mxu0 %vm7137_vm0, %v9759_v31  ;;  %6960 = vmatpush3.msra.mxu0 %v6066_v15 }
 0x3a7   : > { %v5638_v52 = vpop.trf.xlu1 }
 0x3a8   : > { %6563 = vst.msk [vmem:[%s9552_s20 + $0x70] sm:$0xff] %vm554_vm1, %v5638_v52 }
 0x3ab   : > { %v5639_v33 = vpop.trf.xlu1 }
 0x3ac   : > { %6564 = vst.msk [vmem:[%s9552_s20 + $0x78] sm:$0xff] %vm554_vm1, %v5639_v33 }
 0x3b6   : > { %v5526_v10 = vpop.trf.xlu0 }
 0x3b7   : > { %5542 = vst.msk [vmem:[%s9552_s20] sm:$0xff] %vm554_vm1, %v5526_v10 }
 0x3ba   : > { %v5527_v36 = vpop.trf.xlu0 }
 0x3bb   : > { %5543 = vst.msk [vmem:[%s9552_s20 + $0x8] sm:$0xff] %vm554_vm1, %v5527_v36 }
 0x3be   : > { %v5528_v18 = vpop.trf.xlu0 }
 0x3bf   : > { %5544 = vst.msk [vmem:[%s9552_s20 + $0x10] sm:$0xff] %vm554_vm1, %v5528_v18 }
 0x3c2   : > { %v5529_v35 = vpop.trf.xlu0 }
 0x3c3   : > { %5545 = vst.msk [vmem:[%s9552_s20 + $0x18] sm:$0xff] %vm554_vm1, %v5529_v35 }
 0x3c8   : > { %v5599_v43 = vpop.trf.xlu1 }
 0x3c9   : > { %6557 = vst.msk [vmem:[%s9552_s20 + $0x40] sm:$0xff] %vm554_vm1, %v5599_v43 }
 0x3cc   : > { %v5600_v50 = vpop.trf.xlu1 }
 0x3cd   : > { %6558 = vst.msk [vmem:[%s9552_s20 + $0x48] sm:$0xff] %vm554_vm1, %v5600_v50 }
 0x3d0   : > { %v5601_v54 = vpop.trf.xlu1 }
 0x3d1   : > { %6559 = vst.msk [vmem:[%s9552_s20 + $0x50] sm:$0xff] %vm554_vm1, %v5601_v54 }
 0x3d4   : > { %v5602_v57 = vpop.trf.xlu1 }
 0x3d5   : > { %6560 = vst.msk [vmem:[%s9552_s20 + $0x58] sm:$0xff] %vm554_vm1, %v5602_v57 }
 0x3e0   : > { %v5673_v13 = vpop.trf.xlu0 }
 0x3e1   : > { %6565 = vst.msk [vmem:[%s9552_s20 + $0x80] sm:$0xff] %vm554_vm1, %v5673_v13 }
 0x3e4   : > { %v5674_v16 = vpop.trf.xlu0 }
 0x3e5   : > { %6566 = vst.msk [vmem:[%s9552_s20 + $0x88] sm:$0xff] %vm554_vm1, %v5674_v16 }
 0x3e8   : > { %v5675_v28 = vpop.trf.xlu0 }
 0x3e9   : > { %6567 = vst.msk [vmem:[%s9552_s20 + $0x90] sm:$0xff] %vm554_vm1, %v5675_v28 }
 0x3ec   : > { %v5676_v34 = vpop.trf.xlu0 }
 0x3ed   : > { %6568 = vst.msk [vmem:[%s9552_s20 + $0x98] sm:$0xff] %vm554_vm1, %v5676_v34 }
 0x3f5   : > { %v5710_v44 = vpop.trf.xlu1 }
 0x3f6   : > { %6569 = vst.msk [vmem:[%s9552_s20 + $0xa0] sm:$0xff] %vm554_vm1, %v5710_v44 }
 0x3f9   : > { %v5711_v61 = vpop.trf.xlu1 }
 0x3fa   : > { %6570 = vst.msk [vmem:[%s9552_s20 + $0xa8] sm:$0xff] %vm554_vm1, %v5711_v61 }
 0x3fd   : > { %v5712_v22 = vpop.trf.xlu1 }
 0x3fe   : > { %6571 = vst.msk [vmem:[%s9552_s20 + $0xb0] sm:$0xff] %vm554_vm1, %v5712_v22 }
 0x401   : > { %v5713_v39 = vpop.trf.xlu1 }
 0x402   : > { %6572 = vst.msk [vmem:[%s9552_s20 + $0xb8] sm:$0xff] %vm554_vm1, %v5713_v39 }
 0x40b   : > { %v5747_v62 = vpop.trf.xlu0 }
 0x40c   : > { %6573 = vst.msk [vmem:[%s9552_s20 + $0xc0] sm:$0xff] %vm554_vm1, %v5747_v62 }
 0x40f   : > { %v5748_v2 = vpop.trf.xlu0 }
 0x410   : > { %6574 = vst.msk [vmem:[%s9552_s20 + $0xc8] sm:$0xff] %vm554_vm1, %v5748_v2 }
 0x412   : > { %v5784_v47 = vpop.trf.xlu1 }
 0x413   : > { %6577 = vst.msk [vmem:[%s9552_s20 + $0xe0] sm:$0xff] %vm554_vm1, %v5784_v47  ;;  %v5749_v1 = vpop.trf.xlu0 }
 0x414   : > { %6575 = vst.msk [vmem:[%s9552_s20 + $0xd0] sm:$0xff] %vm554_vm1, %v5749_v1 }
 0x416   : > { %v5785_v40 = vpop.trf.xlu1 }
 0x417   : > { %6578 = vst.msk [vmem:[%s9552_s20 + $0xe8] sm:$0xff] %vm554_vm1, %v5785_v40  ;;  %v5750_v42 = vpop.trf.xlu0 }
 0x418   : > { %6576 = vst.msk [vmem:[%s9552_s20 + $0xd8] sm:$0xff] %vm554_vm1, %v5750_v42 }
 0x41a   : > { %v5786_v5 = vpop.trf.xlu1 }
 0x41b   : > { %6579 = vst.msk [vmem:[%s9552_s20 + $0xf0] sm:$0xff] %vm554_vm1, %v5786_v5 }
 0x41e   : > { %v5787_v51 = vpop.trf.xlu1 }
 0x41f   : > { %6580 = vst.msk [vmem:[%s9552_s20 + $0xf8] sm:$0xff] %vm554_vm1, %v5787_v51 }
 0x464   : > { %v5962_v45 = vpop.f32.mrf.mxu0 }
 0x465   : > { %v5963_v3 = vadd.f32 %v6581_v25, %v5962_v45 }
 0x466   : > { %v6951_v58 = vpop.f32.mrf.mxu0 }
 0x467   : > { %v5967_v21 = vmul.f32 0.044715, %v5963_v3  ;;  %v5966_v24 = vmul.f32 0.5, %v5963_v3 }
 0x469   : > { %v5968_v19 = vmul.f32 %v5967_v21, %v5963_v3 }
 0x46b   : > { %v5969_v48 = vmul.f32 %v5968_v19, %v5963_v3 }
 0x46d   : > { %v5970_v9 = vadd.f32 %v5969_v48, %v5963_v3 }
 0x46f   : > { %v5971_v12 = vmul.f32 0.7978846, %v5970_v9 }
 0x471   : > { %7098 = vtanh.f32 %v5971_v12 }
 0x47e   : > { %v7099_v31 = vpop.eup %7098 }
 0x47f   : > { %v5973_v30 = vadd.f32 1.0, %v7099_v31 }
 0x481   : > { %v5974_v17 = vmul.f32 %v5973_v30, %v5966_v24 }
 0x483   : > { %6957 = vmatmul.mubr.msk.f32.vlgmr.msra.gmra.mxu1 %vm1314_vm6, %v5974_v17  ;;  %vm6153_vm6 = vcmask 7168  }
 0x543   : > { %v6053_v4 = vpop.f32.mrf.mxu1 }
 0x544   : > { %v6054_v53 = vadd.f32 %v6583_v46, %v6053_v4 }
 0x545   : > { %v6958_v7 = vpop.f32.mrf.mxu1 }
 0x546   : > { %v6058_v49 = vmul.f32 0.044715, %v6054_v53  ;;  %v6057_v20 = vmul.f32 0.5, %v6054_v53 }
 0x548   : > { %v6059_v59 = vmul.f32 %v6058_v49, %v6054_v53 }
 0x54a   : > { %v6060_v27 = vmul.f32 %v6059_v59, %v6054_v53 }
 0x54c   : > { %v6061_v26 = vadd.f32 %v6060_v27, %v6054_v53 }
 0x54e   : > { %v6062_v41 = vmul.f32 0.7978846, %v6061_v26 }
 0x550   : > { %7100 = vtanh.f32 %v6062_v41 }
 0x55d   : > { %v7101_v11 = vpop.eup %7100 }
 0x55e   : > { %v6064_v60 = vadd.f32 1.0, %v7101_v11 }
 0x560   : > { %v6065_v0 = vmul.f32 %v6064_v60, %v6057_v20 }
 0x562   : > { %6962 = vmatmul.mubr.msk.f32.vlgmr.msra.gmra.mxu0 %vm554_vm1, %v6065_v0 }
 0x622   : > { %v6143_v55 = vpop.f32.mrf.mxu0 }
 0x623   : > { %v6144_v63 = vadd.f32 %v6585_v32, %v6143_v55 }
 0x624   : > { %v6963_v37 = vpop.f32.mrf.mxu0 }
 0x625   : > { %v6147_v6 = vsub.f32 0.0, %v6144_v63 }
 0x627   : > { %v6148_v25 = vmul.f32 1.442695, %v6147_v6 }
 0x629   : > { %7102 = vpow2.f32 %v6148_v25 }
 0x636   : > { %v7103_v45 = vpop.eup %7102 }
 0x637   : > { %v6150_v3 = vadd.f32 1.0, %v7103_v45 }
 0x639   : > { %7104 = vrcp.f32 %v6150_v3 }
 0x646   : > { %v7105_v58 = vpop.eup %7104 }
 0x647   : > { %6154 = vst.msk [vmem:[%s488_s25] sm:$0xff] %vm6153_vm6, %v7105_v58 }
 0x648 PF: > { %s27_s15 = sadd.s32 1, %s7133_s15  }
 0x649   : > { %p24_p5 = scmp.ge.s32.totalorder %s27_s15, 4  }
 0x64b   :  { %26 = sbr.rel (!%p24_p5) target bundleno = 3 (0x3), region = 259 }

</bundles_post_ra>
